<compile_context>
chip_gen: v7x
topology: tpu7x:2x2x1
jax: 0.10.0
libtpu: 0.0.40
codegen_flags: <defaults>
</compile_context>

<pallas_src>
import jax
import jax.numpy as jnp
from jax.experimental import pallas as pl
from jax.experimental.pallas import tpu as pltpu

# ----------------------------- model hyper-params -----------------------------
SRC_VOCAB = 16     # encoder.input_dim
TRG_VOCAB = 16     # decoder.output_dim
EMB_DIM = 32       # encoder/decoder embedding dim
HID_DIM = 32       # encoder.hid_dim == decoder.hid_dim
N_LAYERS = 2       # encoder.n_layers == decoder.n_layers
SRC_LEN = 8
TRG_LEN = 8
BATCH = 2
TEACHER_FORCING_RATIO = 0.5

B_PAD = 8          # pad batch to the f32 sublane height
V_PAD = 128        # pad vocab to the lane width (lane-dense compute & stores)
H4 = 4 * HID_DIM   # 128 gate lanes

assert BATCH <= B_PAD
assert TRG_VOCAB <= V_PAD
assert EMB_DIM == HID_DIM          # lets us stack both LSTM layers into (L, HID, 4H) arrays


# ----------------------------- fused Pallas kernel -----------------------------
def seq2seq_kernel(emb_src_ref,   # (SRC_LEN*B_PAD, EMB_DIM)      f32  encoder embeddings (flat)
                   trg_oh_ref,    # (TRG_LEN, B_PAD, V_PAD)       f32  one-hot target tokens
                   tf_ref,        # (TRG_LEN,)                    i32  teacher-forcing flags (SMEM)
                   enc_wih_ref,   # (N_LAYERS, HID, 4H)           bf16 W_ih^T, gate order (i,f,o,g)
                   enc_whh_ref,   # (N_LAYERS, HID, 4H)           bf16 W_hh^T
                   enc_b_ref,     # (N_LAYERS, 1, 4H)             f32  b_ih + b_hh
                   dec_wemb_ref,  # (V_PAD, 4H)                   bf16 dec_emb @ W_ih^T (layer 0, folded)
                   dec_wih1_ref,  # (HID, 4H)                     bf16 decoder layer-1 W_ih^T
                   dec_whh_ref,   # (N_LAYERS, HID, 4H)           bf16 decoder W_hh^T
                   dec_b_ref,     # (N_LAYERS, 1, 4H)             f32
                   out_w_ref,     # (HID, V_PAD)                  bf16 cols >= TRG_VOCAB are zero
                   out_b_ref,     # (1, V_PAD)                    f32  cols >= TRG_VOCAB are zero
                   out_ref,       # (TRG_LEN, B_PAD, V_PAD)       f32  output logits
                   inp_scratch):  # (B_PAD, V_PAD)                f32  VMEM: decoder input one-hot
    f32 = jnp.float32
    bf16 = jnp.bfloat16
    H = HID_DIM

    def cell_from_gates(gates, c):
        # Host-side gate order is (i, f, o | g): one sigmoid over the whole (8,128) vreg and
        # one tanh over the last 32 lanes -> 2 EUP issues per cell instead of 4.
        sig = jax.nn.sigmoid(gates)
        i_g = sig[:, 0 * H:1 * H]
        f_g = sig[:, 1 * H:2 * H]
        o_g = sig[:, 2 * H:3 * H]
        g_g = jnp.tanh(gates[:, 3 * H:4 * H])
        c_new = f_g * c + i_g * g_g
        h_new = o_g * jnp.tanh(c_new)
        return h_new, c_new

    # ------- loop-invariant weights / bias broadcasts (traced & loaded once) -------
    enc_wih1 = enc_wih_ref[1]
    enc_whh0 = enc_whh_ref[0]
    enc_whh1 = enc_whh_ref[1]
    enc_b1 = jnp.broadcast_to(enc_b_ref[1], (B_PAD, H4))
    dec_wemb = dec_wemb_ref[...]
    dec_wih1 = dec_wih1_ref[...]
    dec_whh0 = dec_whh_ref[0]
    dec_whh1 = dec_whh_ref[1]
    dec_b0 = jnp.broadcast_to(dec_b_ref[0], (B_PAD, H4))
    dec_b1 = jnp.broadcast_to(dec_b_ref[1], (B_PAD, H4))
    out_w = out_w_ref[...]
    out_b = jnp.broadcast_to(out_b_ref[...], (B_PAD, V_PAD))

    # ---------------- encoder (dropout = eval-mode identity) ----------------
    # Hoisted layer-0 input projection for ALL 8 timesteps: one MXU op off the serial path.
    x0_all = jnp.dot(emb_src_ref[...].astype(bf16), enc_wih_ref[0],
                     preferred_element_type=f32) + enc_b_ref[0]        # (SRC_LEN*B_PAD, 4H)

    h = [jnp.zeros((B_PAD, H), f32) for _ in range(N_LAYERS)]
    c = [jnp.zeros((B_PAD, H), f32) for _ in range(N_LAYERS)]
    for t in range(SRC_LEN):                                  # static unroll (tiny trip count)
        g0 = x0_all[t * B_PAD:(t + 1) * B_PAD, :] + jnp.dot(
            h[0].astype(bf16), enc_whh0, preferred_element_type=f32)
        h[0], c[0] = cell_from_gates(g0, c[0])
        g1 = (jnp.dot(h[0].astype(bf16), enc_wih1, preferred_element_type=f32)
              + jnp.dot(h[1].astype(bf16), enc_whh1, preferred_element_type=f32)
              + enc_b1)
        h[1], c[1] = cell_from_gates(g1, c[1])

    # ---------------- decoder ------------------------------------------------
    out_ref[0] = jnp.zeros((B_PAD, V_PAD), f32)               # outputs[0] stays zero (PyTorch)
    inp_scratch[...] = trg_oh_ref[0]                          # input = trg[0]  (one-hot rows)

    lane = jax.lax.broadcasted_iota(jnp.int32, (B_PAD, V_PAD), 1)
    lane_f = lane.astype(f32)
    valid = lane < TRG_VOCAB                                   # mask out padded vocab lanes
    neg_big = jnp.full((B_PAD, V_PAD), -1e30, f32)
    pad_idx = jnp.full((B_PAD, V_PAD), float(V_PAD), f32)

    for t in range(1, TRG_LEN):                               # static unroll
        inp = inp_scratch[...]                                 # (B_PAD, V_PAD) one-hot
        # layer 0: folded (embedding @ W_ih) + recurrent term
        g0 = (jnp.dot(inp.astype(bf16), dec_wemb, preferred_element_type=f32)
              + jnp.dot(h[0].astype(bf16), dec_whh0, preferred_element_type=f32)
              + dec_b0)
        h[0], c[0] = cell_from_gates(g0, c[0])
        g1 = (jnp.dot(h[0].astype(bf16), dec_wih1, preferred_element_type=f32)
              + jnp.dot(h[1].astype(bf16), dec_whh1, preferred_element_type=f32)
              + dec_b1)
        h[1], c[1] = cell_from_gates(g1, c[1])

        logits = jnp.dot(h[1].astype(bf16), out_w, preferred_element_type=f32) + out_b
        out_ref[t] = logits                                    # lane-dense (8,128) store

        if t < TRG_LEN - 1:                                    # last step's input is never used
            @pl.when(tf_ref[t] != 0)                           # teacher forced: copy trg one-hot
            def _():
                inp_scratch[...] = trg_oh_ref[t]

            @pl.when(tf_ref[t] == 0)                           # greedy: in-kernel first-argmax
            def _():
                masked = jnp.where(valid, logits, neg_big)
                row_max = jnp.max(masked, axis=-1, keepdims=True)
                arg = jnp.min(jnp.where(masked >= row_max, lane_f, pad_idx),
                              axis=-1, keepdims=True)
                inp_scratch[...] = (lane_f == arg).astype(f32)


# ----------------------------- parameter init ---------------------------------
def init_lstm_params(key, n_layers, input_size, hid):
    """PyTorch nn.LSTM-style U(-1/sqrt(hid), 1/sqrt(hid)) init, per layer (pre-transposed)."""
    params = []
    scale = 1.0 / float(hid) ** 0.5
    for layer in range(n_layers):
        in_sz = input_size if layer == 0 else hid
        key, k1, k2, k3, k4 = jax.random.split(key, 5)
        w_ih = jax.random.uniform(k1, (4 * hid, in_sz), jnp.float32, -scale, scale)
        w_hh = jax.random.uniform(k2, (4 * hid, hid), jnp.float32, -scale, scale)
        b_ih = jax.random.uniform(k3, (4 * hid,), jnp.float32, -scale, scale)
        b_hh = jax.random.uniform(k4, (4 * hid,), jnp.float32, -scale, scale)
        params.append((w_ih.T, w_hh.T, (b_ih + b_hh)[None, :]))    # PyTorch gate order i,f,g,o
    return params, key


def init_params(key):
    key, ke, kd, ko_w, ko_b = jax.random.split(key, 5)
    params = {}
    params["enc_emb"] = jax.random.normal(ke, (SRC_VOCAB, EMB_DIM), jnp.float32) * 0.1
    params["dec_emb"] = jax.random.normal(kd, (TRG_VOCAB, EMB_DIM), jnp.float32) * 0.1
    params["enc_lstm"], key = init_lstm_params(key, N_LAYERS, EMB_DIM, HID_DIM)
    params["dec_lstm"], key = init_lstm_params(key, N_LAYERS, EMB_DIM, HID_DIM)
    scale = 1.0 / float(HID_DIM) ** 0.5
    w_out = jax.random.uniform(ko_w, (TRG_VOCAB, HID_DIM), jnp.float32, -scale, scale)
    b_out = jax.random.uniform(ko_b, (TRG_VOCAB,), jnp.float32, -scale, scale)
    params["dec_out_w_t"] = w_out.T                # (HID, TRG_VOCAB)
    params["dec_out_b"] = b_out[None, :]           # (1, TRG_VOCAB)
    return params


# ----------------------------- one-time host-side prep -------------------------
def _reorder_gates(a):
    """Reorder the 4H gate axis from PyTorch (i,f,g,o) to kernel order (i,f,o,g)."""
    i, f, g, o = jnp.split(a, 4, axis=-1)
    return jnp.concatenate([i, f, o, g], axis=-1)


def prepare_params(params):
    """One-time packing: gate reorder, vocab padding, bf16 weight cast, and folding the decoder
    embedding table into decoder layer-0 W_ih. Runs once, outside the per-call jitted forward."""
    bf16 = jnp.bfloat16

    def stack(layer_params, idx):
        return jnp.stack([_reorder_gates(p[idx]) for p in layer_params], axis=0)

    enc_wih = stack(params["enc_lstm"], 0).astype(bf16)        # (L, HID, 4H)
    enc_whh = stack(params["enc_lstm"], 1).astype(bf16)        # (L, HID, 4H)
    enc_b = stack(params["enc_lstm"], 2)                        # (L, 1, 4H) f32

    dec_wih = [_reorder_gates(p[0]) for p in params["dec_lstm"]]
    dec_whh = stack(params["dec_lstm"], 1).astype(bf16)
    dec_b = stack(params["dec_lstm"], 2)

    # Fold decoder embedding (padded rows are zero) into layer-0 input weight: (V_PAD, 4H).
    dec_emb_pad = jnp.zeros((V_PAD, EMB_DIM), jnp.float32).at[:TRG_VOCAB].set(params["dec_emb"])
    dec_wemb = jnp.dot(dec_emb_pad, dec_wih[0]).astype(bf16)
    dec_wih1 = dec_wih[1].astype(bf16)

    out_w = (jnp.zeros((HID_DIM, V_PAD), jnp.float32)
             .at[:, :TRG_VOCAB].set(params["dec_out_w_t"]).astype(bf16))
    out_b = jnp.zeros((1, V_PAD), jnp.float32).at[:, :TRG_VOCAB].set(params["dec_out_b"])

    return {
        "enc_emb": params["enc_emb"],
        "enc_wih": enc_wih, "enc_whh": enc_whh, "enc_b": enc_b,
        "dec_wemb": dec_wemb, "dec_wih1": dec_wih1, "dec_whh": dec_whh, "dec_b": dec_b,
        "out_w": out_w, "out_b": out_b,
    }


# ----------------------------- per-call forward --------------------------------
def _pad_batch(x):
    pad = [(0, 0)] * x.ndim
    pad[1] = (0, B_PAD - x.shape[1])
    return jnp.pad(x, pad)


@jax.jit
def seq2seq_forward(src, trg, prep, teacher_forcing_ratio, tf_key):
    """src/trg: [seq_len, batch] int32. Returns [TRG_LEN, batch, TRG_VOCAB] float32."""
    batch = src.shape[1]

    # Encoder embedding is a static gather -> once outside the kernel, pad batch to 8, flatten
    # (SRC_LEN, B_PAD, EMB) -> (SRC_LEN*B_PAD, EMB) so the layer-0 projection is one matmul.
    emb_src = _pad_batch(prep["enc_emb"][src]).reshape(SRC_LEN * B_PAD, EMB_DIM)

    # Target tokens as one-hot rows over the padded vocab (teacher forcing / trg[0] input).
    trg_oh = _pad_batch(jax.nn.one_hot(trg, V_PAD, dtype=jnp.float32))   # (TRG_LEN, B_PAD, V_PAD)

    # Deterministic analogue of `random.random() < teacher_forcing_ratio` per step (int32 flags).
    tf_mask = (jax.random.uniform(tf_key, (TRG_LEN,)) < teacher_forcing_ratio).astype(jnp.int32)

    vmem = pl.BlockSpec(memory_space=pltpu.MemorySpace.VMEM)
    smem = pl.BlockSpec(memory_space=pltpu.MemorySpace.SMEM)

    # Single kernel invocation: everything resident in VMEM (~200 KB), no grid, single
    # lane-dense writeback; no pipelining (kernel is latency-bound on the LSTM chain).
    out_padded = pl.pallas_call(
        seq2seq_kernel,
        out_shape=jax.ShapeDtypeStruct((TRG_LEN, B_PAD, V_PAD), jnp.float32),
        in_specs=[vmem, vmem, smem] + [vmem] * 9,
        out_specs=vmem,
        scratch_shapes=[pltpu.VMEM((B_PAD, V_PAD), jnp.float32)],
    )(emb_src, trg_oh, tf_mask,
      prep["enc_wih"], prep["enc_whh"], prep["enc_b"],
      prep["dec_wemb"], prep["dec_wih1"], prep["dec_whh"], prep["dec_b"],
      prep["out_w"], prep["out_b"])

    # Slice away the batch / vocab padding.
    return out_padded[:, :batch, :TRG_VOCAB]


# ----------------------------------- main --------------------------------------
if __name__ == "__main__":
    key = jax.random.PRNGKey(0)
    key, k_src, k_trg, k_tf, k_par = jax.random.split(key, 5)

    params = init_params(k_par)
    prep = prepare_params(params)          # one-time weight packing (amortized across calls)

    src = jax.random.randint(k_src, (SRC_LEN, BATCH), 0, SRC_VOCAB, dtype=jnp.int32)
    trg = jax.random.randint(k_trg, (TRG_LEN, BATCH), 0, TRG_VOCAB, dtype=jnp.int32)

    outputs = seq2seq_forward(src, trg, prep, TEACHER_FORCING_RATIO, k_tf)
    outputs = jax.block_until_ready(outputs)

    assert outputs.shape == (TRG_LEN, BATCH, TRG_VOCAB)
    assert outputs.dtype == jnp.float32
    assert bool(jnp.all(jnp.isfinite(outputs)))
    print("KERNEL_OK")
</pallas_src>

<mosaic_0001>
module attributes {stable_mosaic.version = 11 : i64} {
  func.func @seq2seq_kernel(%arg0: memref<64x32xf32, #tpu.memory_space<vmem>>, %arg1: memref<8x8x128xf32, #tpu.memory_space<vmem>>, %arg2: memref<8xi32, #tpu.memory_space<smem>>, %arg3: memref<2x32x128xbf16, #tpu.memory_space<vmem>>, %arg4: memref<2x32x128xbf16, #tpu.memory_space<vmem>>, %arg5: memref<2x1x128xf32, #tpu.memory_space<vmem>>, %arg6: memref<128x128xbf16, #tpu.memory_space<vmem>>, %arg7: memref<32x128xbf16, #tpu.memory_space<vmem>>, %arg8: memref<2x32x128xbf16, #tpu.memory_space<vmem>>, %arg9: memref<2x1x128xf32, #tpu.memory_space<vmem>>, %arg10: memref<32x128xbf16, #tpu.memory_space<vmem>>, %arg11: memref<1x128xf32, #tpu.memory_space<vmem>>, %arg12: memref<8x8x128xf32, #tpu.memory_space<vmem>>, %arg13: memref<8x128xf32, #tpu.memory_space<vmem>>) attributes {dimension_semantics = [], scalar_prefetch = 0 : i64, scratch_operands = 1 : i64, tpu.core_type = #tpu.core_type<tc>} {
    %c1 = arith.constant 1 : index
    %c0 = arith.constant 0 : index
    %c0_0 = arith.constant 0 : index
    %0 = vector.load %arg3[%c1, %c0, %c0_0] : memref<2x32x128xbf16, #tpu.memory_space<vmem>>, vector<1x32x128xbf16>
    %1 = vector.shape_cast %0 : vector<1x32x128xbf16> to vector<32x128xbf16>
    %c0_1 = arith.constant 0 : index
    %c0_2 = arith.constant 0 : index
    %c0_3 = arith.constant 0 : index
    %2 = vector.load %arg4[%c0_1, %c0_2, %c0_3] : memref<2x32x128xbf16, #tpu.memory_space<vmem>>, vector<1x32x128xbf16>
    %3 = vector.shape_cast %2 : vector<1x32x128xbf16> to vector<32x128xbf16>
    %c1_4 = arith.constant 1 : index
    %c0_5 = arith.constant 0 : index
    %c0_6 = arith.constant 0 : index
    %4 = vector.load %arg4[%c1_4, %c0_5, %c0_6] : memref<2x32x128xbf16, #tpu.memory_space<vmem>>, vector<1x32x128xbf16>
    %5 = vector.shape_cast %4 : vector<1x32x128xbf16> to vector<32x128xbf16>
    %c1_7 = arith.constant 1 : index
    %c0_8 = arith.constant 0 : index
    %c0_9 = arith.constant 0 : index
    %6 = vector.load %arg5[%c1_7, %c0_8, %c0_9] : memref<2x1x128xf32, #tpu.memory_space<vmem>>, vector<1x1x128xf32>
    %7 = vector.shape_cast %6 : vector<1x1x128xf32> to vector<1x128xf32>
    %8 = vector.shape_cast %7 : vector<1x128xf32> to vector<1x128xf32>
    %9 = vector.broadcast %8 : vector<1x128xf32> to vector<8x128xf32>
    %c0_10 = arith.constant 0 : index
    %c0_11 = arith.constant 0 : index
    %10 = vector.load %arg6[%c0_10, %c0_11] : memref<128x128xbf16, #tpu.memory_space<vmem>>, vector<128x128xbf16>
    %c0_12 = arith.constant 0 : index
    %c0_13 = arith.constant 0 : index
    %11 = vector.load %arg7[%c0_12, %c0_13] : memref<32x128xbf16, #tpu.memory_space<vmem>>, vector<32x128xbf16>
    %c0_14 = arith.constant 0 : index
    %c0_15 = arith.constant 0 : index
    %c0_16 = arith.constant 0 : index
    %12 = vector.load %arg8[%c0_14, %c0_15, %c0_16] : memref<2x32x128xbf16, #tpu.memory_space<vmem>>, vector<1x32x128xbf16>
    %13 = vector.shape_cast %12 : vector<1x32x128xbf16> to vector<32x128xbf16>
    %c1_17 = arith.constant 1 : index
    %c0_18 = arith.constant 0 : index
    %c0_19 = arith.constant 0 : index
    %14 = vector.load %arg8[%c1_17, %c0_18, %c0_19] : memref<2x32x128xbf16, #tpu.memory_space<vmem>>, vector<1x32x128xbf16>
    %15 = vector.shape_cast %14 : vector<1x32x128xbf16> to vector<32x128xbf16>
    %c0_20 = arith.constant 0 : index
    %c0_21 = arith.constant 0 : index
    %c0_22 = arith.constant 0 : index
    %16 = vector.load %arg9[%c0_20, %c0_21, %c0_22] : memref<2x1x128xf32, #tpu.memory_space<vmem>>, vector<1x1x128xf32>
    %17 = vector.shape_cast %16 : vector<1x1x128xf32> to vector<1x128xf32>
    %18 = vector.shape_cast %17 : vector<1x128xf32> to vector<1x128xf32>
    %19 = vector.broadcast %18 : vector<1x128xf32> to vector<8x128xf32>
    %c1_23 = arith.constant 1 : index
    %c0_24 = arith.constant 0 : index
    %c0_25 = arith.constant 0 : index
    %20 = vector.load %arg9[%c1_23, %c0_24, %c0_25] : memref<2x1x128xf32, #tpu.memory_space<vmem>>, vector<1x1x128xf32>
    %21 = vector.shape_cast %20 : vector<1x1x128xf32> to vector<1x128xf32>
    %22 = vector.shape_cast %21 : vector<1x128xf32> to vector<1x128xf32>
    %23 = vector.broadcast %22 : vector<1x128xf32> to vector<8x128xf32>
    %c0_26 = arith.constant 0 : index
    %c0_27 = arith.constant 0 : index
    %24 = vector.load %arg10[%c0_26, %c0_27] : memref<32x128xbf16, #tpu.memory_space<vmem>>, vector<32x128xbf16>
    %c0_28 = arith.constant 0 : index
    %c0_29 = arith.constant 0 : index
    %25 = vector.load %arg11[%c0_28, %c0_29] : memref<1x128xf32, #tpu.memory_space<vmem>>, vector<1x128xf32>
    %26 = vector.shape_cast %25 : vector<1x128xf32> to vector<1x128xf32>
    %27 = vector.broadcast %26 : vector<1x128xf32> to vector<8x128xf32>
    %c0_30 = arith.constant 0 : index
    %c0_31 = arith.constant 0 : index
    %28 = vector.load %arg0[%c0_30, %c0_31] : memref<64x32xf32, #tpu.memory_space<vmem>>, vector<64x32xf32>
    %29 = arith.truncf %28 : vector<64x32xf32> to vector<64x32xbf16>
    %c0_32 = arith.constant 0 : index
    %c0_33 = arith.constant 0 : index
    %c0_34 = arith.constant 0 : index
    %30 = vector.load %arg3[%c0_32, %c0_33, %c0_34] : memref<2x32x128xbf16, #tpu.memory_space<vmem>>, vector<1x32x128xbf16>
    %31 = vector.shape_cast %30 : vector<1x32x128xbf16> to vector<32x128xbf16>
    %cst = arith.constant dense<0.000000e+00> : vector<64x128xf32>
    %32 = tpu.matmul %29, %31, %cst {dimension_numbers = #tpu.dot_dimension_numbers<[1], [0], [0], [1], [0, 0, 1, 1], [], []>} : vector<64x32xbf16>, vector<32x128xbf16>, vector<64x128xf32> -> vector<64x128xf32>
    %c0_35 = arith.constant 0 : index
    %c0_36 = arith.constant 0 : index
    %c0_37 = arith.constant 0 : index
    %33 = vector.load %arg5[%c0_35, %c0_36, %c0_37] : memref<2x1x128xf32, #tpu.memory_space<vmem>>, vector<1x1x128xf32>
    %34 = vector.shape_cast %33 : vector<1x1x128xf32> to vector<1x128xf32>
    %35 = vector.broadcast %34 : vector<1x128xf32> to vector<64x128xf32>
    %36 = arith.addf %32, %35 : vector<64x128xf32>
    %cst_38 = arith.constant 0.000000e+00 : f32
    %37 = vector.broadcast %cst_38 : f32 to vector<8x32xf32>
    %cst_39 = arith.constant 0.000000e+00 : f32
    %38 = vector.broadcast %cst_39 : f32 to vector<8x32xf32>
    %cst_40 = arith.constant 0.000000e+00 : f32
    %39 = vector.broadcast %cst_40 : f32 to vector<8x32xf32>
    %cst_41 = arith.constant 0.000000e+00 : f32
    %40 = vector.broadcast %cst_41 : f32 to vector<8x32xf32>
    %41 = vector.extract_strided_slice %36 {offsets = [0, 0], sizes = [8, 128], strides = [1, 1]} : vector<64x128xf32> to vector<8x128xf32>
    %42 = arith.truncf %37 : vector<8x32xf32> to vector<8x32xbf16>
    %cst_42 = arith.constant dense<0.000000e+00> : vector<8x128xf32>
    %43 = tpu.matmul %42, %3, %cst_42 {dimension_numbers = #tpu.dot_dimension_numbers<[1], [0], [0], [1], [0, 0, 1, 1], [], []>} : vector<8x32xbf16>, vector<32x128xbf16>, vector<8x128xf32> -> vector<8x128xf32>
    %44 = arith.addf %41, %43 : vector<8x128xf32>
    %45 = arith.negf %44 : vector<8x128xf32>
    %46 = math.exp %45 : vector<8x128xf32>
    %cst_43 = arith.constant 1.000000e+00 : f32
    %47 = vector.broadcast %cst_43 : f32 to vector<8x128xf32>
    %48 = arith.addf %47, %46 : vector<8x128xf32>
    %49 = arith.divf %47, %48 : vector<8x128xf32>
    %50 = vector.extract_strided_slice %49 {offsets = [0, 0], sizes = [8, 32], strides = [1, 1]} : vector<8x128xf32> to vector<8x32xf32>
    %51 = vector.extract_strided_slice %49 {offsets = [0, 32], sizes = [8, 32], strides = [1, 1]} : vector<8x128xf32> to vector<8x32xf32>
    %52 = vector.extract_strided_slice %49 {offsets = [0, 64], sizes = [8, 32], strides = [1, 1]} : vector<8x128xf32> to vector<8x32xf32>
    %53 = vector.extract_strided_slice %44 {offsets = [0, 96], sizes = [8, 32], strides = [1, 1]} : vector<8x128xf32> to vector<8x32xf32>
    %54 = math.tanh %53 : vector<8x32xf32>
    %55 = arith.mulf %51, %39 : vector<8x32xf32>
    %56 = arith.mulf %50, %54 : vector<8x32xf32>
    %57 = arith.addf %55, %56 : vector<8x32xf32>
    %58 = math.tanh %57 : vector<8x32xf32>
    %59 = arith.mulf %52, %58 : vector<8x32xf32>
    %60 = arith.truncf %59 : vector<8x32xf32> to vector<8x32xbf16>
    %cst_44 = arith.constant dense<0.000000e+00> : vector<8x128xf32>
    %61 = tpu.matmul %60, %1, %cst_44 {dimension_numbers = #tpu.dot_dimension_numbers<[1], [0], [0], [1], [0, 0, 1, 1], [], []>} : vector<8x32xbf16>, vector<32x128xbf16>, vector<8x128xf32> -> vector<8x128xf32>
    %62 = arith.truncf %38 : vector<8x32xf32> to vector<8x32xbf16>
    %cst_45 = arith.constant dense<0.000000e+00> : vector<8x128xf32>
    %63 = tpu.matmul %62, %5, %cst_45 {dimension_numbers = #tpu.dot_dimension_numbers<[1], [0], [0], [1], [0, 0, 1, 1], [], []>} : vector<8x32xbf16>, vector<32x128xbf16>, vector<8x128xf32> -> vector<8x128xf32>
    %64 = arith.addf %61, %63 : vector<8x128xf32>
    %65 = arith.addf %64, %9 : vector<8x128xf32>
    %66 = arith.negf %65 : vector<8x128xf32>
    %67 = math.exp %66 : vector<8x128xf32>
    %cst_46 = arith.constant 1.000000e+00 : f32
    %68 = vector.broadcast %cst_46 : f32 to vector<8x128xf32>
    %69 = arith.addf %68, %67 : vector<8x128xf32>
    %70 = arith.divf %68, %69 : vector<8x128xf32>
    %71 = vector.extract_strided_slice %70 {offsets = [0, 0], sizes = [8, 32], strides = [1, 1]} : vector<8x128xf32> to vector<8x32xf32>
    %72 = vector.extract_strided_slice %70 {offsets = [0, 32], sizes = [8, 32], strides = [1, 1]} : vector<8x128xf32> to vector<8x32xf32>
    %73 = vector.extract_strided_slice %70 {offsets = [0, 64], sizes = [8, 32], strides = [1, 1]} : vector<8x128xf32> to vector<8x32xf32>
    %74 = vector.extract_strided_slice %65 {offsets = [0, 96], sizes = [8, 32], strides = [1, 1]} : vector<8x128xf32> to vector<8x32xf32>
    %75 = math.tanh %74 : vector<8x32xf32>
    %76 = arith.mulf %72, %40 : vector<8x32xf32>
    %77 = arith.mulf %71, %75 : vector<8x32xf32>
    %78 = arith.addf %76, %77 : vector<8x32xf32>
    %79 = math.tanh %78 : vector<8x32xf32>
    %80 = arith.mulf %73, %79 : vector<8x32xf32>
    %81 = vector.extract_strided_slice %36 {offsets = [8, 0], sizes = [8, 128], strides = [1, 1]} : vector<64x128xf32> to vector<8x128xf32>
    %82 = arith.truncf %59 : vector<8x32xf32> to vector<8x32xbf16>
    %cst_47 = arith.constant dense<0.000000e+00> : vector<8x128xf32>
    %83 = tpu.matmul %82, %3, %cst_47 {dimension_numbers = #tpu.dot_dimension_numbers<[1], [0], [0], [1], [0, 0, 1, 1], [], []>} : vector<8x32xbf16>, vector<32x128xbf16>, vector<8x128xf32> -> vector<8x128xf32>
    %84 = arith.addf %81, %83 : vector<8x128xf32>
    %85 = arith.negf %84 : vector<8x128xf32>
    %86 = math.exp %85 : vector<8x128xf32>
    %cst_48 = arith.constant 1.000000e+00 : f32
    %87 = vector.broadcast %cst_48 : f32 to vector<8x128xf32>
    %88 = arith.addf %87, %86 : vector<8x128xf32>
    %89 = arith.divf %87, %88 : vector<8x128xf32>
    %90 = vector.extract_strided_slice %89 {offsets = [0, 0], sizes = [8, 32], strides = [1, 1]} : vector<8x128xf32> to vector<8x32xf32>
    %91 = vector.extract_strided_slice %89 {offsets = [0, 32], sizes = [8, 32], strides = [1, 1]} : vector<8x128xf32> to vector<8x32xf32>
    %92 = vector.extract_strided_slice %89 {offsets = [0, 64], sizes = [8, 32], strides = [1, 1]} : vector<8x128xf32> to vector<8x32xf32>
    %93 = vector.extract_strided_slice %84 {offsets = [0, 96], sizes = [8, 32], strides = [1, 1]} : vector<8x128xf32> to vector<8x32xf32>
    %94 = math.tanh %93 : vector<8x32xf32>
    %95 = arith.mulf %91, %57 : vector<8x32xf32>
    %96 = arith.mulf %90, %94 : vector<8x32xf32>
    %97 = arith.addf %95, %96 : vector<8x32xf32>
    %98 = math.tanh %97 : vector<8x32xf32>
    %99 = arith.mulf %92, %98 : vector<8x32xf32>
    %100 = arith.truncf %99 : vector<8x32xf32> to vector<8x32xbf16>
    %cst_49 = arith.constant dense<0.000000e+00> : vector<8x128xf32>
    %101 = tpu.matmul %100, %1, %cst_49 {dimension_numbers = #tpu.dot_dimension_numbers<[1], [0], [0], [1], [0, 0, 1, 1], [], []>} : vector<8x32xbf16>, vector<32x128xbf16>, vector<8x128xf32> -> vector<8x128xf32>
    %102 = arith.truncf %80 : vector<8x32xf32> to vector<8x32xbf16>
    %cst_50 = arith.constant dense<0.000000e+00> : vector<8x128xf32>
    %103 = tpu.matmul %102, %5, %cst_50 {dimension_numbers = #tpu.dot_dimension_numbers<[1], [0], [0], [1], [0, 0, 1, 1], [], []>} : vector<8x32xbf16>, vector<32x128xbf16>, vector<8x128xf32> -> vector<8x128xf32>
    %104 = arith.addf %101, %103 : vector<8x128xf32>
    %105 = arith.addf %104, %9 : vector<8x128xf32>
    %106 = arith.negf %105 : vector<8x128xf32>
    %107 = math.exp %106 : vector<8x128xf32>
    %cst_51 = arith.constant 1.000000e+00 : f32
    %108 = vector.broadcast %cst_51 : f32 to vector<8x128xf32>
    %109 = arith.addf %108, %107 : vector<8x128xf32>
    %110 = arith.divf %108, %109 : vector<8x128xf32>
    %111 = vector.extract_strided_slice %110 {offsets = [0, 0], sizes = [8, 32], strides = [1, 1]} : vector<8x128xf32> to vector<8x32xf32>
    %112 = vector.extract_strided_slice %110 {offsets = [0, 32], sizes = [8, 32], strides = [1, 1]} : vector<8x128xf32> to vector<8x32xf32>
    %113 = vector.extract_strided_slice %110 {offsets = [0, 64], sizes = [8, 32], strides = [1, 1]} : vector<8x128xf32> to vector<8x32xf32>
    %114 = vector.extract_strided_slice %105 {offsets = [0, 96], sizes = [8, 32], strides = [1, 1]} : vector<8x128xf32> to vector<8x32xf32>
    %115 = math.tanh %114 : vector<8x32xf32>
    %116 = arith.mulf %112, %78 : vector<8x32xf32>
    %117 = arith.mulf %111, %115 : vector<8x32xf32>
    %118 = arith.addf %116, %117 : vector<8x32xf32>
    %119 = math.tanh %118 : vector<8x32xf32>
    %120 = arith.mulf %113, %119 : vector<8x32xf32>
    %121 = vector.extract_strided_slice %36 {offsets = [16, 0], sizes = [8, 128], strides = [1, 1]} : vector<64x128xf32> to vector<8x128xf32>
    %122 = arith.truncf %99 : vector<8x32xf32> to vector<8x32xbf16>
    %cst_52 = arith.constant dense<0.000000e+00> : vector<8x128xf32>
    %123 = tpu.matmul %122, %3, %cst_52 {dimension_numbers = #tpu.dot_dimension_numbers<[1], [0], [0], [1], [0, 0, 1, 1], [], []>} : vector<8x32xbf16>, vector<32x128xbf16>, vector<8x128xf32> -> vector<8x128xf32>
    %124 = arith.addf %121, %123 : vector<8x128xf32>
    %125 = arith.negf %124 : vector<8x128xf32>
    %126 = math.exp %125 : vector<8x128xf32>
    %cst_53 = arith.constant 1.000000e+00 : f32
    %127 = vector.broadcast %cst_53 : f32 to vector<8x128xf32>
    %128 = arith.addf %127, %126 : vector<8x128xf32>
    %129 = arith.divf %127, %128 : vector<8x128xf32>
    %130 = vector.extract_strided_slice %129 {offsets = [0, 0], sizes = [8, 32], strides = [1, 1]} : vector<8x128xf32> to vector<8x32xf32>
    %131 = vector.extract_strided_slice %129 {offsets = [0, 32], sizes = [8, 32], strides = [1, 1]} : vector<8x128xf32> to vector<8x32xf32>
    %132 = vector.extract_strided_slice %129 {offsets = [0, 64], sizes = [8, 32], strides = [1, 1]} : vector<8x128xf32> to vector<8x32xf32>
    %133 = vector.extract_strided_slice %124 {offsets = [0, 96], sizes = [8, 32], strides = [1, 1]} : vector<8x128xf32> to vector<8x32xf32>
    %134 = math.tanh %133 : vector<8x32xf32>
    %135 = arith.mulf %131, %97 : vector<8x32xf32>
    %136 = arith.mulf %130, %134 : vector<8x32xf32>
    %137 = arith.addf %135, %136 : vector<8x32xf32>
    %138 = math.tanh %137 : vector<8x32xf32>
    %139 = arith.mulf %132, %138 : vector<8x32xf32>
    %140 = arith.truncf %139 : vector<8x32xf32> to vector<8x32xbf16>
    %cst_54 = arith.constant dense<0.000000e+00> : vector<8x128xf32>
    %141 = tpu.matmul %140, %1, %cst_54 {dimension_numbers = #tpu.dot_dimension_numbers<[1], [0], [0], [1], [0, 0, 1, 1], [], []>} : vector<8x32xbf16>, vector<32x128xbf16>, vector<8x128xf32> -> vector<8x128xf32>
    %142 = arith.truncf %120 : vector<8x32xf32> to vector<8x32xbf16>
    %cst_55 = arith.constant dense<0.000000e+00> : vector<8x128xf32>
    %143 = tpu.matmul %142, %5, %cst_55 {dimension_numbers = #tpu.dot_dimension_numbers<[1], [0], [0], [1], [0, 0, 1, 1], [], []>} : vector<8x32xbf16>, vector<32x128xbf16>, vector<8x128xf32> -> vector<8x128xf32>
    %144 = arith.addf %141, %143 : vector<8x128xf32>
    %145 = arith.addf %144, %9 : vector<8x128xf32>
    %146 = arith.negf %145 : vector<8x128xf32>
    %147 = math.exp %146 : vector<8x128xf32>
    %cst_56 = arith.constant 1.000000e+00 : f32
    %148 = vector.broadcast %cst_56 : f32 to vector<8x128xf32>
    %149 = arith.addf %148, %147 : vector<8x128xf32>
    %150 = arith.divf %148, %149 : vector<8x128xf32>
    %151 = vector.extract_strided_slice %150 {offsets = [0, 0], sizes = [8, 32], strides = [1, 1]} : vector<8x128xf32> to vector<8x32xf32>
    %152 = vector.extract_strided_slice %150 {offsets = [0, 32], sizes = [8, 32], strides = [1, 1]} : vector<8x128xf32> to vector<8x32xf32>
    %153 = vector.extract_strided_slice %150 {offsets = [0, 64], sizes = [8, 32], strides = [1, 1]} : vector<8x128xf32> to vector<8x32xf32>
    %154 = vector.extract_strided_slice %145 {offsets = [0, 96], sizes = [8, 32], strides = [1, 1]} : vector<8x128xf32> to vector<8x32xf32>
    %155 = math.tanh %154 : vector<8x32xf32>
    %156 = arith.mulf %152, %118 : vector<8x32xf32>
    %157 = arith.mulf %151, %155 : vector<8x32xf32>
    %158 = arith.addf %156, %157 : vector<8x32xf32>
    %159 = math.tanh %158 : vector<8x32xf32>
    %160 = arith.mulf %153, %159 : vector<8x32xf32>
    %161 = vector.extract_strided_slice %36 {offsets = [24, 0], sizes = [8, 128], strides = [1, 1]} : vector<64x128xf32> to vector<8x128xf32>
    %162 = arith.truncf %139 : vector<8x32xf32> to vector<8x32xbf16>
    %cst_57 = arith.constant dense<0.000000e+00> : vector<8x128xf32>
    %163 = tpu.matmul %162, %3, %cst_57 {dimension_numbers = #tpu.dot_dimension_numbers<[1], [0], [0], [1], [0, 0, 1, 1], [], []>} : vector<8x32xbf16>, vector<32x128xbf16>, vector<8x128xf32> -> vector<8x128xf32>
    %164 = arith.addf %161, %163 : vector<8x128xf32>
    %165 = arith.negf %164 : vector<8x128xf32>
    %166 = math.exp %165 : vector<8x128xf32>
    %cst_58 = arith.constant 1.000000e+00 : f32
    %167 = vector.broadcast %cst_58 : f32 to vector<8x128xf32>
    %168 = arith.addf %167, %166 : vector<8x128xf32>
    %169 = arith.divf %167, %168 : vector<8x128xf32>
    %170 = vector.extract_strided_slice %169 {offsets = [0, 0], sizes = [8, 32], strides = [1, 1]} : vector<8x128xf32> to vector<8x32xf32>
    %171 = vector.extract_strided_slice %169 {offsets = [0, 32], sizes = [8, 32], strides = [1, 1]} : vector<8x128xf32> to vector<8x32xf32>
    %172 = vector.extract_strided_slice %169 {offsets = [0, 64], sizes = [8, 32], strides = [1, 1]} : vector<8x128xf32> to vector<8x32xf32>
    %173 = vector.extract_strided_slice %164 {offsets = [0, 96], sizes = [8, 32], strides = [1, 1]} : vector<8x128xf32> to vector<8x32xf32>
    %174 = math.tanh %173 : vector<8x32xf32>
    %175 = arith.mulf %171, %137 : vector<8x32xf32>
    %176 = arith.mulf %170, %174 : vector<8x32xf32>
    %177 = arith.addf %175, %176 : vector<8x32xf32>
    %178 = math.tanh %177 : vector<8x32xf32>
    %179 = arith.mulf %172, %178 : vector<8x32xf32>
    %180 = arith.truncf %179 : vector<8x32xf32> to vector<8x32xbf16>
    %cst_59 = arith.constant dense<0.000000e+00> : vector<8x128xf32>
    %181 = tpu.matmul %180, %1, %cst_59 {dimension_numbers = #tpu.dot_dimension_numbers<[1], [0], [0], [1], [0, 0, 1, 1], [], []>} : vector<8x32xbf16>, vector<32x128xbf16>, vector<8x128xf32> -> vector<8x128xf32>
    %182 = arith.truncf %160 : vector<8x32xf32> to vector<8x32xbf16>
    %cst_60 = arith.constant dense<0.000000e+00> : vector<8x128xf32>
    %183 = tpu.matmul %182, %5, %cst_60 {dimension_numbers = #tpu.dot_dimension_numbers<[1], [0], [0], [1], [0, 0, 1, 1], [], []>} : vector<8x32xbf16>, vector<32x128xbf16>, vector<8x128xf32> -> vector<8x128xf32>
    %184 = arith.addf %181, %183 : vector<8x128xf32>
    %185 = arith.addf %184, %9 : vector<8x128xf32>
    %186 = arith.negf %185 : vector<8x128xf32>
    %187 = math.exp %186 : vector<8x128xf32>
    %cst_61 = arith.constant 1.000000e+00 : f32
    %188 = vector.broadcast %cst_61 : f32 to vector<8x128xf32>
    %189 = arith.addf %188, %187 : vector<8x128xf32>
    %190 = arith.divf %188, %189 : vector<8x128xf32>
    %191 = vector.extract_strided_slice %190 {offsets = [0, 0], sizes = [8, 32], strides = [1, 1]} : vector<8x128xf32> to vector<8x32xf32>
    %192 = vector.extract_strided_slice %190 {offsets = [0, 32], sizes = [8, 32], strides = [1, 1]} : vector<8x128xf32> to vector<8x32xf32>
    %193 = vector.extract_strided_slice %190 {offsets = [0, 64], sizes = [8, 32], strides = [1, 1]} : vector<8x128xf32> to vector<8x32xf32>
    %194 = vector.extract_strided_slice %185 {offsets = [0, 96], sizes = [8, 32], strides = [1, 1]} : vector<8x128xf32> to vector<8x32xf32>
    %195 = math.tanh %194 : vector<8x32xf32>
    %196 = arith.mulf %192, %158 : vector<8x32xf32>
    %197 = arith.mulf %191, %195 : vector<8x32xf32>
    %198 = arith.addf %196, %197 : vector<8x32xf32>
    %199 = math.tanh %198 : vector<8x32xf32>
    %200 = arith.mulf %193, %199 : vector<8x32xf32>
    %201 = vector.extract_strided_slice %36 {offsets = [32, 0], sizes = [8, 128], strides = [1, 1]} : vector<64x128xf32> to vector<8x128xf32>
    %202 = arith.truncf %179 : vector<8x32xf32> to vector<8x32xbf16>
    %cst_62 = arith.constant dense<0.000000e+00> : vector<8x128xf32>
    %203 = tpu.matmul %202, %3, %cst_62 {dimension_numbers = #tpu.dot_dimension_numbers<[1], [0], [0], [1], [0, 0, 1, 1], [], []>} : vector<8x32xbf16>, vector<32x128xbf16>, vector<8x128xf32> -> vector<8x128xf32>
    %204 = arith.addf %201, %203 : vector<8x128xf32>
    %205 = arith.negf %204 : vector<8x128xf32>
    %206 = math.exp %205 : vector<8x128xf32>
    %cst_63 = arith.constant 1.000000e+00 : f32
    %207 = vector.broadcast %cst_63 : f32 to vector<8x128xf32>
    %208 = arith.addf %207, %206 : vector<8x128xf32>
    %209 = arith.divf %207, %208 : vector<8x128xf32>
    %210 = vector.extract_strided_slice %209 {offsets = [0, 0], sizes = [8, 32], strides = [1, 1]} : vector<8x128xf32> to vector<8x32xf32>
    %211 = vector.extract_strided_slice %209 {offsets = [0, 32], sizes = [8, 32], strides = [1, 1]} : vector<8x128xf32> to vector<8x32xf32>
    %212 = vector.extract_strided_slice %209 {offsets = [0, 64], sizes = [8, 32], strides = [1, 1]} : vector<8x128xf32> to vector<8x32xf32>
    %213 = vector.extract_strided_slice %204 {offsets = [0, 96], sizes = [8, 32], strides = [1, 1]} : vector<8x128xf32> to vector<8x32xf32>
    %214 = math.tanh %213 : vector<8x32xf32>
    %215 = arith.mulf %211, %177 : vector<8x32xf32>
    %216 = arith.mulf %210, %214 : vector<8x32xf32>
    %217 = arith.addf %215, %216 : vector<8x32xf32>
    %218 = math.tanh %217 : vector<8x32xf32>
    %219 = arith.mulf %212, %218 : vector<8x32xf32>
    %220 = arith.truncf %219 : vector<8x32xf32> to vector<8x32xbf16>
    %cst_64 = arith.constant dense<0.000000e+00> : vector<8x128xf32>
    %221 = tpu.matmul %220, %1, %cst_64 {dimension_numbers = #tpu.dot_dimension_numbers<[1], [0], [0], [1], [0, 0, 1, 1], [], []>} : vector<8x32xbf16>, vector<32x128xbf16>, vector<8x128xf32> -> vector<8x128xf32>
    %222 = arith.truncf %200 : vector<8x32xf32> to vector<8x32xbf16>
    %cst_65 = arith.constant dense<0.000000e+00> : vector<8x128xf32>
    %223 = tpu.matmul %222, %5, %cst_65 {dimension_numbers = #tpu.dot_dimension_numbers<[1], [0], [0], [1], [0, 0, 1, 1], [], []>} : vector<8x32xbf16>, vector<32x128xbf16>, vector<8x128xf32> -> vector<8x128xf32>
    %224 = arith.addf %221, %223 : vector<8x128xf32>
    %225 = arith.addf %224, %9 : vector<8x128xf32>
    %226 = arith.negf %225 : vector<8x128xf32>
    %227 = math.exp %226 : vector<8x128xf32>
    %cst_66 = arith.constant 1.000000e+00 : f32
    %228 = vector.broadcast %cst_66 : f32 to vector<8x128xf32>
    %229 = arith.addf %228, %227 : vector<8x128xf32>
    %230 = arith.divf %228, %229 : vector<8x128xf32>
    %231 = vector.extract_strided_slice %230 {offsets = [0, 0], sizes = [8, 32], strides = [1, 1]} : vector<8x128xf32> to vector<8x32xf32>
    %232 = vector.extract_strided_slice %230 {offsets = [0, 32], sizes = [8, 32], strides = [1, 1]} : vector<8x128xf32> to vector<8x32xf32>
    %233 = vector.extract_strided_slice %230 {offsets = [0, 64], sizes = [8, 32], strides = [1, 1]} : vector<8x128xf32> to vector<8x32xf32>
    %234 = vector.extract_strided_slice %225 {offsets = [0, 96], sizes = [8, 32], strides = [1, 1]} : vector<8x128xf32> to vector<8x32xf32>
    %235 = math.tanh %234 : vector<8x32xf32>
    %236 = arith.mulf %232, %198 : vector<8x32xf32>
    %237 = arith.mulf %231, %235 : vector<8x32xf32>
    %238 = arith.addf %236, %237 : vector<8x32xf32>
    %239 = math.tanh %238 : vector<8x32xf32>
    %240 = arith.mulf %233, %239 : vector<8x32xf32>
    %241 = vector.extract_strided_slice %36 {offsets = [40, 0], sizes = [8, 128], strides = [1, 1]} : vector<64x128xf32> to vector<8x128xf32>
    %242 = arith.truncf %219 : vector<8x32xf32> to vector<8x32xbf16>
    %cst_67 = arith.constant dense<0.000000e+00> : vector<8x128xf32>
    %243 = tpu.matmul %242, %3, %cst_67 {dimension_numbers = #tpu.dot_dimension_numbers<[1], [0], [0], [1], [0, 0, 1, 1], [], []>} : vector<8x32xbf16>, vector<32x128xbf16>, vector<8x128xf32> -> vector<8x128xf32>
    %244 = arith.addf %241, %243 : vector<8x128xf32>
    %245 = arith.negf %244 : vector<8x128xf32>
    %246 = math.exp %245 : vector<8x128xf32>
    %cst_68 = arith.constant 1.000000e+00 : f32
    %247 = vector.broadcast %cst_68 : f32 to vector<8x128xf32>
    %248 = arith.addf %247, %246 : vector<8x128xf32>
    %249 = arith.divf %247, %248 : vector<8x128xf32>
    %250 = vector.extract_strided_slice %249 {offsets = [0, 0], sizes = [8, 32], strides = [1, 1]} : vector<8x128xf32> to vector<8x32xf32>
    %251 = vector.extract_strided_slice %249 {offsets = [0, 32], sizes = [8, 32], strides = [1, 1]} : vector<8x128xf32> to vector<8x32xf32>
    %252 = vector.extract_strided_slice %249 {offsets = [0, 64], sizes = [8, 32], strides = [1, 1]} : vector<8x128xf32> to vector<8x32xf32>
    %253 = vector.extract_strided_slice %244 {offsets = [0, 96], sizes = [8, 32], strides = [1, 1]} : vector<8x128xf32> to vector<8x32xf32>
    %254 = math.tanh %253 : vector<8x32xf32>
    %255 = arith.mulf %251, %217 : vector<8x32xf32>
    %256 = arith.mulf %250, %254 : vector<8x32xf32>
    %257 = arith.addf %255, %256 : vector<8x32xf32>
    %258 = math.tanh %257 : vector<8x32xf32>
    %259 = arith.mulf %252, %258 : vector<8x32xf32>
    %260 = arith.truncf %259 : vector<8x32xf32> to vector<8x32xbf16>
    %cst_69 = arith.constant dense<0.000000e+00> : vector<8x128xf32>
    %261 = tpu.matmul %260, %1, %cst_69 {dimension_numbers = #tpu.dot_dimension_numbers<[1], [0], [0], [1], [0, 0, 1, 1], [], []>} : vector<8x32xbf16>, vector<32x128xbf16>, vector<8x128xf32> -> vector<8x128xf32>
    %262 = arith.truncf %240 : vector<8x32xf32> to vector<8x32xbf16>
    %cst_70 = arith.constant dense<0.000000e+00> : vector<8x128xf32>
    %263 = tpu.matmul %262, %5, %cst_70 {dimension_numbers = #tpu.dot_dimension_numbers<[1], [0], [0], [1], [0, 0, 1, 1], [], []>} : vector<8x32xbf16>, vector<32x128xbf16>, vector<8x128xf32> -> vector<8x128xf32>
    %264 = arith.addf %261, %263 : vector<8x128xf32>
    %265 = arith.addf %264, %9 : vector<8x128xf32>
    %266 = arith.negf %265 : vector<8x128xf32>
    %267 = math.exp %266 : vector<8x128xf32>
    %cst_71 = arith.constant 1.000000e+00 : f32
    %268 = vector.broadcast %cst_71 : f32 to vector<8x128xf32>
    %269 = arith.addf %268, %267 : vector<8x128xf32>
    %270 = arith.divf %268, %269 : vector<8x128xf32>
    %271 = vector.extract_strided_slice %270 {offsets = [0, 0], sizes = [8, 32], strides = [1, 1]} : vector<8x128xf32> to vector<8x32xf32>
    %272 = vector.extract_strided_slice %270 {offsets = [0, 32], sizes = [8, 32], strides = [1, 1]} : vector<8x128xf32> to vector<8x32xf32>
    %273 = vector.extract_strided_slice %270 {offsets = [0, 64], sizes = [8, 32], strides = [1, 1]} : vector<8x128xf32> to vector<8x32xf32>
    %274 = vector.extract_strided_slice %265 {offsets = [0, 96], sizes = [8, 32], strides = [1, 1]} : vector<8x128xf32> to vector<8x32xf32>
    %275 = math.tanh %274 : vector<8x32xf32>
    %276 = arith.mulf %272, %238 : vector<8x32xf32>
    %277 = arith.mulf %271, %275 : vector<8x32xf32>
    %278 = arith.addf %276, %277 : vector<8x32xf32>
    %279 = math.tanh %278 : vector<8x32xf32>
    %280 = arith.mulf %273, %279 : vector<8x32xf32>
    %281 = vector.extract_strided_slice %36 {offsets = [48, 0], sizes = [8, 128], strides = [1, 1]} : vector<64x128xf32> to vector<8x128xf32>
    %282 = arith.truncf %259 : vector<8x32xf32> to vector<8x32xbf16>
    %cst_72 = arith.constant dense<0.000000e+00> : vector<8x128xf32>
    %283 = tpu.matmul %282, %3, %cst_72 {dimension_numbers = #tpu.dot_dimension_numbers<[1], [0], [0], [1], [0, 0, 1, 1], [], []>} : vector<8x32xbf16>, vector<32x128xbf16>, vector<8x128xf32> -> vector<8x128xf32>
    %284 = arith.addf %281, %283 : vector<8x128xf32>
    %285 = arith.negf %284 : vector<8x128xf32>
    %286 = math.exp %285 : vector<8x128xf32>
    %cst_73 = arith.constant 1.000000e+00 : f32
    %287 = vector.broadcast %cst_73 : f32 to vector<8x128xf32>
    %288 = arith.addf %287, %286 : vector<8x128xf32>
    %289 = arith.divf %287, %288 : vector<8x128xf32>
    %290 = vector.extract_strided_slice %289 {offsets = [0, 0], sizes = [8, 32], strides = [1, 1]} : vector<8x128xf32> to vector<8x32xf32>
    %291 = vector.extract_strided_slice %289 {offsets = [0, 32], sizes = [8, 32], strides = [1, 1]} : vector<8x128xf32> to vector<8x32xf32>
    %292 = vector.extract_strided_slice %289 {offsets = [0, 64], sizes = [8, 32], strides = [1, 1]} : vector<8x128xf32> to vector<8x32xf32>
    %293 = vector.extract_strided_slice %284 {offsets = [0, 96], sizes = [8, 32], strides = [1, 1]} : vector<8x128xf32> to vector<8x32xf32>
    %294 = math.tanh %293 : vector<8x32xf32>
    %295 = arith.mulf %291, %257 : vector<8x32xf32>
    %296 = arith.mulf %290, %294 : vector<8x32xf32>
    %297 = arith.addf %295, %296 : vector<8x32xf32>
    %298 = math.tanh %297 : vector<8x32xf32>
    %299 = arith.mulf %292, %298 : vector<8x32xf32>
    %300 = arith.truncf %299 : vector<8x32xf32> to vector<8x32xbf16>
    %cst_74 = arith.constant dense<0.000000e+00> : vector<8x128xf32>
    %301 = tpu.matmul %300, %1, %cst_74 {dimension_numbers = #tpu.dot_dimension_numbers<[1], [0], [0], [1], [0, 0, 1, 1], [], []>} : vector<8x32xbf16>, vector<32x128xbf16>, vector<8x128xf32> -> vector<8x128xf32>
    %302 = arith.truncf %280 : vector<8x32xf32> to vector<8x32xbf16>
    %cst_75 = arith.constant dense<0.000000e+00> : vector<8x128xf32>
    %303 = tpu.matmul %302, %5, %cst_75 {dimension_numbers = #tpu.dot_dimension_numbers<[1], [0], [0], [1], [0, 0, 1, 1], [], []>} : vector<8x32xbf16>, vector<32x128xbf16>, vector<8x128xf32> -> vector<8x128xf32>
    %304 = arith.addf %301, %303 : vector<8x128xf32>
    %305 = arith.addf %304, %9 : vector<8x128xf32>
    %306 = arith.negf %305 : vector<8x128xf32>
    %307 = math.exp %306 : vector<8x128xf32>
    %cst_76 = arith.constant 1.000000e+00 : f32
    %308 = vector.broadcast %cst_76 : f32 to vector<8x128xf32>
    %309 = arith.addf %308, %307 : vector<8x128xf32>
    %310 = arith.divf %308, %309 : vector<8x128xf32>
    %311 = vector.extract_strided_slice %310 {offsets = [0, 0], sizes = [8, 32], strides = [1, 1]} : vector<8x128xf32> to vector<8x32xf32>
    %312 = vector.extract_strided_slice %310 {offsets = [0, 32], sizes = [8, 32], strides = [1, 1]} : vector<8x128xf32> to vector<8x32xf32>
    %313 = vector.extract_strided_slice %310 {offsets = [0, 64], sizes = [8, 32], strides = [1, 1]} : vector<8x128xf32> to vector<8x32xf32>
    %314 = vector.extract_strided_slice %305 {offsets = [0, 96], sizes = [8, 32], strides = [1, 1]} : vector<8x128xf32> to vector<8x32xf32>
    %315 = math.tanh %314 : vector<8x32xf32>
    %316 = arith.mulf %312, %278 : vector<8x32xf32>
    %317 = arith.mulf %311, %315 : vector<8x32xf32>
    %318 = arith.addf %316, %317 : vector<8x32xf32>
    %319 = math.tanh %318 : vector<8x32xf32>
    %320 = arith.mulf %313, %319 : vector<8x32xf32>
    %321 = vector.extract_strided_slice %36 {offsets = [56, 0], sizes = [8, 128], strides = [1, 1]} : vector<64x128xf32> to vector<8x128xf32>
    %322 = arith.truncf %299 : vector<8x32xf32> to vector<8x32xbf16>
    %cst_77 = arith.constant dense<0.000000e+00> : vector<8x128xf32>
    %323 = tpu.matmul %322, %3, %cst_77 {dimension_numbers = #tpu.dot_dimension_numbers<[1], [0], [0], [1], [0, 0, 1, 1], [], []>} : vector<8x32xbf16>, vector<32x128xbf16>, vector<8x128xf32> -> vector<8x128xf32>
    %324 = arith.addf %321, %323 : vector<8x128xf32>
    %325 = arith.negf %324 : vector<8x128xf32>
    %326 = math.exp %325 : vector<8x128xf32>
    %cst_78 = arith.constant 1.000000e+00 : f32
    %327 = vector.broadcast %cst_78 : f32 to vector<8x128xf32>
    %328 = arith.addf %327, %326 : vector<8x128xf32>
    %329 = arith.divf %327, %328 : vector<8x128xf32>
    %330 = vector.extract_strided_slice %329 {offsets = [0, 0], sizes = [8, 32], strides = [1, 1]} : vector<8x128xf32> to vector<8x32xf32>
    %331 = vector.extract_strided_slice %329 {offsets = [0, 32], sizes = [8, 32], strides = [1, 1]} : vector<8x128xf32> to vector<8x32xf32>
    %332 = vector.extract_strided_slice %329 {offsets = [0, 64], sizes = [8, 32], strides = [1, 1]} : vector<8x128xf32> to vector<8x32xf32>
    %333 = vector.extract_strided_slice %324 {offsets = [0, 96], sizes = [8, 32], strides = [1, 1]} : vector<8x128xf32> to vector<8x32xf32>
    %334 = math.tanh %333 : vector<8x32xf32>
    %335 = arith.mulf %331, %297 : vector<8x32xf32>
    %336 = arith.mulf %330, %334 : vector<8x32xf32>
    %337 = arith.addf %335, %336 : vector<8x32xf32>
    %338 = math.tanh %337 : vector<8x32xf32>
    %339 = arith.mulf %332, %338 : vector<8x32xf32>
    %340 = arith.truncf %339 : vector<8x32xf32> to vector<8x32xbf16>
    %cst_79 = arith.constant dense<0.000000e+00> : vector<8x128xf32>
    %341 = tpu.matmul %340, %1, %cst_79 {dimension_numbers = #tpu.dot_dimension_numbers<[1], [0], [0], [1], [0, 0, 1, 1], [], []>} : vector<8x32xbf16>, vector<32x128xbf16>, vector<8x128xf32> -> vector<8x128xf32>
    %342 = arith.truncf %320 : vector<8x32xf32> to vector<8x32xbf16>
    %cst_80 = arith.constant dense<0.000000e+00> : vector<8x128xf32>
    %343 = tpu.matmul %342, %5, %cst_80 {dimension_numbers = #tpu.dot_dimension_numbers<[1], [0], [0], [1], [0, 0, 1, 1], [], []>} : vector<8x32xbf16>, vector<32x128xbf16>, vector<8x128xf32> -> vector<8x128xf32>
    %344 = arith.addf %341, %343 : vector<8x128xf32>
    %345 = arith.addf %344, %9 : vector<8x128xf32>
    %346 = arith.negf %345 : vector<8x128xf32>
    %347 = math.exp %346 : vector<8x128xf32>
    %cst_81 = arith.constant 1.000000e+00 : f32
    %348 = vector.broadcast %cst_81 : f32 to vector<8x128xf32>
    %349 = arith.addf %348, %347 : vector<8x128xf32>
    %350 = arith.divf %348, %349 : vector<8x128xf32>
    %351 = vector.extract_strided_slice %350 {offsets = [0, 0], sizes = [8, 32], strides = [1, 1]} : vector<8x128xf32> to vector<8x32xf32>
    %352 = vector.extract_strided_slice %350 {offsets = [0, 32], sizes = [8, 32], strides = [1, 1]} : vector<8x128xf32> to vector<8x32xf32>
    %353 = vector.extract_strided_slice %350 {offsets = [0, 64], sizes = [8, 32], strides = [1, 1]} : vector<8x128xf32> to vector<8x32xf32>
    %354 = vector.extract_strided_slice %345 {offsets = [0, 96], sizes = [8, 32], strides = [1, 1]} : vector<8x128xf32> to vector<8x32xf32>
    %355 = math.tanh %354 : vector<8x32xf32>
    %356 = arith.mulf %352, %318 : vector<8x32xf32>
    %357 = arith.mulf %351, %355 : vector<8x32xf32>
    %358 = arith.addf %356, %357 : vector<8x32xf32>
    %359 = math.tanh %358 : vector<8x32xf32>
    %360 = arith.mulf %353, %359 : vector<8x32xf32>
    %cst_82 = arith.constant 0.000000e+00 : f32
    %361 = vector.broadcast %cst_82 : f32 to vector<8x128xf32>
    %c0_83 = arith.constant 0 : index
    %c0_84 = arith.constant 0 : index
    %c0_85 = arith.constant 0 : index
    %362 = vector.load %arg12[%c0_83, %c0_84, %c0_85] : memref<8x8x128xf32, #tpu.memory_space<vmem>>, vector<1x8x128xf32>
    %363 = vector.shape_cast %362 : vector<1x8x128xf32> to vector<8x128xf32>
    %364 = vector.shape_cast %361 : vector<8x128xf32> to vector<1x8x128xf32>
    tpu.vector_store %arg12[%c0_83, %c0_84, %c0_85], %364 {strides = array<i32>} : memref<8x8x128xf32, #tpu.memory_space<vmem>>, vector<1x8x128xf32>,
    %c0_86 = arith.constant 0 : index
    %c0_87 = arith.constant 0 : index
    %c0_88 = arith.constant 0 : index
    %365 = vector.load %arg1[%c0_86, %c0_87, %c0_88] : memref<8x8x128xf32, #tpu.memory_space<vmem>>, vector<1x8x128xf32>
    %366 = vector.shape_cast %365 : vector<1x8x128xf32> to vector<8x128xf32>
    %c0_89 = arith.constant 0 : index
    %c0_90 = arith.constant 0 : index
    %367 = vector.load %arg13[%c0_89, %c0_90] : memref<8x128xf32, #tpu.memory_space<vmem>>, vector<8x128xf32>
    tpu.vector_store %arg13[%c0_89, %c0_90], %366 {strides = array<i32>} : memref<8x128xf32, #tpu.memory_space<vmem>>, vector<8x128xf32>,
    %368 = tpu.iota {dimensions = array<i32: 1>} : vector<8x128xi32>
    %369 = arith.sitofp %368 : vector<8x128xi32> to vector<8x128xf32>
    %c16_i32 = arith.constant 16 : i32
    %370 = vector.broadcast %c16_i32 : i32 to vector<8x128xi32>
    %371 = arith.cmpi slt, %368, %370 : vector<8x128xi32>
    %cst_91 = arith.constant -1.000000e+30 : f32
    %372 = vector.broadcast %cst_91 : f32 to vector<8x128xf32>
    %cst_92 = arith.constant 1.280000e+02 : f32
    %373 = vector.broadcast %cst_92 : f32 to vector<8x128xf32>
    %c0_93 = arith.constant 0 : index
    %c0_94 = arith.constant 0 : index
    %374 = vector.load %arg13[%c0_93, %c0_94] : memref<8x128xf32, #tpu.memory_space<vmem>>, vector<8x128xf32>
    %375 = arith.truncf %374 : vector<8x128xf32> to vector<8x128xbf16>
    %cst_95 = arith.constant dense<0.000000e+00> : vector<8x128xf32>
    %376 = tpu.matmul %375, %10, %cst_95 {dimension_numbers = #tpu.dot_dimension_numbers<[1], [0], [0], [1], [0, 0, 1, 1], [], []>} : vector<8x128xbf16>, vector<128x128xbf16>, vector<8x128xf32> -> vector<8x128xf32>
    %377 = arith.truncf %339 : vector<8x32xf32> to vector<8x32xbf16>
    %cst_96 = arith.constant dense<0.000000e+00> : vector<8x128xf32>
    %378 = tpu.matmul %377, %13, %cst_96 {dimension_numbers = #tpu.dot_dimension_numbers<[1], [0], [0], [1], [0, 0, 1, 1], [], []>} : vector<8x32xbf16>, vector<32x128xbf16>, vector<8x128xf32> -> vector<8x128xf32>
    %379 = arith.addf %376, %378 : vector<8x128xf32>
    %380 = arith.addf %379, %19 : vector<8x128xf32>
    %381 = arith.negf %380 : vector<8x128xf32>
    %382 = math.exp %381 : vector<8x128xf32>
    %cst_97 = arith.constant 1.000000e+00 : f32
    %383 = vector.broadcast %cst_97 : f32 to vector<8x128xf32>
    %384 = arith.addf %383, %382 : vector<8x128xf32>
    %385 = arith.divf %383, %384 : vector<8x128xf32>
    %386 = vector.extract_strided_slice %385 {offsets = [0, 0], sizes = [8, 32], strides = [1, 1]} : vector<8x128xf32> to vector<8x32xf32>
    %387 = vector.extract_strided_slice %385 {offsets = [0, 32], sizes = [8, 32], strides = [1, 1]} : vector<8x128xf32> to vector<8x32xf32>
    %388 = vector.extract_strided_slice %385 {offsets = [0, 64], sizes = [8, 32], strides = [1, 1]} : vector<8x128xf32> to vector<8x32xf32>
    %389 = vector.extract_strided_slice %380 {offsets = [0, 96], sizes = [8, 32], strides = [1, 1]} : vector<8x128xf32> to vector<8x32xf32>
    %390 = math.tanh %389 : vector<8x32xf32>
    %391 = arith.mulf %387, %337 : vector<8x32xf32>
    %392 = arith.mulf %386, %390 : vector<8x32xf32>
    %393 = arith.addf %391, %392 : vector<8x32xf32>
    %394 = math.tanh %393 : vector<8x32xf32>
    %395 = arith.mulf %388, %394 : vector<8x32xf32>
    %396 = arith.truncf %395 : vector<8x32xf32> to vector<8x32xbf16>
    %cst_98 = arith.constant dense<0.000000e+00> : vector<8x128xf32>
    %397 = tpu.matmul %396, %11, %cst_98 {dimension_numbers = #tpu.dot_dimension_numbers<[1], [0], [0], [1], [0, 0, 1, 1], [], []>} : vector<8x32xbf16>, vector<32x128xbf16>, vector<8x128xf32> -> vector<8x128xf32>
    %398 = arith.truncf %360 : vector<8x32xf32> to vector<8x32xbf16>
    %cst_99 = arith.constant dense<0.000000e+00> : vector<8x128xf32>
    %399 = tpu.matmul %398, %15, %cst_99 {dimension_numbers = #tpu.dot_dimension_numbers<[1], [0], [0], [1], [0, 0, 1, 1], [], []>} : vector<8x32xbf16>, vector<32x128xbf16>, vector<8x128xf32> -> vector<8x128xf32>
    %400 = arith.addf %397, %399 : vector<8x128xf32>
    %401 = arith.addf %400, %23 : vector<8x128xf32>
    %402 = arith.negf %401 : vector<8x128xf32>
    %403 = math.exp %402 : vector<8x128xf32>
    %cst_100 = arith.constant 1.000000e+00 : f32
    %404 = vector.broadcast %cst_100 : f32 to vector<8x128xf32>
    %405 = arith.addf %404, %403 : vector<8x128xf32>
    %406 = arith.divf %404, %405 : vector<8x128xf32>
    %407 = vector.extract_strided_slice %406 {offsets = [0, 0], sizes = [8, 32], strides = [1, 1]} : vector<8x128xf32> to vector<8x32xf32>
    %408 = vector.extract_strided_slice %406 {offsets = [0, 32], sizes = [8, 32], strides = [1, 1]} : vector<8x128xf32> to vector<8x32xf32>
    %409 = vector.extract_strided_slice %406 {offsets = [0, 64], sizes = [8, 32], strides = [1, 1]} : vector<8x128xf32> to vector<8x32xf32>
    %410 = vector.extract_strided_slice %401 {offsets = [0, 96], sizes = [8, 32], strides = [1, 1]} : vector<8x128xf32> to vector<8x32xf32>
    %411 = math.tanh %410 : vector<8x32xf32>
    %412 = arith.mulf %408, %358 : vector<8x32xf32>
    %413 = arith.mulf %407, %411 : vector<8x32xf32>
    %414 = arith.addf %412, %413 : vector<8x32xf32>
    %415 = math.tanh %414 : vector<8x32xf32>
    %416 = arith.mulf %409, %415 : vector<8x32xf32>
    %417 = arith.truncf %416 : vector<8x32xf32> to vector<8x32xbf16>
    %cst_101 = arith.constant dense<0.000000e+00> : vector<8x128xf32>
    %418 = tpu.matmul %417, %24, %cst_101 {dimension_numbers = #tpu.dot_dimension_numbers<[1], [0], [0], [1], [0, 0, 1, 1], [], []>} : vector<8x32xbf16>, vector<32x128xbf16>, vector<8x128xf32> -> vector<8x128xf32>
    %419 = arith.addf %418, %27 : vector<8x128xf32>
    %c1_102 = arith.constant 1 : index
    %c0_103 = arith.constant 0 : index
    %c0_104 = arith.constant 0 : index
    %420 = vector.load %arg12[%c1_102, %c0_103, %c0_104] : memref<8x8x128xf32, #tpu.memory_space<vmem>>, vector<1x8x128xf32>
    %421 = vector.shape_cast %420 : vector<1x8x128xf32> to vector<8x128xf32>
    %422 = vector.shape_cast %419 : vector<8x128xf32> to vector<1x8x128xf32>
    tpu.vector_store %arg12[%c1_102, %c0_103, %c0_104], %422 {strides = array<i32>} : memref<8x8x128xf32, #tpu.memory_space<vmem>>, vector<1x8x128xf32>,
    %c1_105 = arith.constant 1 : index
    %423 = memref.load %arg2[%c1_105] : memref<8xi32, #tpu.memory_space<smem>>
    %c0_i32 = arith.constant 0 : i32
    %424 = arith.cmpi ne, %423, %c0_i32 : i32
    %425 = arith.extui %424 : i1 to i32
    %c0_i32_106 = arith.constant 0 : i32
    %426 = arith.cmpi ne, %425, %c0_i32_106 : i32
    scf.if %426 {
      %c1_206 = arith.constant 1 : index
      %c0_207 = arith.constant 0 : index
      %c0_208 = arith.constant 0 : index
      %765 = vector.load %arg1[%c1_206, %c0_207, %c0_208] : memref<8x8x128xf32, #tpu.memory_space<vmem>>, vector<1x8x128xf32>
      %766 = vector.shape_cast %765 : vector<1x8x128xf32> to vector<8x128xf32>
      %c0_209 = arith.constant 0 : index
      %c0_210 = arith.constant 0 : index
      %767 = vector.load %arg13[%c0_209, %c0_210] : memref<8x128xf32, #tpu.memory_space<vmem>>, vector<8x128xf32>
      tpu.vector_store %arg13[%c0_209, %c0_210], %766 {strides = array<i32>} : memref<8x128xf32, #tpu.memory_space<vmem>>, vector<8x128xf32>,
    } else {
    }
    %c1_107 = arith.constant 1 : index
    %427 = memref.load %arg2[%c1_107] : memref<8xi32, #tpu.memory_space<smem>>
    %c0_i32_108 = arith.constant 0 : i32
    %428 = arith.cmpi eq, %427, %c0_i32_108 : i32
    %429 = arith.extui %428 : i1 to i32
    %c0_i32_109 = arith.constant 0 : i32
    %430 = arith.cmpi ne, %429, %c0_i32_109 : i32
    scf.if %430 {
      %765 = arith.select %371, %419, %372 : vector<8x128xi1>, vector<8x128xf32>
      %cst_206 = arith.constant dense<0xFF800000> : vector<8xf32>
      %766 = vector.multi_reduction <maximumf>, %765, %cst_206 [1] : vector<8x128xf32> to vector<8xf32>
      %767 = vector.shape_cast %766 : vector<8xf32> to vector<8x1xf32>
      %768 = vector.broadcast %767 : vector<8x1xf32> to vector<8x128xf32>
      %769 = arith.cmpf oge, %765, %768 : vector<8x128xf32>
      %770 = arith.select %769, %369, %373 : vector<8x128xi1>, vector<8x128xf32>
      %cst_207 = arith.constant dense<0x7F800000> : vector<8xf32>
      %771 = vector.multi_reduction <minimumf>, %770, %cst_207 [1] : vector<8x128xf32> to vector<8xf32>
      %772 = vector.shape_cast %771 : vector<8xf32> to vector<8x1xf32>
      %773 = vector.broadcast %772 : vector<8x1xf32> to vector<8x128xf32>
      %774 = arith.cmpf oeq, %369, %773 : vector<8x128xf32>
      %775 = arith.extui %774 : vector<8x128xi1> to vector<8x128xi32>
      %776 = arith.sitofp %775 : vector<8x128xi32> to vector<8x128xf32>
      %c0_208 = arith.constant 0 : index
      %c0_209 = arith.constant 0 : index
      %777 = vector.load %arg13[%c0_208, %c0_209] : memref<8x128xf32, #tpu.memory_space<vmem>>, vector<8x128xf32>
      tpu.vector_store %arg13[%c0_208, %c0_209], %776 {strides = array<i32>} : memref<8x128xf32, #tpu.memory_space<vmem>>, vector<8x128xf32>,
    } else {
    }
    %c0_110 = arith.constant 0 : index
    %c0_111 = arith.constant 0 : index
    %431 = vector.load %arg13[%c0_110, %c0_111] : memref<8x128xf32, #tpu.memory_space<vmem>>, vector<8x128xf32>
    %432 = arith.truncf %431 : vector<8x128xf32> to vector<8x128xbf16>
    %cst_112 = arith.constant dense<0.000000e+00> : vector<8x128xf32>
    %433 = tpu.matmul %432, %10, %cst_112 {dimension_numbers = #tpu.dot_dimension_numbers<[1], [0], [0], [1], [0, 0, 1, 1], [], []>} : vector<8x128xbf16>, vector<128x128xbf16>, vector<8x128xf32> -> vector<8x128xf32>
    %434 = arith.truncf %395 : vector<8x32xf32> to vector<8x32xbf16>
    %cst_113 = arith.constant dense<0.000000e+00> : vector<8x128xf32>
    %435 = tpu.matmul %434, %13, %cst_113 {dimension_numbers = #tpu.dot_dimension_numbers<[1], [0], [0], [1], [0, 0, 1, 1], [], []>} : vector<8x32xbf16>, vector<32x128xbf16>, vector<8x128xf32> -> vector<8x128xf32>
    %436 = arith.addf %433, %435 : vector<8x128xf32>
    %437 = arith.addf %436, %19 : vector<8x128xf32>
    %438 = arith.negf %437 : vector<8x128xf32>
    %439 = math.exp %438 : vector<8x128xf32>
    %cst_114 = arith.constant 1.000000e+00 : f32
    %440 = vector.broadcast %cst_114 : f32 to vector<8x128xf32>
    %441 = arith.addf %440, %439 : vector<8x128xf32>
    %442 = arith.divf %440, %441 : vector<8x128xf32>
    %443 = vector.extract_strided_slice %442 {offsets = [0, 0], sizes = [8, 32], strides = [1, 1]} : vector<8x128xf32> to vector<8x32xf32>
    %444 = vector.extract_strided_slice %442 {offsets = [0, 32], sizes = [8, 32], strides = [1, 1]} : vector<8x128xf32> to vector<8x32xf32>
    %445 = vector.extract_strided_slice %442 {offsets = [0, 64], sizes = [8, 32], strides = [1, 1]} : vector<8x128xf32> to vector<8x32xf32>
    %446 = vector.extract_strided_slice %437 {offsets = [0, 96], sizes = [8, 32], strides = [1, 1]} : vector<8x128xf32> to vector<8x32xf32>
    %447 = math.tanh %446 : vector<8x32xf32>
    %448 = arith.mulf %444, %393 : vector<8x32xf32>
    %449 = arith.mulf %443, %447 : vector<8x32xf32>
    %450 = arith.addf %448, %449 : vector<8x32xf32>
    %451 = math.tanh %450 : vector<8x32xf32>
    %452 = arith.mulf %445, %451 : vector<8x32xf32>
    %453 = arith.truncf %452 : vector<8x32xf32> to vector<8x32xbf16>
    %cst_115 = arith.constant dense<0.000000e+00> : vector<8x128xf32>
    %454 = tpu.matmul %453, %11, %cst_115 {dimension_numbers = #tpu.dot_dimension_numbers<[1], [0], [0], [1], [0, 0, 1, 1], [], []>} : vector<8x32xbf16>, vector<32x128xbf16>, vector<8x128xf32> -> vector<8x128xf32>
    %455 = arith.truncf %416 : vector<8x32xf32> to vector<8x32xbf16>
    %cst_116 = arith.constant dense<0.000000e+00> : vector<8x128xf32>
    %456 = tpu.matmul %455, %15, %cst_116 {dimension_numbers = #tpu.dot_dimension_numbers<[1], [0], [0], [1], [0, 0, 1, 1], [], []>} : vector<8x32xbf16>, vector<32x128xbf16>, vector<8x128xf32> -> vector<8x128xf32>
    %457 = arith.addf %454, %456 : vector<8x128xf32>
    %458 = arith.addf %457, %23 : vector<8x128xf32>
    %459 = arith.negf %458 : vector<8x128xf32>
    %460 = math.exp %459 : vector<8x128xf32>
    %cst_117 = arith.constant 1.000000e+00 : f32
    %461 = vector.broadcast %cst_117 : f32 to vector<8x128xf32>
    %462 = arith.addf %461, %460 : vector<8x128xf32>
    %463 = arith.divf %461, %462 : vector<8x128xf32>
    %464 = vector.extract_strided_slice %463 {offsets = [0, 0], sizes = [8, 32], strides = [1, 1]} : vector<8x128xf32> to vector<8x32xf32>
    %465 = vector.extract_strided_slice %463 {offsets = [0, 32], sizes = [8, 32], strides = [1, 1]} : vector<8x128xf32> to vector<8x32xf32>
    %466 = vector.extract_strided_slice %463 {offsets = [0, 64], sizes = [8, 32], strides = [1, 1]} : vector<8x128xf32> to vector<8x32xf32>
    %467 = vector.extract_strided_slice %458 {offsets = [0, 96], sizes = [8, 32], strides = [1, 1]} : vector<8x128xf32> to vector<8x32xf32>
    %468 = math.tanh %467 : vector<8x32xf32>
    %469 = arith.mulf %465, %414 : vector<8x32xf32>
    %470 = arith.mulf %464, %468 : vector<8x32xf32>
    %471 = arith.addf %469, %470 : vector<8x32xf32>
    %472 = math.tanh %471 : vector<8x32xf32>
    %473 = arith.mulf %466, %472 : vector<8x32xf32>
    %474 = arith.truncf %473 : vector<8x32xf32> to vector<8x32xbf16>
    %cst_118 = arith.constant dense<0.000000e+00> : vector<8x128xf32>
    %475 = tpu.matmul %474, %24, %cst_118 {dimension_numbers = #tpu.dot_dimension_numbers<[1], [0], [0], [1], [0, 0, 1, 1], [], []>} : vector<8x32xbf16>, vector<32x128xbf16>, vector<8x128xf32> -> vector<8x128xf32>
    %476 = arith.addf %475, %27 : vector<8x128xf32>
    %c2 = arith.constant 2 : index
    %c0_119 = arith.constant 0 : index
    %c0_120 = arith.constant 0 : index
    %477 = vector.load %arg12[%c2, %c0_119, %c0_120] : memref<8x8x128xf32, #tpu.memory_space<vmem>>, vector<1x8x128xf32>
    %478 = vector.shape_cast %477 : vector<1x8x128xf32> to vector<8x128xf32>
    %479 = vector.shape_cast %476 : vector<8x128xf32> to vector<1x8x128xf32>
    tpu.vector_store %arg12[%c2, %c0_119, %c0_120], %479 {strides = array<i32>} : memref<8x8x128xf32, #tpu.memory_space<vmem>>, vector<1x8x128xf32>,
    %c2_121 = arith.constant 2 : index
    %480 = memref.load %arg2[%c2_121] : memref<8xi32, #tpu.memory_space<smem>>
    %c0_i32_122 = arith.constant 0 : i32
    %481 = arith.cmpi ne, %480, %c0_i32_122 : i32
    %482 = arith.extui %481 : i1 to i32
    %c0_i32_123 = arith.constant 0 : i32
    %483 = arith.cmpi ne, %482, %c0_i32_123 : i32
    scf.if %483 {
      %c2_206 = arith.constant 2 : index
      %c0_207 = arith.constant 0 : index
      %c0_208 = arith.constant 0 : index
      %765 = vector.load %arg1[%c2_206, %c0_207, %c0_208] : memref<8x8x128xf32, #tpu.memory_space<vmem>>, vector<1x8x128xf32>
      %766 = vector.shape_cast %765 : vector<1x8x128xf32> to vector<8x128xf32>
      %c0_209 = arith.constant 0 : index
      %c0_210 = arith.constant 0 : index
      %767 = vector.load %arg13[%c0_209, %c0_210] : memref<8x128xf32, #tpu.memory_space<vmem>>, vector<8x128xf32>
      tpu.vector_store %arg13[%c0_209, %c0_210], %766 {strides = array<i32>} : memref<8x128xf32, #tpu.memory_space<vmem>>, vector<8x128xf32>,
    } else {
    }
    %c2_124 = arith.constant 2 : index
    %484 = memref.load %arg2[%c2_124] : memref<8xi32, #tpu.memory_space<smem>>
    %c0_i32_125 = arith.constant 0 : i32
    %485 = arith.cmpi eq, %484, %c0_i32_125 : i32
    %486 = arith.extui %485 : i1 to i32
    %c0_i32_126 = arith.constant 0 : i32
    %487 = arith.cmpi ne, %486, %c0_i32_126 : i32
    scf.if %487 {
      %765 = arith.select %371, %476, %372 : vector<8x128xi1>, vector<8x128xf32>
      %cst_206 = arith.constant dense<0xFF800000> : vector<8xf32>
      %766 = vector.multi_reduction <maximumf>, %765, %cst_206 [1] : vector<8x128xf32> to vector<8xf32>
      %767 = vector.shape_cast %766 : vector<8xf32> to vector<8x1xf32>
      %768 = vector.broadcast %767 : vector<8x1xf32> to vector<8x128xf32>
      %769 = arith.cmpf oge, %765, %768 : vector<8x128xf32>
      %770 = arith.select %769, %369, %373 : vector<8x128xi1>, vector<8x128xf32>
      %cst_207 = arith.constant dense<0x7F800000> : vector<8xf32>
      %771 = vector.multi_reduction <minimumf>, %770, %cst_207 [1] : vector<8x128xf32> to vector<8xf32>
      %772 = vector.shape_cast %771 : vector<8xf32> to vector<8x1xf32>
      %773 = vector.broadcast %772 : vector<8x1xf32> to vector<8x128xf32>
      %774 = arith.cmpf oeq, %369, %773 : vector<8x128xf32>
      %775 = arith.extui %774 : vector<8x128xi1> to vector<8x128xi32>
      %776 = arith.sitofp %775 : vector<8x128xi32> to vector<8x128xf32>
      %c0_208 = arith.constant 0 : index
      %c0_209 = arith.constant 0 : index
      %777 = vector.load %arg13[%c0_208, %c0_209] : memref<8x128xf32, #tpu.memory_space<vmem>>, vector<8x128xf32>
      tpu.vector_store %arg13[%c0_208, %c0_209], %776 {strides = array<i32>} : memref<8x128xf32, #tpu.memory_space<vmem>>, vector<8x128xf32>,
    } else {
    }
    %c0_127 = arith.constant 0 : index
    %c0_128 = arith.constant 0 : index
    %488 = vector.load %arg13[%c0_127, %c0_128] : memref<8x128xf32, #tpu.memory_space<vmem>>, vector<8x128xf32>
    %489 = arith.truncf %488 : vector<8x128xf32> to vector<8x128xbf16>
    %cst_129 = arith.constant dense<0.000000e+00> : vector<8x128xf32>
    %490 = tpu.matmul %489, %10, %cst_129 {dimension_numbers = #tpu.dot_dimension_numbers<[1], [0], [0], [1], [0, 0, 1, 1], [], []>} : vector<8x128xbf16>, vector<128x128xbf16>, vector<8x128xf32> -> vector<8x128xf32>
    %491 = arith.truncf %452 : vector<8x32xf32> to vector<8x32xbf16>
    %cst_130 = arith.constant dense<0.000000e+00> : vector<8x128xf32>
    %492 = tpu.matmul %491, %13, %cst_130 {dimension_numbers = #tpu.dot_dimension_numbers<[1], [0], [0], [1], [0, 0, 1, 1], [], []>} : vector<8x32xbf16>, vector<32x128xbf16>, vector<8x128xf32> -> vector<8x128xf32>
    %493 = arith.addf %490, %492 : vector<8x128xf32>
    %494 = arith.addf %493, %19 : vector<8x128xf32>
    %495 = arith.negf %494 : vector<8x128xf32>
    %496 = math.exp %495 : vector<8x128xf32>
    %cst_131 = arith.constant 1.000000e+00 : f32
    %497 = vector.broadcast %cst_131 : f32 to vector<8x128xf32>
    %498 = arith.addf %497, %496 : vector<8x128xf32>
    %499 = arith.divf %497, %498 : vector<8x128xf32>
    %500 = vector.extract_strided_slice %499 {offsets = [0, 0], sizes = [8, 32], strides = [1, 1]} : vector<8x128xf32> to vector<8x32xf32>
    %501 = vector.extract_strided_slice %499 {offsets = [0, 32], sizes = [8, 32], strides = [1, 1]} : vector<8x128xf32> to vector<8x32xf32>
    %502 = vector.extract_strided_slice %499 {offsets = [0, 64], sizes = [8, 32], strides = [1, 1]} : vector<8x128xf32> to vector<8x32xf32>
    %503 = vector.extract_strided_slice %494 {offsets = [0, 96], sizes = [8, 32], strides = [1, 1]} : vector<8x128xf32> to vector<8x32xf32>
    %504 = math.tanh %503 : vector<8x32xf32>
    %505 = arith.mulf %501, %450 : vector<8x32xf32>
    %506 = arith.mulf %500, %504 : vector<8x32xf32>
    %507 = arith.addf %505, %506 : vector<8x32xf32>
    %508 = math.tanh %507 : vector<8x32xf32>
    %509 = arith.mulf %502, %508 : vector<8x32xf32>
    %510 = arith.truncf %509 : vector<8x32xf32> to vector<8x32xbf16>
    %cst_132 = arith.constant dense<0.000000e+00> : vector<8x128xf32>
    %511 = tpu.matmul %510, %11, %cst_132 {dimension_numbers = #tpu.dot_dimension_numbers<[1], [0], [0], [1], [0, 0, 1, 1], [], []>} : vector<8x32xbf16>, vector<32x128xbf16>, vector<8x128xf32> -> vector<8x128xf32>
    %512 = arith.truncf %473 : vector<8x32xf32> to vector<8x32xbf16>
    %cst_133 = arith.constant dense<0.000000e+00> : vector<8x128xf32>
    %513 = tpu.matmul %512, %15, %cst_133 {dimension_numbers = #tpu.dot_dimension_numbers<[1], [0], [0], [1], [0, 0, 1, 1], [], []>} : vector<8x32xbf16>, vector<32x128xbf16>, vector<8x128xf32> -> vector<8x128xf32>
    %514 = arith.addf %511, %513 : vector<8x128xf32>
    %515 = arith.addf %514, %23 : vector<8x128xf32>
    %516 = arith.negf %515 : vector<8x128xf32>
    %517 = math.exp %516 : vector<8x128xf32>
    %cst_134 = arith.constant 1.000000e+00 : f32
    %518 = vector.broadcast %cst_134 : f32 to vector<8x128xf32>
    %519 = arith.addf %518, %517 : vector<8x128xf32>
    %520 = arith.divf %518, %519 : vector<8x128xf32>
    %521 = vector.extract_strided_slice %520 {offsets = [0, 0], sizes = [8, 32], strides = [1, 1]} : vector<8x128xf32> to vector<8x32xf32>
    %522 = vector.extract_strided_slice %520 {offsets = [0, 32], sizes = [8, 32], strides = [1, 1]} : vector<8x128xf32> to vector<8x32xf32>
    %523 = vector.extract_strided_slice %520 {offsets = [0, 64], sizes = [8, 32], strides = [1, 1]} : vector<8x128xf32> to vector<8x32xf32>
    %524 = vector.extract_strided_slice %515 {offsets = [0, 96], sizes = [8, 32], strides = [1, 1]} : vector<8x128xf32> to vector<8x32xf32>
    %525 = math.tanh %524 : vector<8x32xf32>
    %526 = arith.mulf %522, %471 : vector<8x32xf32>
    %527 = arith.mulf %521, %525 : vector<8x32xf32>
    %528 = arith.addf %526, %527 : vector<8x32xf32>
    %529 = math.tanh %528 : vector<8x32xf32>
    %530 = arith.mulf %523, %529 : vector<8x32xf32>
    %531 = arith.truncf %530 : vector<8x32xf32> to vector<8x32xbf16>
    %cst_135 = arith.constant dense<0.000000e+00> : vector<8x128xf32>
    %532 = tpu.matmul %531, %24, %cst_135 {dimension_numbers = #tpu.dot_dimension_numbers<[1], [0], [0], [1], [0, 0, 1, 1], [], []>} : vector<8x32xbf16>, vector<32x128xbf16>, vector<8x128xf32> -> vector<8x128xf32>
    %533 = arith.addf %532, %27 : vector<8x128xf32>
    %c3 = arith.constant 3 : index
    %c0_136 = arith.constant 0 : index
    %c0_137 = arith.constant 0 : index
    %534 = vector.load %arg12[%c3, %c0_136, %c0_137] : memref<8x8x128xf32, #tpu.memory_space<vmem>>, vector<1x8x128xf32>
    %535 = vector.shape_cast %534 : vector<1x8x128xf32> to vector<8x128xf32>
    %536 = vector.shape_cast %533 : vector<8x128xf32> to vector<1x8x128xf32>
    tpu.vector_store %arg12[%c3, %c0_136, %c0_137], %536 {strides = array<i32>} : memref<8x8x128xf32, #tpu.memory_space<vmem>>, vector<1x8x128xf32>,
    %c3_138 = arith.constant 3 : index
    %537 = memref.load %arg2[%c3_138] : memref<8xi32, #tpu.memory_space<smem>>
    %c0_i32_139 = arith.constant 0 : i32
    %538 = arith.cmpi ne, %537, %c0_i32_139 : i32
    %539 = arith.extui %538 : i1 to i32
    %c0_i32_140 = arith.constant 0 : i32
    %540 = arith.cmpi ne, %539, %c0_i32_140 : i32
    scf.if %540 {
      %c3_206 = arith.constant 3 : index
      %c0_207 = arith.constant 0 : index
      %c0_208 = arith.constant 0 : index
      %765 = vector.load %arg1[%c3_206, %c0_207, %c0_208] : memref<8x8x128xf32, #tpu.memory_space<vmem>>, vector<1x8x128xf32>
      %766 = vector.shape_cast %765 : vector<1x8x128xf32> to vector<8x128xf32>
      %c0_209 = arith.constant 0 : index
      %c0_210 = arith.constant 0 : index
      %767 = vector.load %arg13[%c0_209, %c0_210] : memref<8x128xf32, #tpu.memory_space<vmem>>, vector<8x128xf32>
      tpu.vector_store %arg13[%c0_209, %c0_210], %766 {strides = array<i32>} : memref<8x128xf32, #tpu.memory_space<vmem>>, vector<8x128xf32>,
    } else {
    }
    %c3_141 = arith.constant 3 : index
    %541 = memref.load %arg2[%c3_141] : memref<8xi32, #tpu.memory_space<smem>>
    %c0_i32_142 = arith.constant 0 : i32
    %542 = arith.cmpi eq, %541, %c0_i32_142 : i32
    %543 = arith.extui %542 : i1 to i32
    %c0_i32_143 = arith.constant 0 : i32
    %544 = arith.cmpi ne, %543, %c0_i32_143 : i32
    scf.if %544 {
      %765 = arith.select %371, %533, %372 : vector<8x128xi1>, vector<8x128xf32>
      %cst_206 = arith.constant dense<0xFF800000> : vector<8xf32>
      %766 = vector.multi_reduction <maximumf>, %765, %cst_206 [1] : vector<8x128xf32> to vector<8xf32>
      %767 = vector.shape_cast %766 : vector<8xf32> to vector<8x1xf32>
      %768 = vector.broadcast %767 : vector<8x1xf32> to vector<8x128xf32>
      %769 = arith.cmpf oge, %765, %768 : vector<8x128xf32>
      %770 = arith.select %769, %369, %373 : vector<8x128xi1>, vector<8x128xf32>
      %cst_207 = arith.constant dense<0x7F800000> : vector<8xf32>
      %771 = vector.multi_reduction <minimumf>, %770, %cst_207 [1] : vector<8x128xf32> to vector<8xf32>
      %772 = vector.shape_cast %771 : vector<8xf32> to vector<8x1xf32>
      %773 = vector.broadcast %772 : vector<8x1xf32> to vector<8x128xf32>
      %774 = arith.cmpf oeq, %369, %773 : vector<8x128xf32>
      %775 = arith.extui %774 : vector<8x128xi1> to vector<8x128xi32>
      %776 = arith.sitofp %775 : vector<8x128xi32> to vector<8x128xf32>
      %c0_208 = arith.constant 0 : index
      %c0_209 = arith.constant 0 : index
      %777 = vector.load %arg13[%c0_208, %c0_209] : memref<8x128xf32, #tpu.memory_space<vmem>>, vector<8x128xf32>
      tpu.vector_store %arg13[%c0_208, %c0_209], %776 {strides = array<i32>} : memref<8x128xf32, #tpu.memory_space<vmem>>, vector<8x128xf32>,
    } else {
    }
    %c0_144 = arith.constant 0 : index
    %c0_145 = arith.constant 0 : index
    %545 = vector.load %arg13[%c0_144, %c0_145] : memref<8x128xf32, #tpu.memory_space<vmem>>, vector<8x128xf32>
    %546 = arith.truncf %545 : vector<8x128xf32> to vector<8x128xbf16>
    %cst_146 = arith.constant dense<0.000000e+00> : vector<8x128xf32>
    %547 = tpu.matmul %546, %10, %cst_146 {dimension_numbers = #tpu.dot_dimension_numbers<[1], [0], [0], [1], [0, 0, 1, 1], [], []>} : vector<8x128xbf16>, vector<128x128xbf16>, vector<8x128xf32> -> vector<8x128xf32>
    %548 = arith.truncf %509 : vector<8x32xf32> to vector<8x32xbf16>
    %cst_147 = arith.constant dense<0.000000e+00> : vector<8x128xf32>
    %549 = tpu.matmul %548, %13, %cst_147 {dimension_numbers = #tpu.dot_dimension_numbers<[1], [0], [0], [1], [0, 0, 1, 1], [], []>} : vector<8x32xbf16>, vector<32x128xbf16>, vector<8x128xf32> -> vector<8x128xf32>
    %550 = arith.addf %547, %549 : vector<8x128xf32>
    %551 = arith.addf %550, %19 : vector<8x128xf32>
    %552 = arith.negf %551 : vector<8x128xf32>
    %553 = math.exp %552 : vector<8x128xf32>
    %cst_148 = arith.constant 1.000000e+00 : f32
    %554 = vector.broadcast %cst_148 : f32 to vector<8x128xf32>
    %555 = arith.addf %554, %553 : vector<8x128xf32>
    %556 = arith.divf %554, %555 : vector<8x128xf32>
    %557 = vector.extract_strided_slice %556 {offsets = [0, 0], sizes = [8, 32], strides = [1, 1]} : vector<8x128xf32> to vector<8x32xf32>
    %558 = vector.extract_strided_slice %556 {offsets = [0, 32], sizes = [8, 32], strides = [1, 1]} : vector<8x128xf32> to vector<8x32xf32>
    %559 = vector.extract_strided_slice %556 {offsets = [0, 64], sizes = [8, 32], strides = [1, 1]} : vector<8x128xf32> to vector<8x32xf32>
    %560 = vector.extract_strided_slice %551 {offsets = [0, 96], sizes = [8, 32], strides = [1, 1]} : vector<8x128xf32> to vector<8x32xf32>
    %561 = math.tanh %560 : vector<8x32xf32>
    %562 = arith.mulf %558, %507 : vector<8x32xf32>
    %563 = arith.mulf %557, %561 : vector<8x32xf32>
    %564 = arith.addf %562, %563 : vector<8x32xf32>
    %565 = math.tanh %564 : vector<8x32xf32>
    %566 = arith.mulf %559, %565 : vector<8x32xf32>
    %567 = arith.truncf %566 : vector<8x32xf32> to vector<8x32xbf16>
    %cst_149 = arith.constant dense<0.000000e+00> : vector<8x128xf32>
    %568 = tpu.matmul %567, %11, %cst_149 {dimension_numbers = #tpu.dot_dimension_numbers<[1], [0], [0], [1], [0, 0, 1, 1], [], []>} : vector<8x32xbf16>, vector<32x128xbf16>, vector<8x128xf32> -> vector<8x128xf32>
    %569 = arith.truncf %530 : vector<8x32xf32> to vector<8x32xbf16>
    %cst_150 = arith.constant dense<0.000000e+00> : vector<8x128xf32>
    %570 = tpu.matmul %569, %15, %cst_150 {dimension_numbers = #tpu.dot_dimension_numbers<[1], [0], [0], [1], [0, 0, 1, 1], [], []>} : vector<8x32xbf16>, vector<32x128xbf16>, vector<8x128xf32> -> vector<8x128xf32>
    %571 = arith.addf %568, %570 : vector<8x128xf32>
    %572 = arith.addf %571, %23 : vector<8x128xf32>
    %573 = arith.negf %572 : vector<8x128xf32>
    %574 = math.exp %573 : vector<8x128xf32>
    %cst_151 = arith.constant 1.000000e+00 : f32
    %575 = vector.broadcast %cst_151 : f32 to vector<8x128xf32>
    %576 = arith.addf %575, %574 : vector<8x128xf32>
    %577 = arith.divf %575, %576 : vector<8x128xf32>
    %578 = vector.extract_strided_slice %577 {offsets = [0, 0], sizes = [8, 32], strides = [1, 1]} : vector<8x128xf32> to vector<8x32xf32>
    %579 = vector.extract_strided_slice %577 {offsets = [0, 32], sizes = [8, 32], strides = [1, 1]} : vector<8x128xf32> to vector<8x32xf32>
    %580 = vector.extract_strided_slice %577 {offsets = [0, 64], sizes = [8, 32], strides = [1, 1]} : vector<8x128xf32> to vector<8x32xf32>
    %581 = vector.extract_strided_slice %572 {offsets = [0, 96], sizes = [8, 32], strides = [1, 1]} : vector<8x128xf32> to vector<8x32xf32>
    %582 = math.tanh %581 : vector<8x32xf32>
    %583 = arith.mulf %579, %528 : vector<8x32xf32>
    %584 = arith.mulf %578, %582 : vector<8x32xf32>
    %585 = arith.addf %583, %584 : vector<8x32xf32>
    %586 = math.tanh %585 : vector<8x32xf32>
    %587 = arith.mulf %580, %586 : vector<8x32xf32>
    %588 = arith.truncf %587 : vector<8x32xf32> to vector<8x32xbf16>
    %cst_152 = arith.constant dense<0.000000e+00> : vector<8x128xf32>
    %589 = tpu.matmul %588, %24, %cst_152 {dimension_numbers = #tpu.dot_dimension_numbers<[1], [0], [0], [1], [0, 0, 1, 1], [], []>} : vector<8x32xbf16>, vector<32x128xbf16>, vector<8x128xf32> -> vector<8x128xf32>
    %590 = arith.addf %589, %27 : vector<8x128xf32>
    %c4 = arith.constant 4 : index
    %c0_153 = arith.constant 0 : index
    %c0_154 = arith.constant 0 : index
    %591 = vector.load %arg12[%c4, %c0_153, %c0_154] : memref<8x8x128xf32, #tpu.memory_space<vmem>>, vector<1x8x128xf32>
    %592 = vector.shape_cast %591 : vector<1x8x128xf32> to vector<8x128xf32>
    %593 = vector.shape_cast %590 : vector<8x128xf32> to vector<1x8x128xf32>
    tpu.vector_store %arg12[%c4, %c0_153, %c0_154], %593 {strides = array<i32>} : memref<8x8x128xf32, #tpu.memory_space<vmem>>, vector<1x8x128xf32>,
    %c4_155 = arith.constant 4 : index
    %594 = memref.load %arg2[%c4_155] : memref<8xi32, #tpu.memory_space<smem>>
    %c0_i32_156 = arith.constant 0 : i32
    %595 = arith.cmpi ne, %594, %c0_i32_156 : i32
    %596 = arith.extui %595 : i1 to i32
    %c0_i32_157 = arith.constant 0 : i32
    %597 = arith.cmpi ne, %596, %c0_i32_157 : i32
    scf.if %597 {
      %c4_206 = arith.constant 4 : index
      %c0_207 = arith.constant 0 : index
      %c0_208 = arith.constant 0 : index
      %765 = vector.load %arg1[%c4_206, %c0_207, %c0_208] : memref<8x8x128xf32, #tpu.memory_space<vmem>>, vector<1x8x128xf32>
      %766 = vector.shape_cast %765 : vector<1x8x128xf32> to vector<8x128xf32>
      %c0_209 = arith.constant 0 : index
      %c0_210 = arith.constant 0 : index
      %767 = vector.load %arg13[%c0_209, %c0_210] : memref<8x128xf32, #tpu.memory_space<vmem>>, vector<8x128xf32>
      tpu.vector_store %arg13[%c0_209, %c0_210], %766 {strides = array<i32>} : memref<8x128xf32, #tpu.memory_space<vmem>>, vector<8x128xf32>,
    } else {
    }
    %c4_158 = arith.constant 4 : index
    %598 = memref.load %arg2[%c4_158] : memref<8xi32, #tpu.memory_space<smem>>
    %c0_i32_159 = arith.constant 0 : i32
    %599 = arith.cmpi eq, %598, %c0_i32_159 : i32
    %600 = arith.extui %599 : i1 to i32
    %c0_i32_160 = arith.constant 0 : i32
    %601 = arith.cmpi ne, %600, %c0_i32_160 : i32
    scf.if %601 {
      %765 = arith.select %371, %590, %372 : vector<8x128xi1>, vector<8x128xf32>
      %cst_206 = arith.constant dense<0xFF800000> : vector<8xf32>
      %766 = vector.multi_reduction <maximumf>, %765, %cst_206 [1] : vector<8x128xf32> to vector<8xf32>
      %767 = vector.shape_cast %766 : vector<8xf32> to vector<8x1xf32>
      %768 = vector.broadcast %767 : vector<8x1xf32> to vector<8x128xf32>
      %769 = arith.cmpf oge, %765, %768 : vector<8x128xf32>
      %770 = arith.select %769, %369, %373 : vector<8x128xi1>, vector<8x128xf32>
      %cst_207 = arith.constant dense<0x7F800000> : vector<8xf32>
      %771 = vector.multi_reduction <minimumf>, %770, %cst_207 [1] : vector<8x128xf32> to vector<8xf32>
      %772 = vector.shape_cast %771 : vector<8xf32> to vector<8x1xf32>
      %773 = vector.broadcast %772 : vector<8x1xf32> to vector<8x128xf32>
      %774 = arith.cmpf oeq, %369, %773 : vector<8x128xf32>
      %775 = arith.extui %774 : vector<8x128xi1> to vector<8x128xi32>
      %776 = arith.sitofp %775 : vector<8x128xi32> to vector<8x128xf32>
      %c0_208 = arith.constant 0 : index
      %c0_209 = arith.constant 0 : index
      %777 = vector.load %arg13[%c0_208, %c0_209] : memref<8x128xf32, #tpu.memory_space<vmem>>, vector<8x128xf32>
      tpu.vector_store %arg13[%c0_208, %c0_209], %776 {strides = array<i32>} : memref<8x128xf32, #tpu.memory_space<vmem>>, vector<8x128xf32>,
    } else {
    }
    %c0_161 = arith.constant 0 : index
    %c0_162 = arith.constant 0 : index
    %602 = vector.load %arg13[%c0_161, %c0_162] : memref<8x128xf32, #tpu.memory_space<vmem>>, vector<8x128xf32>
    %603 = arith.truncf %602 : vector<8x128xf32> to vector<8x128xbf16>
    %cst_163 = arith.constant dense<0.000000e+00> : vector<8x128xf32>
    %604 = tpu.matmul %603, %10, %cst_163 {dimension_numbers = #tpu.dot_dimension_numbers<[1], [0], [0], [1], [0, 0, 1, 1], [], []>} : vector<8x128xbf16>, vector<128x128xbf16>, vector<8x128xf32> -> vector<8x128xf32>
    %605 = arith.truncf %566 : vector<8x32xf32> to vector<8x32xbf16>
    %cst_164 = arith.constant dense<0.000000e+00> : vector<8x128xf32>
    %606 = tpu.matmul %605, %13, %cst_164 {dimension_numbers = #tpu.dot_dimension_numbers<[1], [0], [0], [1], [0, 0, 1, 1], [], []>} : vector<8x32xbf16>, vector<32x128xbf16>, vector<8x128xf32> -> vector<8x128xf32>
    %607 = arith.addf %604, %606 : vector<8x128xf32>
    %608 = arith.addf %607, %19 : vector<8x128xf32>
    %609 = arith.negf %608 : vector<8x128xf32>
    %610 = math.exp %609 : vector<8x128xf32>
    %cst_165 = arith.constant 1.000000e+00 : f32
    %611 = vector.broadcast %cst_165 : f32 to vector<8x128xf32>
    %612 = arith.addf %611, %610 : vector<8x128xf32>
    %613 = arith.divf %611, %612 : vector<8x128xf32>
    %614 = vector.extract_strided_slice %613 {offsets = [0, 0], sizes = [8, 32], strides = [1, 1]} : vector<8x128xf32> to vector<8x32xf32>
    %615 = vector.extract_strided_slice %613 {offsets = [0, 32], sizes = [8, 32], strides = [1, 1]} : vector<8x128xf32> to vector<8x32xf32>
    %616 = vector.extract_strided_slice %613 {offsets = [0, 64], sizes = [8, 32], strides = [1, 1]} : vector<8x128xf32> to vector<8x32xf32>
    %617 = vector.extract_strided_slice %608 {offsets = [0, 96], sizes = [8, 32], strides = [1, 1]} : vector<8x128xf32> to vector<8x32xf32>
    %618 = math.tanh %617 : vector<8x32xf32>
    %619 = arith.mulf %615, %564 : vector<8x32xf32>
    %620 = arith.mulf %614, %618 : vector<8x32xf32>
    %621 = arith.addf %619, %620 : vector<8x32xf32>
    %622 = math.tanh %621 : vector<8x32xf32>
    %623 = arith.mulf %616, %622 : vector<8x32xf32>
    %624 = arith.truncf %623 : vector<8x32xf32> to vector<8x32xbf16>
    %cst_166 = arith.constant dense<0.000000e+00> : vector<8x128xf32>
    %625 = tpu.matmul %624, %11, %cst_166 {dimension_numbers = #tpu.dot_dimension_numbers<[1], [0], [0], [1], [0, 0, 1, 1], [], []>} : vector<8x32xbf16>, vector<32x128xbf16>, vector<8x128xf32> -> vector<8x128xf32>
    %626 = arith.truncf %587 : vector<8x32xf32> to vector<8x32xbf16>
    %cst_167 = arith.constant dense<0.000000e+00> : vector<8x128xf32>
    %627 = tpu.matmul %626, %15, %cst_167 {dimension_numbers = #tpu.dot_dimension_numbers<[1], [0], [0], [1], [0, 0, 1, 1], [], []>} : vector<8x32xbf16>, vector<32x128xbf16>, vector<8x128xf32> -> vector<8x128xf32>
    %628 = arith.addf %625, %627 : vector<8x128xf32>
    %629 = arith.addf %628, %23 : vector<8x128xf32>
    %630 = arith.negf %629 : vector<8x128xf32>
    %631 = math.exp %630 : vector<8x128xf32>
    %cst_168 = arith.constant 1.000000e+00 : f32
    %632 = vector.broadcast %cst_168 : f32 to vector<8x128xf32>
    %633 = arith.addf %632, %631 : vector<8x128xf32>
    %634 = arith.divf %632, %633 : vector<8x128xf32>
    %635 = vector.extract_strided_slice %634 {offsets = [0, 0], sizes = [8, 32], strides = [1, 1]} : vector<8x128xf32> to vector<8x32xf32>
    %636 = vector.extract_strided_slice %634 {offsets = [0, 32], sizes = [8, 32], strides = [1, 1]} : vector<8x128xf32> to vector<8x32xf32>
    %637 = vector.extract_strided_slice %634 {offsets = [0, 64], sizes = [8, 32], strides = [1, 1]} : vector<8x128xf32> to vector<8x32xf32>
    %638 = vector.extract_strided_slice %629 {offsets = [0, 96], sizes = [8, 32], strides = [1, 1]} : vector<8x128xf32> to vector<8x32xf32>
    %639 = math.tanh %638 : vector<8x32xf32>
    %640 = arith.mulf %636, %585 : vector<8x32xf32>
    %641 = arith.mulf %635, %639 : vector<8x32xf32>
    %642 = arith.addf %640, %641 : vector<8x32xf32>
    %643 = math.tanh %642 : vector<8x32xf32>
    %644 = arith.mulf %637, %643 : vector<8x32xf32>
    %645 = arith.truncf %644 : vector<8x32xf32> to vector<8x32xbf16>
    %cst_169 = arith.constant dense<0.000000e+00> : vector<8x128xf32>
    %646 = tpu.matmul %645, %24, %cst_169 {dimension_numbers = #tpu.dot_dimension_numbers<[1], [0], [0], [1], [0, 0, 1, 1], [], []>} : vector<8x32xbf16>, vector<32x128xbf16>, vector<8x128xf32> -> vector<8x128xf32>
    %647 = arith.addf %646, %27 : vector<8x128xf32>
    %c5 = arith.constant 5 : index
    %c0_170 = arith.constant 0 : index
    %c0_171 = arith.constant 0 : index
    %648 = vector.load %arg12[%c5, %c0_170, %c0_171] : memref<8x8x128xf32, #tpu.memory_space<vmem>>, vector<1x8x128xf32>
    %649 = vector.shape_cast %648 : vector<1x8x128xf32> to vector<8x128xf32>
    %650 = vector.shape_cast %647 : vector<8x128xf32> to vector<1x8x128xf32>
    tpu.vector_store %arg12[%c5, %c0_170, %c0_171], %650 {strides = array<i32>} : memref<8x8x128xf32, #tpu.memory_space<vmem>>, vector<1x8x128xf32>,
    %c5_172 = arith.constant 5 : index
    %651 = memref.load %arg2[%c5_172] : memref<8xi32, #tpu.memory_space<smem>>
    %c0_i32_173 = arith.constant 0 : i32
    %652 = arith.cmpi ne, %651, %c0_i32_173 : i32
    %653 = arith.extui %652 : i1 to i32
    %c0_i32_174 = arith.constant 0 : i32
    %654 = arith.cmpi ne, %653, %c0_i32_174 : i32
    scf.if %654 {
      %c5_206 = arith.constant 5 : index
      %c0_207 = arith.constant 0 : index
      %c0_208 = arith.constant 0 : index
      %765 = vector.load %arg1[%c5_206, %c0_207, %c0_208] : memref<8x8x128xf32, #tpu.memory_space<vmem>>, vector<1x8x128xf32>
      %766 = vector.shape_cast %765 : vector<1x8x128xf32> to vector<8x128xf32>
      %c0_209 = arith.constant 0 : index
      %c0_210 = arith.constant 0 : index
      %767 = vector.load %arg13[%c0_209, %c0_210] : memref<8x128xf32, #tpu.memory_space<vmem>>, vector<8x128xf32>
      tpu.vector_store %arg13[%c0_209, %c0_210], %766 {strides = array<i32>} : memref<8x128xf32, #tpu.memory_space<vmem>>, vector<8x128xf32>,
    } else {
    }
    %c5_175 = arith.constant 5 : index
    %655 = memref.load %arg2[%c5_175] : memref<8xi32, #tpu.memory_space<smem>>
    %c0_i32_176 = arith.constant 0 : i32
    %656 = arith.cmpi eq, %655, %c0_i32_176 : i32
    %657 = arith.extui %656 : i1 to i32
    %c0_i32_177 = arith.constant 0 : i32
    %658 = arith.cmpi ne, %657, %c0_i32_177 : i32
    scf.if %658 {
      %765 = arith.select %371, %647, %372 : vector<8x128xi1>, vector<8x128xf32>
      %cst_206 = arith.constant dense<0xFF800000> : vector<8xf32>
      %766 = vector.multi_reduction <maximumf>, %765, %cst_206 [1] : vector<8x128xf32> to vector<8xf32>
      %767 = vector.shape_cast %766 : vector<8xf32> to vector<8x1xf32>
      %768 = vector.broadcast %767 : vector<8x1xf32> to vector<8x128xf32>
      %769 = arith.cmpf oge, %765, %768 : vector<8x128xf32>
      %770 = arith.select %769, %369, %373 : vector<8x128xi1>, vector<8x128xf32>
      %cst_207 = arith.constant dense<0x7F800000> : vector<8xf32>
      %771 = vector.multi_reduction <minimumf>, %770, %cst_207 [1] : vector<8x128xf32> to vector<8xf32>
      %772 = vector.shape_cast %771 : vector<8xf32> to vector<8x1xf32>
      %773 = vector.broadcast %772 : vector<8x1xf32> to vector<8x128xf32>
      %774 = arith.cmpf oeq, %369, %773 : vector<8x128xf32>
      %775 = arith.extui %774 : vector<8x128xi1> to vector<8x128xi32>
      %776 = arith.sitofp %775 : vector<8x128xi32> to vector<8x128xf32>
      %c0_208 = arith.constant 0 : index
      %c0_209 = arith.constant 0 : index
      %777 = vector.load %arg13[%c0_208, %c0_209] : memref<8x128xf32, #tpu.memory_space<vmem>>, vector<8x128xf32>
      tpu.vector_store %arg13[%c0_208, %c0_209], %776 {strides = array<i32>} : memref<8x128xf32, #tpu.memory_space<vmem>>, vector<8x128xf32>,
    } else {
    }
    %c0_178 = arith.constant 0 : index
    %c0_179 = arith.constant 0 : index
    %659 = vector.load %arg13[%c0_178, %c0_179] : memref<8x128xf32, #tpu.memory_space<vmem>>, vector<8x128xf32>
    %660 = arith.truncf %659 : vector<8x128xf32> to vector<8x128xbf16>
    %cst_180 = arith.constant dense<0.000000e+00> : vector<8x128xf32>
    %661 = tpu.matmul %660, %10, %cst_180 {dimension_numbers = #tpu.dot_dimension_numbers<[1], [0], [0], [1], [0, 0, 1, 1], [], []>} : vector<8x128xbf16>, vector<128x128xbf16>, vector<8x128xf32> -> vector<8x128xf32>
    %662 = arith.truncf %623 : vector<8x32xf32> to vector<8x32xbf16>
    %cst_181 = arith.constant dense<0.000000e+00> : vector<8x128xf32>
    %663 = tpu.matmul %662, %13, %cst_181 {dimension_numbers = #tpu.dot_dimension_numbers<[1], [0], [0], [1], [0, 0, 1, 1], [], []>} : vector<8x32xbf16>, vector<32x128xbf16>, vector<8x128xf32> -> vector<8x128xf32>
    %664 = arith.addf %661, %663 : vector<8x128xf32>
    %665 = arith.addf %664, %19 : vector<8x128xf32>
    %666 = arith.negf %665 : vector<8x128xf32>
    %667 = math.exp %666 : vector<8x128xf32>
    %cst_182 = arith.constant 1.000000e+00 : f32
    %668 = vector.broadcast %cst_182 : f32 to vector<8x128xf32>
    %669 = arith.addf %668, %667 : vector<8x128xf32>
    %670 = arith.divf %668, %669 : vector<8x128xf32>
    %671 = vector.extract_strided_slice %670 {offsets = [0, 0], sizes = [8, 32], strides = [1, 1]} : vector<8x128xf32> to vector<8x32xf32>
    %672 = vector.extract_strided_slice %670 {offsets = [0, 32], sizes = [8, 32], strides = [1, 1]} : vector<8x128xf32> to vector<8x32xf32>
    %673 = vector.extract_strided_slice %670 {offsets = [0, 64], sizes = [8, 32], strides = [1, 1]} : vector<8x128xf32> to vector<8x32xf32>
    %674 = vector.extract_strided_slice %665 {offsets = [0, 96], sizes = [8, 32], strides = [1, 1]} : vector<8x128xf32> to vector<8x32xf32>
    %675 = math.tanh %674 : vector<8x32xf32>
    %676 = arith.mulf %672, %621 : vector<8x32xf32>
    %677 = arith.mulf %671, %675 : vector<8x32xf32>
    %678 = arith.addf %676, %677 : vector<8x32xf32>
    %679 = math.tanh %678 : vector<8x32xf32>
    %680 = arith.mulf %673, %679 : vector<8x32xf32>
    %681 = arith.truncf %680 : vector<8x32xf32> to vector<8x32xbf16>
    %cst_183 = arith.constant dense<0.000000e+00> : vector<8x128xf32>
    %682 = tpu.matmul %681, %11, %cst_183 {dimension_numbers = #tpu.dot_dimension_numbers<[1], [0], [0], [1], [0, 0, 1, 1], [], []>} : vector<8x32xbf16>, vector<32x128xbf16>, vector<8x128xf32> -> vector<8x128xf32>
    %683 = arith.truncf %644 : vector<8x32xf32> to vector<8x32xbf16>
    %cst_184 = arith.constant dense<0.000000e+00> : vector<8x128xf32>
    %684 = tpu.matmul %683, %15, %cst_184 {dimension_numbers = #tpu.dot_dimension_numbers<[1], [0], [0], [1], [0, 0, 1, 1], [], []>} : vector<8x32xbf16>, vector<32x128xbf16>, vector<8x128xf32> -> vector<8x128xf32>
    %685 = arith.addf %682, %684 : vector<8x128xf32>
    %686 = arith.addf %685, %23 : vector<8x128xf32>
    %687 = arith.negf %686 : vector<8x128xf32>
    %688 = math.exp %687 : vector<8x128xf32>
    %cst_185 = arith.constant 1.000000e+00 : f32
    %689 = vector.broadcast %cst_185 : f32 to vector<8x128xf32>
    %690 = arith.addf %689, %688 : vector<8x128xf32>
    %691 = arith.divf %689, %690 : vector<8x128xf32>
    %692 = vector.extract_strided_slice %691 {offsets = [0, 0], sizes = [8, 32], strides = [1, 1]} : vector<8x128xf32> to vector<8x32xf32>
    %693 = vector.extract_strided_slice %691 {offsets = [0, 32], sizes = [8, 32], strides = [1, 1]} : vector<8x128xf32> to vector<8x32xf32>
    %694 = vector.extract_strided_slice %691 {offsets = [0, 64], sizes = [8, 32], strides = [1, 1]} : vector<8x128xf32> to vector<8x32xf32>
    %695 = vector.extract_strided_slice %686 {offsets = [0, 96], sizes = [8, 32], strides = [1, 1]} : vector<8x128xf32> to vector<8x32xf32>
    %696 = math.tanh %695 : vector<8x32xf32>
    %697 = arith.mulf %693, %642 : vector<8x32xf32>
    %698 = arith.mulf %692, %696 : vector<8x32xf32>
    %699 = arith.addf %697, %698 : vector<8x32xf32>
    %700 = math.tanh %699 : vector<8x32xf32>
    %701 = arith.mulf %694, %700 : vector<8x32xf32>
    %702 = arith.truncf %701 : vector<8x32xf32> to vector<8x32xbf16>
    %cst_186 = arith.constant dense<0.000000e+00> : vector<8x128xf32>
    %703 = tpu.matmul %702, %24, %cst_186 {dimension_numbers = #tpu.dot_dimension_numbers<[1], [0], [0], [1], [0, 0, 1, 1], [], []>} : vector<8x32xbf16>, vector<32x128xbf16>, vector<8x128xf32> -> vector<8x128xf32>
    %704 = arith.addf %703, %27 : vector<8x128xf32>
    %c6 = arith.constant 6 : index
    %c0_187 = arith.constant 0 : index
    %c0_188 = arith.constant 0 : index
    %705 = vector.load %arg12[%c6, %c0_187, %c0_188] : memref<8x8x128xf32, #tpu.memory_space<vmem>>, vector<1x8x128xf32>
    %706 = vector.shape_cast %705 : vector<1x8x128xf32> to vector<8x128xf32>
    %707 = vector.shape_cast %704 : vector<8x128xf32> to vector<1x8x128xf32>
    tpu.vector_store %arg12[%c6, %c0_187, %c0_188], %707 {strides = array<i32>} : memref<8x8x128xf32, #tpu.memory_space<vmem>>, vector<1x8x128xf32>,
    %c6_189 = arith.constant 6 : index
    %708 = memref.load %arg2[%c6_189] : memref<8xi32, #tpu.memory_space<smem>>
    %c0_i32_190 = arith.constant 0 : i32
    %709 = arith.cmpi ne, %708, %c0_i32_190 : i32
    %710 = arith.extui %709 : i1 to i32
    %c0_i32_191 = arith.constant 0 : i32
    %711 = arith.cmpi ne, %710, %c0_i32_191 : i32
    scf.if %711 {
      %c6_206 = arith.constant 6 : index
      %c0_207 = arith.constant 0 : index
      %c0_208 = arith.constant 0 : index
      %765 = vector.load %arg1[%c6_206, %c0_207, %c0_208] : memref<8x8x128xf32, #tpu.memory_space<vmem>>, vector<1x8x128xf32>
      %766 = vector.shape_cast %765 : vector<1x8x128xf32> to vector<8x128xf32>
      %c0_209 = arith.constant 0 : index
      %c0_210 = arith.constant 0 : index
      %767 = vector.load %arg13[%c0_209, %c0_210] : memref<8x128xf32, #tpu.memory_space<vmem>>, vector<8x128xf32>
      tpu.vector_store %arg13[%c0_209, %c0_210], %766 {strides = array<i32>} : memref<8x128xf32, #tpu.memory_space<vmem>>, vector<8x128xf32>,
    } else {
    }
    %c6_192 = arith.constant 6 : index
    %712 = memref.load %arg2[%c6_192] : memref<8xi32, #tpu.memory_space<smem>>
    %c0_i32_193 = arith.constant 0 : i32
    %713 = arith.cmpi eq, %712, %c0_i32_193 : i32
    %714 = arith.extui %713 : i1 to i32
    %c0_i32_194 = arith.constant 0 : i32
    %715 = arith.cmpi ne, %714, %c0_i32_194 : i32
    scf.if %715 {
      %765 = arith.select %371, %704, %372 : vector<8x128xi1>, vector<8x128xf32>
      %cst_206 = arith.constant dense<0xFF800000> : vector<8xf32>
      %766 = vector.multi_reduction <maximumf>, %765, %cst_206 [1] : vector<8x128xf32> to vector<8xf32>
      %767 = vector.shape_cast %766 : vector<8xf32> to vector<8x1xf32>
      %768 = vector.broadcast %767 : vector<8x1xf32> to vector<8x128xf32>
      %769 = arith.cmpf oge, %765, %768 : vector<8x128xf32>
      %770 = arith.select %769, %369, %373 : vector<8x128xi1>, vector<8x128xf32>
      %cst_207 = arith.constant dense<0x7F800000> : vector<8xf32>
      %771 = vector.multi_reduction <minimumf>, %770, %cst_207 [1] : vector<8x128xf32> to vector<8xf32>
      %772 = vector.shape_cast %771 : vector<8xf32> to vector<8x1xf32>
      %773 = vector.broadcast %772 : vector<8x1xf32> to vector<8x128xf32>
      %774 = arith.cmpf oeq, %369, %773 : vector<8x128xf32>
      %775 = arith.extui %774 : vector<8x128xi1> to vector<8x128xi32>
      %776 = arith.sitofp %775 : vector<8x128xi32> to vector<8x128xf32>
      %c0_208 = arith.constant 0 : index
      %c0_209 = arith.constant 0 : index
      %777 = vector.load %arg13[%c0_208, %c0_209] : memref<8x128xf32, #tpu.memory_space<vmem>>, vector<8x128xf32>
      tpu.vector_store %arg13[%c0_208, %c0_209], %776 {strides = array<i32>} : memref<8x128xf32, #tpu.memory_space<vmem>>, vector<8x128xf32>,
    } else {
    }
    %c0_195 = arith.constant 0 : index
    %c0_196 = arith.constant 0 : index
    %716 = vector.load %arg13[%c0_195, %c0_196] : memref<8x128xf32, #tpu.memory_space<vmem>>, vector<8x128xf32>
    %717 = arith.truncf %716 : vector<8x128xf32> to vector<8x128xbf16>
    %cst_197 = arith.constant dense<0.000000e+00> : vector<8x128xf32>
    %718 = tpu.matmul %717, %10, %cst_197 {dimension_numbers = #tpu.dot_dimension_numbers<[1], [0], [0], [1], [0, 0, 1, 1], [], []>} : vector<8x128xbf16>, vector<128x128xbf16>, vector<8x128xf32> -> vector<8x128xf32>
    %719 = arith.truncf %680 : vector<8x32xf32> to vector<8x32xbf16>
    %cst_198 = arith.constant dense<0.000000e+00> : vector<8x128xf32>
    %720 = tpu.matmul %719, %13, %cst_198 {dimension_numbers = #tpu.dot_dimension_numbers<[1], [0], [0], [1], [0, 0, 1, 1], [], []>} : vector<8x32xbf16>, vector<32x128xbf16>, vector<8x128xf32> -> vector<8x128xf32>
    %721 = arith.addf %718, %720 : vector<8x128xf32>
    %722 = arith.addf %721, %19 : vector<8x128xf32>
    %723 = arith.negf %722 : vector<8x128xf32>
    %724 = math.exp %723 : vector<8x128xf32>
    %cst_199 = arith.constant 1.000000e+00 : f32
    %725 = vector.broadcast %cst_199 : f32 to vector<8x128xf32>
    %726 = arith.addf %725, %724 : vector<8x128xf32>
    %727 = arith.divf %725, %726 : vector<8x128xf32>
    %728 = vector.extract_strided_slice %727 {offsets = [0, 0], sizes = [8, 32], strides = [1, 1]} : vector<8x128xf32> to vector<8x32xf32>
    %729 = vector.extract_strided_slice %727 {offsets = [0, 32], sizes = [8, 32], strides = [1, 1]} : vector<8x128xf32> to vector<8x32xf32>
    %730 = vector.extract_strided_slice %727 {offsets = [0, 64], sizes = [8, 32], strides = [1, 1]} : vector<8x128xf32> to vector<8x32xf32>
    %731 = vector.extract_strided_slice %722 {offsets = [0, 96], sizes = [8, 32], strides = [1, 1]} : vector<8x128xf32> to vector<8x32xf32>
    %732 = math.tanh %731 : vector<8x32xf32>
    %733 = arith.mulf %729, %678 : vector<8x32xf32>
    %734 = arith.mulf %728, %732 : vector<8x32xf32>
    %735 = arith.addf %733, %734 : vector<8x32xf32>
    %736 = math.tanh %735 : vector<8x32xf32>
    %737 = arith.mulf %730, %736 : vector<8x32xf32>
    %738 = arith.truncf %737 : vector<8x32xf32> to vector<8x32xbf16>
    %cst_200 = arith.constant dense<0.000000e+00> : vector<8x128xf32>
    %739 = tpu.matmul %738, %11, %cst_200 {dimension_numbers = #tpu.dot_dimension_numbers<[1], [0], [0], [1], [0, 0, 1, 1], [], []>} : vector<8x32xbf16>, vector<32x128xbf16>, vector<8x128xf32> -> vector<8x128xf32>
    %740 = arith.truncf %701 : vector<8x32xf32> to vector<8x32xbf16>
    %cst_201 = arith.constant dense<0.000000e+00> : vector<8x128xf32>
    %741 = tpu.matmul %740, %15, %cst_201 {dimension_numbers = #tpu.dot_dimension_numbers<[1], [0], [0], [1], [0, 0, 1, 1], [], []>} : vector<8x32xbf16>, vector<32x128xbf16>, vector<8x128xf32> -> vector<8x128xf32>
    %742 = arith.addf %739, %741 : vector<8x128xf32>
    %743 = arith.addf %742, %23 : vector<8x128xf32>
    %744 = arith.negf %743 : vector<8x128xf32>
    %745 = math.exp %744 : vector<8x128xf32>
    %cst_202 = arith.constant 1.000000e+00 : f32
    %746 = vector.broadcast %cst_202 : f32 to vector<8x128xf32>
    %747 = arith.addf %746, %745 : vector<8x128xf32>
    %748 = arith.divf %746, %747 : vector<8x128xf32>
    %749 = vector.extract_strided_slice %748 {offsets = [0, 0], sizes = [8, 32], strides = [1, 1]} : vector<8x128xf32> to vector<8x32xf32>
    %750 = vector.extract_strided_slice %748 {offsets = [0, 32], sizes = [8, 32], strides = [1, 1]} : vector<8x128xf32> to vector<8x32xf32>
    %751 = vector.extract_strided_slice %748 {offsets = [0, 64], sizes = [8, 32], strides = [1, 1]} : vector<8x128xf32> to vector<8x32xf32>
    %752 = vector.extract_strided_slice %743 {offsets = [0, 96], sizes = [8, 32], strides = [1, 1]} : vector<8x128xf32> to vector<8x32xf32>
    %753 = math.tanh %752 : vector<8x32xf32>
    %754 = arith.mulf %750, %699 : vector<8x32xf32>
    %755 = arith.mulf %749, %753 : vector<8x32xf32>
    %756 = arith.addf %754, %755 : vector<8x32xf32>
    %757 = math.tanh %756 : vector<8x32xf32>
    %758 = arith.mulf %751, %757 : vector<8x32xf32>
    %759 = arith.truncf %758 : vector<8x32xf32> to vector<8x32xbf16>
    %cst_203 = arith.constant dense<0.000000e+00> : vector<8x128xf32>
    %760 = tpu.matmul %759, %24, %cst_203 {dimension_numbers = #tpu.dot_dimension_numbers<[1], [0], [0], [1], [0, 0, 1, 1], [], []>} : vector<8x32xbf16>, vector<32x128xbf16>, vector<8x128xf32> -> vector<8x128xf32>
    %761 = arith.addf %760, %27 : vector<8x128xf32>
    %c7 = arith.constant 7 : index
    %c0_204 = arith.constant 0 : index
    %c0_205 = arith.constant 0 : index
    %762 = vector.load %arg12[%c7, %c0_204, %c0_205] : memref<8x8x128xf32, #tpu.memory_space<vmem>>, vector<1x8x128xf32>
    %763 = vector.shape_cast %762 : vector<1x8x128xf32> to vector<8x128xf32>
    %764 = vector.shape_cast %761 : vector<8x128xf32> to vector<1x8x128xf32>
    tpu.vector_store %arg12[%c7, %c0_204, %c0_205], %764 {strides = array<i32>} : memref<8x8x128xf32, #tpu.memory_space<vmem>>, vector<1x8x128xf32>,
    return
  }
}

</mosaic_0001>

<bundles_post_ra>
// kernel: seq2seq_forward.1
= control target key start
LH: loop header
LB: loop body
LE: loop exit
PB: predicated region body
PF: predicated region fallthrough
CT: control target
= control target key end

     0   :  { %17 = vsyncpa [#allocation4], 0  ;;  %s6296_s0 = inlined_call_operand.vmem [shape: f32[64,32], index: 0, kind: input, shape index: {}]   ;;  %s6297_s1 = inlined_call_operand.vmem [shape: f32[8,8,128], index: 1, kind: input, shape index: {}]   ;;  %s6298_s2 = inlined_call_operand.vmem [shape: s32[8], index: 2, kind: input, shape index: {}]   ;;  %s6299_s3 = inlined_call_operand.vmem [shape: bf16[2,32,128], index: 3, kind: input, shape index: {}]   ;;  %s6300_s4 = inlined_call_operand.vmem [shape: bf16[2,32,128], index: 4, kind: input, shape index: {}]   ;;  %s6301_s5 = inlined_call_operand.vmem [shape: f32[2,1,128], index: 5, kind: input, shape index: {}]   ;;  %s6302_s6 = inlined_call_operand.vmem [shape: bf16[128,128], index: 6, kind: input, shape index: {}]   ;;  %s6303_s7 = inlined_call_operand.vmem [shape: bf16[32,128], index: 7, kind: input, shape index: {}]   ;;  %s6304_s8 = inlined_call_operand.vmem [shape: bf16[2,32,128], index: 8, kind: input, shape index: {}]   ;;  %s6305_s9 = inlined_call_operand.vmem [shape: f32[2,1,128], index: 9, kind: input, shape index: {}]   ;;  %s6306_s10 = inlined_call_operand.vmem [shape: bf16[32,128], index: 10, kind: input, shape index: {}]   ;;  %s6307_s11 = inlined_call_operand.vmem [shape: f32[1,128], index: 11, kind: input, shape index: {}]   ;;  %s6308_s12 = inlined_call_operand.vmem [shape: f32[8,8,128], index: 12, kind: output, shape index: {}]  }
   0x1   :  { %s28_s23 = sshll.u32 %s6298_s2, 4  ;;  %s29_s23 = int_to_ptr.vmem [resolvable:$true] %s28_s23 }
   0x2   :  { %s5132_s24 = scalar_lea.vmem %s29_s23, 16  ;;  %p5137_p1 = scmp.lt.s32.totalorder %s29_s23, %s29_s23 }
   0x3   :  { %p5133_p0 = scmp.ne.s32.totalorder %s29_s23, %s5132_s24  ;;  %p5138_p2 = scmp.lt.s32.totalorder %s5132_s24, %s5132_s24 }
   0x5   :  { %p5139_p3 = por %p5138_p2, %p5137_p1 }
   0x7   :  { %p5140_p4 = pnand %p5139_p3, %p5133_p0 }
   0x9   :  { %5143 = shalt.err (!%p5140_p4)
}
   0xa   :  { %s5146_s25 = smov [#allocation3]  }
   0xb   :  { %31 = dma.vmem_to_smem %s29_s23, 16, %s5146_s25, [#allocation4]  }
   0xc   :  { %5144 = dma.done.wait [#allocation4], 16  }
   0xd   :  { %5145 = vsyncadd [#allocation4], 4294967280 }
   0xe   :  { %53 = sfence }
   0xf   :  { %v4859_v0 = vld [vmem:[%s6299_s3] sm:$0xff]   ;;  %v5147_v1 = vmov 0.0   ;;  %v4861_v3 = vld [vmem:[%s6299_s3 + $0x8] sm:$0xff]   ;;  %vm167_vm0 = vcmask 261120   ;;  %v134_v7 = vld [vmem:[%s6296_s0 + $0x10] sm:$0xff]  ;;  %vm5148_vm1 = vmmov 0  }
  0x10   :  { %4291 = vmatprep.subr.bf16.mxu1 %v5147_v1  ;;  %1749 = vst [vmem:[%s6308_s12] sm:$0xff] %v5147_v1  ;;  %v5237_v2 = vld [vmem:[%s6300_s4] sm:$0xff]   ;;  %4279 = vmatprep.subr.bf16.mxu0 %v4859_v0  ;;  %v5246_v4 = vld [vmem:[%s6300_s4 + $0x8] sm:$0xff]   ;;  %v135_v9 = vld [vmem:[%s6296_s0 + $0x18] sm:$0xff]  ;;  %v5149_v11 = vmov 0   ;;  %s5150_s27 = smov 32   ;;  %s3976_s20 = sld [smem:[#allocation3 + $0x1]] }
  0x11   :  { %4280 = vmatpush3.bf16.msra.mxu0 %v4859_v0  ;;  %4292 = vmatpush3.bf16.msra.mxu1 %v5237_v2  ;;  %v132_v5 = vld [vmem:[%s6296_s0] sm:$0xff]  ;;  %v133_v6 = vld [vmem:[%s6296_s0 + $0x8] sm:$0xff]  ;;  %v141_v10 = vpack.c.bf16 %v135_v9, %v134_v7  ;;  %v5290_v33 = vld [vmem:[%s6300_s4 + $0x10] sm:$0xff]  }
  0x12   :  { %4281 = vmatprep.subr.bf16.mxu0 %v4861_v3  ;;  %4293 = vmatprep.subr.bf16.mxu1 %v5147_v1  ;;  %v140_v8 = vpack.c.bf16 %v133_v6, %v132_v5  ;;  %v5273_v12 = vld [vmem:[%s6301_s5] ss:$0 sm:$0xff]  ;;  %v5295_v34 = vld [vmem:[%s6299_s3 + $0x10] sm:$0xff]   ;;  %v137_v36 = vld [vmem:[%s6296_s0 + $0x28] sm:$0xff] }
  0x13   :  { %4295 = vmatprep.mubr.msk.bf16.mxu1 %vm5148_vm1, %v5147_v1  ;;  %v136_v35 = vld [vmem:[%s6296_s0 + $0x20] sm:$0xff]  ;;  %v138_v37 = vld [vmem:[%s6296_s0 + $0x30] sm:$0xff]  ;;  %v5311_v39 = vld [vmem:[%s6300_s4 + $0x18] sm:$0xff]  }
  0x14   :  { %4283 = vmatprep.mubr.msk.bf16.mxu0 %vm167_vm0, %v140_v8  ;;  %v142_v38 = vpack.c.bf16 %v137_v36, %v136_v35  ;;  %v139_v40 = vld [vmem:[%s6296_s0 + $0x38] sm:$0xff]  ;;  %s5151_s0 = smov 64   ;;  %v5366_v57 = vld [vmem:[%s6301_s5 + $0x1] ss:$0 sm:$0xff] }
  0x15   :  { %4282 = vmatpush3.bf16.msra.mxu0 %v4861_v3  ;;  %4294 = vmatpush3.bf16.msra.mxu1 %v5246_v4  ;;  %v5319_v41 = vld [vmem:[%s6299_s3 + $0x18] sm:$0xff]   ;;  %v143_v42 = vpack.c.bf16 %v139_v40, %v138_v37 }
  0x16   :  { %4299 = vmatprep.subr.bf16.mxu1 %v5147_v1  ;;  %4307 = vmatprep.subr.bf16.mxu0 %v5147_v1  ;;  %p3977_p5 = scmp.eq.s32.totalorder %s3976_s20, 0 }
  0x18   :  { %4284 = vmatmul.mubr.msk.bf16.vlgmr.msra.gmra.mrb[0].mxu0 %vm167_vm0, %v141_v10  ;;  %4296 = vmatmul.mubr.bf16.vlgmr.msra.gmra.mrb[0].mxu1 %v5149_v11 }
  0x19   :  { %4303 = vmatprep.mubr.msk.bf16.mxu1 %vm5148_vm1, %v5147_v1  ;;  %4300 = vmatpush3.bf16.msra.mxu1 %v5290_v33 }
  0x1a   :  { %4308 = vmatpush3.bf16.msra.mxu0 %v5295_v34  ;;  %4301 = vmatprep.subr.bf16.mxu1 %v5147_v1 }
  0x1b   :  { %4309 = vmatprep.subr.bf16.mxu0 %v5147_v1  ;;  %4287 = vmatprep.mubr.msk.bf16.mxu0 %vm167_vm0, %v142_v38 }
  0x1d   :  { %4302 = vmatpush3.bf16.msra.mxu1 %v5311_v39 }
  0x1e   :  { %4310 = vmatpush3.bf16.msra.mxu0 %v5319_v41  ;;  %4315 = vmatprep.subr.bf16.mxu1 %v5147_v1 }
  0x1f   :  { %4323 = vmatprep.subr.bf16.mxu0 %v5147_v1 }
  0x20   :  { %4288 = vmatmul.mubr.msk.bf16.gmra.mrb[4].mxu0 %vm167_vm0, %v143_v42  ;;  %4304 = vmatmul.mubr.bf16.vlgmr.msra.gmra.mrb[4].mxu1 %v5149_v11 }
  0x21   :  { %4311 = vmatprep.mubr.msk.bf16.mxu0 %vm5148_vm1, %v5147_v1  ;;  %4316 = vmatpush3.bf16.msra.mxu1 %v5237_v2 }
  0x22   :  { %4319 = vmatprep.mubr.msk.bf16.mxu1 %vm5148_vm1, %v5147_v1  ;;  %4317 = vmatprep.subr.bf16.mxu1 %v5147_v1 }
  0x25   :  { %4318 = vmatpush3.bf16.msra.mxu1 %v5246_v4 }
  0x26   :  { %4331 = vmatprep.subr.bf16.mxu1 %v5147_v1 }
  0xeb   :  { %v5275_v13 = vpop.f32.mrb[0].mxu0  ;;  %v294_v14 = vpop.f32.mrb[0].mxu1 }
  0xec   :  { %v214_v15 = vpop.f32.mrb[1].mxu0  ;;  %v4297_v16 = vpop.f32.mrb[1].mxu1 }
  0xed   :  { %v215_v17 = vadd.f32 %v5273_v12, %v214_v15  ;;  %v5278_v18 = vpop.f32.mrb[2].mxu0  ;;  %v297_v19 = vpop.f32.mrb[2].mxu1 }
  0xee   :  { %v5280_v20 = vpop.f32.mrb[3].mxu0  ;;  %v4298_v21 = vpop.f32.mrb[3].mxu1 }
  0xef   :  { %v300_v22 = vadd.f32 %v294_v14, %v215_v17  ;;  %v218_v56 = vadd.f32 %v5273_v12, %v5280_v20 }
  0xf1   :  { %4883 = vtanh.f32 %v300_v22  ;;  %v3911_v24 = vmul.f32 -1.442695, %v300_v22 }
  0xf3   :  { %4885 = vpow2.f32 %v3911_v24  ;;  %v5339_v47 = vpop.f32.mrb[4].mxu0  ;;  %v372_v51 = vpop.f32.mrb[4].mxu1 }
  0xf4   :  { %v5341_v48 = vpop.f32.mrb[5].mxu0  ;;  %v4305_v52 = vpop.f32.mrb[5].mxu1 }
  0xf5   :  { %v5343_v49 = vpop.f32.mrb[6].mxu0  ;;  %v375_v53 = vpop.f32.mrb[6].mxu1 }
  0xf6   :  { %v5345_v50 = vpop.f32.mrb[7].mxu0  ;;  %v4306_v54 = vpop.f32.mrb[7].mxu1 }
  0xfb   :  { %v4884_v23 = vpop.eup %4883 }
  0xfc   :  { %310 = vrot.lane.b32.xlu0 %v4884_v23, %s5150_s27 }
  0xfd   :  { %v4886_v25 = vpop.eup %4885 }
  0xfe   :  { %v304_v26 = vadd.f32 1.0, %v4886_v25 }
 0x100   :  { %4887 = vrcp.f32 %v304_v26 }
 0x10a   :  { %v4888_v27 = vpop.eup %4887 }
 0x10b   :  { %v308_v30 = vmul.f32 0.0, %v4888_v27 }
 0x16e   :  { %v311_v28 = vpop.permute.xlu0 %310 }
 0x16f   :  { %v313_v29 = vmul.f32 %v4888_v27, %v311_v28 }
 0x171   :  { %315 = vrot.lane.b32.xlu0 %v313_v29, %s5150_s27 }
 0x1e3   :  { %v316_v31 = vpop.permute.xlu0 %315 }
 0x1e4   :  { %v5284_v32 = vadd.f32 %v316_v31, %v308_v30 }
 0x1e6   :  { %4889 = vtanh.f32 %v5284_v32 }
 0x1f0   :  { %v4890_v43 = vpop.eup %4889 }
 0x1f1   :  { %321 = vrot.lane.b32.xlu1 %v4890_v43, %s5150_s27 }
 0x263   :  { %v322_v44 = vpop.permute.xlu1 %321 }
 0x264   :  { %v324_v45 = vmul.f32 %v4888_v27, %v322_v44 }
 0x266   :  { %v325_v46 = vpack.c.bf16 %v324_v45, %v324_v45 }
 0x268   :  { %379 = vrot.lane.b32.xlu1 %v325_v46, %s5151_s0 }
 0x2da   :  { %v380_v55 = vpop.permute.xlu1 %379 }
 0x2db   :  { %4312 = vmatmul.mubr.msk.bf16.vlgmr.msra.gmra.mrb[8].mxu0 %vm167_vm0, %v380_v55  ;;  %4320 = vmatmul.mubr.msk.bf16.vlgmr.msra.gmra.mrb[8].mxu1 %vm167_vm0, %v380_v55 }
 0x2dc   :  { %4332 = vmatpush3.bf16.msra.mxu1 %v5295_v34  ;;  %4324 = vmatpush3.bf16.msra.mxu0 %v5290_v33 }
 0x2dd   :  { %4333 = vmatprep.subr.bf16.mxu1 %v5147_v1  ;;  %4325 = vmatprep.subr.bf16.mxu0 %v5147_v1 }
 0x2de   :  { %4335 = vmatprep.mubr.msk.bf16.mxu1 %vm5148_vm1, %v5147_v1  ;;  %4327 = vmatprep.mubr.msk.bf16.mxu0 %vm5148_vm1, %v5147_v1 }
 0x2e0   :  { %4334 = vmatpush3.bf16.msra.mxu1 %v5319_v41  ;;  %4326 = vmatpush3.bf16.msra.mxu0 %v5311_v39 }
 0x2e1   :  { %4339 = vmatprep.subr.bf16.mxu0 %v5147_v1  ;;  %4347 = vmatprep.subr.bf16.mxu1 %v5147_v1 }
 0x3ae   :  { %v430_v58 = vpop.f32.mrb[8].mxu0  ;;  %v495_v59 = vpop.f32.mrb[8].mxu1 }
 0x3af   :  { %v431_v60 = vadd.f32 %v430_v58, %v372_v51  ;;  %v501_v61 = vadd.f32 %v495_v59, %v218_v56  ;;  %v4313_v62 = vpop.f32.mrb[9].mxu0  ;;  %v4321_v63 = vpop.f32.mrb[9].mxu1 }
 0x3b0   :  { %v433_v0 = vpop.f32.mrb[10].mxu0  ;;  %v498_v3 = vpop.f32.mrb[10].mxu1 }
 0x3b1   :  { %v436_v5 = vadd.f32 %v5366_v57, %v431_v60  ;;  %4891 = vtanh.f32 %v501_v61  ;;  %v4314_v6 = vpop.f32.mrb[11].mxu0  ;;  %v4322_v7 = vpop.f32.mrb[11].mxu1  ;;  %v3919_v10 = vmul.f32 -1.442695, %v501_v61  ;;  %v223_v60 = vadd.f32 %v5275_v13, %v5273_v12 }
 0x3b3   :  { %4893 = vtanh.f32 %v436_v5  ;;  %v3917_v11 = vmul.f32 -1.442695, %v436_v5 }
 0x3b4   :  { %4895 = vpow2.f32 %v3919_v10 }
 0x3b5   :  { %4897 = vpow2.f32 %v3917_v11 }
 0x3bb   :  { %v4892_v8 = vpop.eup %4891 }
 0x3bc   :  { %511 = vrot.lane.b32.xlu1 %v4892_v8, %s5150_s27 }
 0x3bd   :  { %v4894_v9 = vpop.eup %4893 }
 0x3be   :  { %446 = vrot.lane.b32.xlu0 %v4894_v9, %s5150_s27  ;;  %v4896_v14 = vpop.eup %4895 }
 0x3bf   :  { %v4898_v15 = vpop.eup %4897  ;;  %v505_v16 = vadd.f32 1.0, %v4896_v14 }
 0x3c0   :  { %v440_v17 = vadd.f32 1.0, %v4898_v15 }
 0x3c1   :  { %4899 = vrcp.f32 %v505_v16 }
 0x3c2   :  { %4901 = vrcp.f32 %v440_v17 }
 0x3cb   :  { %v4900_v19 = vpop.eup %4899 }
 0x3cc   :  { %v4902_v22 = vpop.eup %4901  ;;  %v509_v25 = vmul.f32 %v4900_v19, %v5284_v32 }
 0x3cd   :  { %v444_v28 = vmul.f32 0.0, %v4902_v22 }
 0x42e   :  { %v512_v20 = vpop.permute.xlu1 %511 }
 0x42f   :  { %v514_v21 = vmul.f32 %v4900_v19, %v512_v20 }
 0x430   :  { %v447_v23 = vpop.permute.xlu0 %446 }
 0x431   :  { %v449_v24 = vmul.f32 %v4902_v22, %v447_v23  ;;  %516 = vrot.lane.b32.xlu1 %v514_v21, %s5150_s27 }
 0x433   :  { %451 = vrot.lane.b32.xlu0 %v449_v24, %s5150_s27 }
 0x4a3   :  { %v517_v26 = vpop.permute.xlu1 %516 }
 0x4a4   :  { %v5374_v27 = vadd.f32 %v517_v26, %v509_v25 }
 0x4a5   :  { %v452_v29 = vpop.permute.xlu0 %451 }
 0x4a6   :  { %4903 = vtanh.f32 %v5374_v27  ;;  %v5377_v30 = vadd.f32 %v452_v29, %v444_v28 }
 0x4a8   :  { %4905 = vtanh.f32 %v5377_v30 }
 0x4b0   :  { %v4904_v31 = vpop.eup %4903 }
 0x4b1   :  { %522 = vrot.lane.b32.xlu1 %v4904_v31, %s5150_s27 }
 0x4b2   :  { %v4906_v35 = vpop.eup %4905 }
 0x4b3   :  { %457 = vrot.lane.b32.xlu0 %v4906_v35, %s5150_s27 }
 0x523   :  { %v523_v36 = vpop.permute.xlu1 %522 }
 0x524   :  { %v525_v37 = vmul.f32 %v4900_v19, %v523_v36 }
 0x525   :  { %v458_v32 = vpop.permute.xlu0 %457 }
 0x526   :  { %v526_v38 = vpack.c.bf16 %v525_v37, %v525_v37  ;;  %v460_v40 = vmul.f32 %v4902_v22, %v458_v32 }
 0x528   :  { %v527_v42 = vpack.c.bf16 %v460_v40, %v460_v40  ;;  %575 = vrot.lane.b32.xlu1 %v526_v38, %s5151_s0 }
 0x52a   :  { %529 = vrot.lane.b32.xlu0 %v527_v42, %s5151_s0 }
 0x59a   :  { %v576_v43 = vpop.permute.xlu1 %575 }
 0x59b   :  { %4336 = vmatmul.mubr.msk.bf16.vlgmr.msra.gmra.mrb[12].mxu1 %vm167_vm0, %v576_v43 }
 0x59c   :  { %v530_v44 = vpop.permute.xlu0 %529  ;;  %4348 = vmatpush3.bf16.msra.mxu1 %v5290_v33  ;;  %4351 = vmatprep.mubr.msk.bf16.mxu1 %vm5148_vm1, %v5147_v1 }
 0x59d   :  { %4328 = vmatmul.mubr.msk.bf16.vlgmr.msra.gmra.mrb[12].mxu0 %vm167_vm0, %v530_v44  ;;  %4349 = vmatprep.subr.bf16.mxu1 %v5147_v1 }
 0x59e   :  { %4340 = vmatpush3.bf16.msra.mxu0 %v5237_v2  ;;  %4343 = vmatprep.mubr.msk.bf16.mxu0 %vm5148_vm1, %v5147_v1 }
 0x59f   :  { %4341 = vmatprep.subr.bf16.mxu0 %v5147_v1 }
 0x5a0   :  { %4350 = vmatpush3.bf16.msra.mxu1 %v5311_v39 }
 0x5a1   :  { %4363 = vmatprep.subr.bf16.mxu1 %v5147_v1 }
 0x5a2   :  { %4342 = vmatpush3.bf16.msra.mxu0 %v5246_v4 }
 0x5a3   :  { %4355 = vmatprep.subr.bf16.mxu0 %v5147_v1 }
 0x5a5   :  { %4344 = vmatmul.mubr.msk.bf16.vlgmr.msra.gmra.mrb[16].mxu0 %vm167_vm0, %v576_v43 }
 0x5a6   :  { %4356 = vmatpush3.bf16.msra.mxu0 %v5295_v34  ;;  %4359 = vmatprep.mubr.msk.bf16.mxu0 %vm5148_vm1, %v5147_v1 }
 0x5a7   :  { %4357 = vmatprep.subr.bf16.mxu0 %v5147_v1 }
 0x5aa   :  { %4358 = vmatpush3.bf16.msra.mxu0 %v5319_v41 }
 0x5ab   :  { %4371 = vmatprep.subr.bf16.mxu0 %v5147_v1 }
 0x66e   :  { %v614_v45 = vpop.f32.mrb[12].mxu1 }
 0x66f   :  { %v4337_v46 = vpop.f32.mrb[13].mxu1 }
 0x670   :  { %v568_v51 = vpop.f32.mrb[12].mxu0  ;;  %v617_v52 = vpop.f32.mrb[14].mxu1  ;;  %v226_v46 = vadd.f32 %v5278_v18, %v5273_v12 }
 0x671   :  { %v615_v53 = vadd.f32 %v614_v45, %v568_v51  ;;  %v4329_v54 = vpop.f32.mrb[13].mxu0  ;;  %v4338_v55 = vpop.f32.mrb[15].mxu1 }
 0x672   :  { %v571_v56 = vpop.f32.mrb[14].mxu0 }
 0x673   :  { %v620_v58 = vadd.f32 %v5366_v57, %v615_v53  ;;  %v4330_v59 = vpop.f32.mrb[15].mxu0 }
 0x675   :  { %4907 = vtanh.f32 %v620_v58  ;;  %v3922_v7 = vmul.f32 -1.442695, %v620_v58 }
 0x678   :  { %v679_v61 = vpop.f32.mrb[16].mxu0 }
 0x679   :  { %v685_v62 = vadd.f32 %v679_v61, %v223_v60  ;;  %v4345_v63 = vpop.f32.mrb[17].mxu0 }
 0x67a   :  { %v682_v0 = vpop.f32.mrb[18].mxu0 }
 0x67b   :  { %4909 = vtanh.f32 %v685_v62  ;;  %v4346_v3 = vpop.f32.mrb[19].mxu0  ;;  %v3924_v8 = vmul.f32 -1.442695, %v685_v62 }
 0x67c   :  { %4911 = vpow2.f32 %v3922_v7 }
 0x67d   :  { %4913 = vpow2.f32 %v3924_v8 }
 0x67f   :  { %v4908_v5 = vpop.eup %4907 }
 0x680   :  { %630 = vrot.lane.b32.xlu0 %v4908_v5, %s5150_s27 }
 0x685   :  { %v4910_v6 = vpop.eup %4909 }
 0x686   :  { %695 = vrot.lane.b32.xlu1 %v4910_v6, %s5150_s27  ;;  %v4912_v9 = vpop.eup %4911 }
 0x687   :  { %v624_v10 = vadd.f32 1.0, %v4912_v9  ;;  %v4914_v11 = vpop.eup %4913 }
 0x688   :  { %v689_v13 = vadd.f32 1.0, %v4914_v11 }
 0x689   :  { %4915 = vrcp.f32 %v624_v10 }
 0x68a   :  { %4917 = vrcp.f32 %v689_v13 }
 0x693   :  { %v4916_v14 = vpop.eup %4915 }
 0x694   :  { %v4918_v17 = vpop.eup %4917  ;;  %v628_v21 = vmul.f32 %v4916_v14, %v5377_v30 }
 0x695   :  { %v693_v24 = vmul.f32 %v4918_v17, %v5374_v27 }
 0x6f2   :  { %v631_v15 = vpop.permute.xlu0 %630 }
 0x6f3   :  { %v633_v16 = vmul.f32 %v4916_v14, %v631_v15 }
 0x6f5   :  { %635 = vrot.lane.b32.xlu0 %v633_v16, %s5150_s27 }
 0x6f8   :  { %v696_v19 = vpop.permute.xlu1 %695 }
 0x6f9   :  { %v698_v20 = vmul.f32 %v4918_v17, %v696_v19 }
 0x6fb   :  { %700 = vrot.lane.b32.xlu1 %v698_v20, %s5150_s27 }
 0x767   :  { %v636_v22 = vpop.permute.xlu0 %635 }
 0x768   :  { %v5413_v23 = vadd.f32 %v636_v22, %v628_v21 }
 0x76a   :  { %4919 = vtanh.f32 %v5413_v23 }
 0x76d   :  { %v701_v25 = vpop.permute.xlu1 %700 }
 0x76e   :  { %v5417_v26 = vadd.f32 %v701_v25, %v693_v24 }
 0x770   :  { %4921 = vtanh.f32 %v5417_v26 }
 0x774   :  { %v4920_v28 = vpop.eup %4919 }
 0x775   :  { %641 = vrot.lane.b32.xlu0 %v4920_v28, %s5150_s27 }
 0x77a   :  { %v4922_v29 = vpop.eup %4921 }
 0x77b   :  { %706 = vrot.lane.b32.xlu1 %v4922_v29, %s5150_s27 }
 0x7e7   :  { %v642_v31 = vpop.permute.xlu0 %641 }
 0x7e8   :  { %v644_v30 = vmul.f32 %v4916_v14, %v642_v31 }
 0x7ea   :  { %v711_v35 = vpack.c.bf16 %v644_v30, %v644_v30 }
 0x7ec   :  { %713 = vrot.lane.b32.xlu0 %v711_v35, %s5151_s0 }
 0x7ed   :  { %v707_v36 = vpop.permute.xlu1 %706 }
 0x7ee   :  { %v709_v37 = vmul.f32 %v4918_v17, %v707_v36 }
 0x7f0   :  { %v710_v32 = vpack.c.bf16 %v709_v37, %v709_v37 }
 0x7f2   :  { %759 = vrot.lane.b32.xlu1 %v710_v32, %s5151_s0 }
 0x85e   :  { %v714_v27 = vpop.permute.xlu0 %713 }
 0x85f   :  { %4352 = vmatmul.mubr.msk.bf16.vlgmr.msra.gmra.mrb[16].mxu1 %vm167_vm0, %v714_v27 }
 0x860   :  { %4364 = vmatpush3.bf16.msra.mxu1 %v5237_v2  ;;  %4367 = vmatprep.mubr.msk.bf16.mxu1 %vm5148_vm1, %v5147_v1 }
 0x861   :  { %4365 = vmatprep.subr.bf16.mxu1 %v5147_v1 }
 0x864   :  { %4366 = vmatpush3.bf16.msra.mxu1 %v5246_v4  ;;  %v760_v38 = vpop.permute.xlu1 %759 }
 0x865   :  { %4360 = vmatmul.mubr.msk.bf16.vlgmr.msra.gmra.mrb[20].mxu0 %vm167_vm0, %v760_v38  ;;  %4379 = vmatprep.subr.bf16.mxu1 %v5147_v1 }
 0x866   :  { %4372 = vmatpush3.bf16.msra.mxu0 %v5290_v33  ;;  %4375 = vmatprep.mubr.msk.bf16.mxu0 %vm5148_vm1, %v5147_v1 }
 0x867   :  { %4368 = vmatmul.mubr.msk.bf16.vlgmr.msra.gmra.mrb[20].mxu1 %vm167_vm0, %v760_v38  ;;  %4373 = vmatprep.subr.bf16.mxu0 %v5147_v1 }
 0x868   :  { %4380 = vmatpush3.bf16.msra.mxu1 %v5295_v34  ;;  %4383 = vmatprep.mubr.msk.bf16.mxu1 %vm5148_vm1, %v5147_v1 }
 0x869   :  { %4381 = vmatprep.subr.bf16.mxu1 %v5147_v1 }
 0x86a   :  { %4374 = vmatpush3.bf16.msra.mxu0 %v5311_v39 }
 0x86b   :  { %4387 = vmatprep.subr.bf16.mxu0 %v5147_v1 }
 0x86c   :  { %4382 = vmatpush3.bf16.msra.mxu1 %v5319_v41 }
 0x86d   :  { %4395 = vmatprep.subr.bf16.mxu1 %v5147_v1 }
 0x932   :  { %v752_v40 = vpop.f32.mrb[16].mxu1 }
 0x933   :  { %v4353_v42 = vpop.f32.mrb[17].mxu1 }
 0x934   :  { %v755_v43 = vpop.f32.mrb[18].mxu1 }
 0x935   :  { %v4354_v44 = vpop.f32.mrb[19].mxu1 }
 0x938   :  { %v798_v45 = vpop.f32.mrb[20].mxu0 }
 0x939   :  { %v799_v51 = vadd.f32 %v798_v45, %v752_v40  ;;  %v4361_v52 = vpop.f32.mrb[21].mxu0 }
 0x93a   :  { %v801_v53 = vpop.f32.mrb[22].mxu0  ;;  %v863_v54 = vpop.f32.mrb[20].mxu1 }
 0x93b   :  { %v804_v55 = vadd.f32 %v5366_v57, %v799_v51  ;;  %v869_v56 = vadd.f32 %v863_v54, %v226_v46  ;;  %v4362_v58 = vpop.f32.mrb[23].mxu0  ;;  %v4369_v59 = vpop.f32.mrb[21].mxu1  ;;  %v231_v46 = vadd.f32 %v5273_v12, %v5341_v48 }
 0x93c   :  { %v866_v60 = vpop.f32.mrb[22].mxu1 }
 0x93d   :  { %4923 = vtanh.f32 %v804_v55  ;;  %v4370_v61 = vpop.f32.mrb[23].mxu1  ;;  %v3927_v18 = vmul.f32 -1.442695, %v804_v55  ;;  %v3929_v0 = vmul.f32 -1.442695, %v869_v56 }
 0x93e   :  { %4925 = vtanh.f32 %v869_v56 }
 0x93f   :  { %4927 = vpow2.f32 %v3927_v18 }
 0x940   :  { %4929 = vpow2.f32 %v3929_v0 }
 0x947   :  { %v4924_v62 = vpop.eup %4923 }
 0x948   :  { %v4926_v63 = vpop.eup %4925  ;;  %814 = vrot.lane.b32.xlu0 %v4924_v62, %s5150_s27 }
 0x949   :  { %879 = vrot.lane.b32.xlu1 %v4926_v63, %s5150_s27  ;;  %v4928_v3 = vpop.eup %4927 }
 0x94a   :  { %v4930_v5 = vpop.eup %4929  ;;  %v808_v6 = vadd.f32 1.0, %v4928_v3 }
 0x94b   :  { %v873_v7 = vadd.f32 1.0, %v4930_v5 }
 0x94c   :  { %4931 = vrcp.f32 %v808_v6 }
 0x94d   :  { %4933 = vrcp.f32 %v873_v7 }
 0x956   :  { %v4932_v8 = vpop.eup %4931 }
 0x957   :  { %v4934_v10 = vpop.eup %4933  ;;  %v812_v15 = vmul.f32 %v4932_v8, %v5413_v23 }
 0x958   :  { %v877_v16 = vmul.f32 %v4934_v10, %v5417_v26 }
 0x9ba   :  { %v815_v9 = vpop.permute.xlu0 %814 }
 0x9bb   :  { %v880_v11 = vpop.permute.xlu1 %879  ;;  %v817_v13 = vmul.f32 %v4932_v8, %v815_v9 }
 0x9bc   :  { %v882_v14 = vmul.f32 %v4934_v10, %v880_v11 }
 0x9bd   :  { %819 = vrot.lane.b32.xlu0 %v817_v13, %s5150_s27 }
 0x9be   :  { %884 = vrot.lane.b32.xlu1 %v882_v14, %s5150_s27 }
 0xa2f   :  { %v820_v17 = vpop.permute.xlu0 %819 }
 0xa30   :  { %v885_v19 = vpop.permute.xlu1 %884  ;;  %v5454_v20 = vadd.f32 %v820_v17, %v812_v15 }
 0xa31   :  { %v5456_v21 = vadd.f32 %v885_v19, %v877_v16 }
 0xa32   :  { %4935 = vtanh.f32 %v5454_v20 }
 0xa33   :  { %4937 = vtanh.f32 %v5456_v21 }
 0xa3c   :  { %v4936_v22 = vpop.eup %4935 }
 0xa3d   :  { %v4938_v24 = vpop.eup %4937  ;;  %825 = vrot.lane.b32.xlu0 %v4936_v22, %s5150_s27 }
 0xa3e   :  { %890 = vrot.lane.b32.xlu1 %v4938_v24, %s5150_s27 }
 0xaaf   :  { %v826_v25 = vpop.permute.xlu0 %825 }
 0xab0   :  { %v891_v23 = vpop.permute.xlu1 %890  ;;  %v828_v28 = vmul.f32 %v4932_v8, %v826_v25 }
 0xab1   :  { %v893_v26 = vmul.f32 %v4934_v10, %v891_v23 }
 0xab2   :  { %v895_v29 = vpack.c.bf16 %v828_v28, %v828_v28 }
 0xab3   :  { %v894_v31 = vpack.c.bf16 %v893_v26, %v893_v26 }
 0xab4   :  { %897 = vrot.lane.b32.xlu0 %v895_v29, %s5151_s0 }
 0xab5   :  { %943 = vrot.lane.b32.xlu1 %v894_v31, %s5151_s0 }
 0xb26   :  { %v898_v30 = vpop.permute.xlu0 %897 }
 0xb27   :  { %v944_v35 = vpop.permute.xlu1 %943  ;;  %4376 = vmatmul.mubr.msk.bf16.vlgmr.msra.gmra.mrb[24].mxu0 %vm167_vm0, %v898_v30 }
 0xb28   :  { %4384 = vmatmul.mubr.msk.bf16.vlgmr.msra.gmra.mrb[24].mxu1 %vm167_vm0, %v944_v35  ;;  %4388 = vmatpush3.bf16.msra.mxu0 %v5237_v2 }
 0xb29   :  { %4389 = vmatprep.subr.bf16.mxu0 %v5147_v1  ;;  %4391 = vmatprep.mubr.msk.bf16.mxu0 %vm5148_vm1, %v5147_v1 }
 0xb2a   :  { %4396 = vmatpush3.bf16.msra.mxu1 %v5290_v33  ;;  %4399 = vmatprep.mubr.msk.bf16.mxu1 %vm5148_vm1, %v5147_v1 }
 0xb2b   :  { %4397 = vmatprep.subr.bf16.mxu1 %v5147_v1 }
 0xb2c   :  { %4390 = vmatpush3.bf16.msra.mxu0 %v5246_v4 }
 0xb2d   :  { %4403 = vmatprep.subr.bf16.mxu0 %v5147_v1 }
 0xb2e   :  { %4398 = vmatpush3.bf16.msra.mxu1 %v5311_v39 }
 0xb2f   :  { %4392 = vmatmul.mubr.msk.bf16.vlgmr.msra.gmra.mrb[28].mxu0 %vm167_vm0, %v944_v35  ;;  %4411 = vmatprep.subr.bf16.mxu1 %v5147_v1  ;;  %v234_v35 = vadd.f32 %v5273_v12, %v5345_v50 }
 0xb30   :  { %4404 = vmatpush3.bf16.msra.mxu0 %v5295_v34  ;;  %4407 = vmatprep.mubr.msk.bf16.mxu0 %vm5148_vm1, %v5147_v1 }
 0xb31   :  { %4405 = vmatprep.subr.bf16.mxu0 %v5147_v1 }
 0xb34   :  { %4406 = vmatpush3.bf16.msra.mxu0 %v5319_v41 }
 0xb35   :  { %4419 = vmatprep.subr.bf16.mxu0 %v5147_v1 }
 0xbfa   :  { %v936_v36 = vpop.f32.mrb[24].mxu0 }
 0xbfb   :  { %v982_v37 = vpop.f32.mrb[24].mxu1  ;;  %v4377_v32 = vpop.f32.mrb[25].mxu0 }
 0xbfc   :  { %v983_v27 = vadd.f32 %v982_v37, %v936_v36  ;;  %v4385_v38 = vpop.f32.mrb[25].mxu1  ;;  %v939_v40 = vpop.f32.mrb[26].mxu0 }
 0xbfd   :  { %v985_v42 = vpop.f32.mrb[26].mxu1  ;;  %v4378_v43 = vpop.f32.mrb[27].mxu0 }
 0xbfe   :  { %v988_v44 = vadd.f32 %v5366_v57, %v983_v27  ;;  %v4386_v45 = vpop.f32.mrb[27].mxu1 }
 0xc00   :  { %4939 = vtanh.f32 %v988_v44  ;;  %v3932_v59 = vmul.f32 -1.442695, %v988_v44 }
 0xc02   :  { %v1047_v51 = vpop.f32.mrb[28].mxu0 }
 0xc03   :  { %v1053_v52 = vadd.f32 %v1047_v51, %v231_v46  ;;  %v4393_v53 = vpop.f32.mrb[29].mxu0 }
 0xc04   :  { %v1050_v54 = vpop.f32.mrb[30].mxu0 }
 0xc05   :  { %4941 = vtanh.f32 %v1053_v52  ;;  %v4394_v55 = vpop.f32.mrb[31].mxu0  ;;  %v3934_v60 = vmul.f32 -1.442695, %v1053_v52 }
 0xc06   :  { %4943 = vpow2.f32 %v3932_v59 }
 0xc07   :  { %4945 = vpow2.f32 %v3934_v60 }
 0xc0a   :  { %v4940_v56 = vpop.eup %4939 }
 0xc0b   :  { %998 = vrot.lane.b32.xlu0 %v4940_v56, %s5150_s27 }
 0xc0f   :  { %v4942_v58 = vpop.eup %4941 }
 0xc10   :  { %1063 = vrot.lane.b32.xlu1 %v4942_v58, %s5150_s27  ;;  %v4944_v61 = vpop.eup %4943 }
 0xc11   :  { %v992_v62 = vadd.f32 1.0, %v4944_v61  ;;  %v4946_v63 = vpop.eup %4945 }
 0xc12   :  { %v1057_v48 = vadd.f32 1.0, %v4946_v63 }
 0xc13   :  { %4947 = vrcp.f32 %v992_v62 }
 0xc14   :  { %4949 = vrcp.f32 %v1057_v48 }
 0xc1d   :  { %v4948_v18 = vpop.eup %4947 }
 0xc1e   :  { %v4950_v5 = vpop.eup %4949  ;;  %v996_v8 = vmul.f32 %v4948_v18, %v5454_v20 }
 0xc1f   :  { %v1061_v11 = vmul.f32 %v4950_v5, %v5456_v21 }
 0xc7d   :  { %v999_v0 = vpop.permute.xlu0 %998 }
 0xc7e   :  { %v1001_v3 = vmul.f32 %v4948_v18, %v999_v0 }
 0xc80   :  { %1003 = vrot.lane.b32.xlu0 %v1001_v3, %s5150_s27 }
 0xc82   :  { %v1064_v6 = vpop.permute.xlu1 %1063 }
 0xc83   :  { %v1066_v7 = vmul.f32 %v4950_v5, %v1064_v6 }
 0xc85   :  { %1068 = vrot.lane.b32.xlu1 %v1066_v7, %s5150_s27 }
 0xcf2   :  { %v1004_v9 = vpop.permute.xlu0 %1003 }
 0xcf3   :  { %v5493_v10 = vadd.f32 %v1004_v9, %v996_v8 }
 0xcf5   :  { %4951 = vtanh.f32 %v5493_v10 }
 0xcf7   :  { %v1069_v13 = vpop.permute.xlu1 %1068 }
 0xcf8   :  { %v5497_v14 = vadd.f32 %v1069_v13, %v1061_v11 }
 0xcfa   :  { %4953 = vtanh.f32 %v5497_v14 }
 0xcff   :  { %v4952_v15 = vpop.eup %4951 }
 0xd00   :  { %1009 = vrot.lane.b32.xlu0 %v4952_v15, %s5150_s27 }
 0xd04   :  { %v4954_v16 = vpop.eup %4953 }
 0xd05   :  { %1074 = vrot.lane.b32.xlu1 %v4954_v16, %s5150_s27  ;;  %v5549_v16 = vld [vmem:[%s6300_s4] sm:$0xff]  }
 0xd72   :  { %v1010_v17 = vpop.permute.xlu0 %1009 }
 0xd73   :  { %v1012_v19 = vmul.f32 %v4948_v18, %v1010_v17  ;;  %v5555_v17 = vld [vmem:[%s6308_s12] sm:$0xff] }
 0xd75   :  { %v1079_v20 = vpack.c.bf16 %v1012_v19, %v1012_v19  ;;  %v5567_v19 = vld [vmem:[%s6300_s4 + $0x8] sm:$0xff]  }
 0xd77   :  { %1081 = vrot.lane.b32.xlu0 %v1079_v20, %s5151_s0  ;;  %v1075_v22 = vpop.permute.xlu1 %1074 }
 0xd78   :  { %v1077_v24 = vmul.f32 %v4950_v5, %v1075_v22 }
 0xd7a   :  { %v1078_v25 = vpack.c.bf16 %v1077_v24, %v1077_v24 }
 0xd7c   :  { %1127 = vrot.lane.b32.xlu1 %v1078_v25, %s5151_s0 }
 0xde9   :  { %v1082_v21 = vpop.permute.xlu0 %1081 }
 0xdea   :  { %4400 = vmatmul.mubr.msk.bf16.vlgmr.msra.gmra.mrb[28].mxu1 %vm167_vm0, %v1082_v21 }
 0xdeb   :  { %4412 = vmatpush3.bf16.msra.mxu1 %v5237_v2  ;;  %4415 = vmatprep.mubr.msk.bf16.mxu1 %vm5148_vm1, %v5147_v1 }
 0xdec   :  { %4413 = vmatprep.subr.bf16.mxu1 %v5147_v1 }
 0xdee   :  { %v1128_v23 = vpop.permute.xlu1 %1127 }
 0xdef   :  { %4414 = vmatpush3.bf16.msra.mxu1 %v5246_v4  ;;  %4408 = vmatmul.mubr.msk.bf16.vlgmr.msra.gmra.mrb[32].mxu0 %vm167_vm0, %v1128_v23 }
 0xdf0   :  { %4427 = vmatprep.subr.bf16.mxu1 %v5147_v1  ;;  %4420 = vmatpush3.bf16.msra.mxu0 %v5290_v33 }
 0xdf1   :  { %4421 = vmatprep.subr.bf16.mxu0 %v5147_v1  ;;  %4423 = vmatprep.mubr.msk.bf16.mxu0 %vm5148_vm1, %v5147_v1 }
 0xdf2   :  { %4416 = vmatmul.mubr.msk.bf16.vlgmr.msra.gmra.mrb[32].mxu1 %vm167_vm0, %v1128_v23 }
 0xdf3   :  { %4428 = vmatpush3.bf16.msra.mxu1 %v5295_v34  ;;  %4431 = vmatprep.mubr.msk.bf16.mxu1 %vm5148_vm1, %v5147_v1 }
 0xdf4   :  { %4429 = vmatprep.subr.bf16.mxu1 %v5147_v1  ;;  %4422 = vmatpush3.bf16.msra.mxu0 %v5311_v39 }
 0xdf5   :  { %4435 = vmatprep.subr.bf16.mxu0 %v5147_v1 }
 0xdf7   :  { %4430 = vmatpush3.bf16.msra.mxu1 %v5319_v41 }
 0xdf8   :  { %4443 = vmatprep.subr.bf16.mxu1 %v5147_v1 }
 0xebd   :  { %v1120_v2 = vpop.f32.mrb[28].mxu1 }
 0xebe   :  { %v4401_v4 = vpop.f32.mrb[29].mxu1 }
 0xebf   :  { %v1123_v28 = vpop.f32.mrb[30].mxu1  ;;  %v239_v4 = vadd.f32 %v5339_v47, %v5273_v12 }
 0xec0   :  { %v4402_v26 = vpop.f32.mrb[31].mxu1 }
 0xec2   :  { %v1166_v29 = vpop.f32.mrb[32].mxu0 }
 0xec3   :  { %v1167_v31 = vadd.f32 %v1166_v29, %v1120_v2  ;;  %v4409_v30 = vpop.f32.mrb[33].mxu0 }
 0xec4   :  { %v1169_v36 = vpop.f32.mrb[34].mxu0 }
 0xec5   :  { %v1172_v37 = vadd.f32 %v5366_v57, %v1167_v31  ;;  %v1231_v32 = vpop.f32.mrb[32].mxu1  ;;  %v4410_v27 = vpop.f32.mrb[35].mxu0 }
 0xec6   :  { %v1237_v38 = vadd.f32 %v1231_v32, %v234_v35  ;;  %v4417_v40 = vpop.f32.mrb[33].mxu1 }
 0xec7   :  { %4955 = vtanh.f32 %v1172_v37  ;;  %v1234_v42 = vpop.f32.mrb[34].mxu1  ;;  %v3937_v46 = vmul.f32 -1.442695, %v1172_v37 }
 0xec8   :  { %4957 = vtanh.f32 %v1237_v38  ;;  %v4418_v43 = vpop.f32.mrb[35].mxu1  ;;  %v3939_v51 = vmul.f32 -1.442695, %v1237_v38 }
 0xec9   :  { %4959 = vpow2.f32 %v3937_v46 }
 0xeca   :  { %4961 = vpow2.f32 %v3939_v51 }
 0xed1   :  { %v4956_v44 = vpop.eup %4955 }
 0xed2   :  { %v4958_v45 = vpop.eup %4957  ;;  %1182 = vrot.lane.b32.xlu0 %v4956_v44, %s5150_s27 }
 0xed3   :  { %1247 = vrot.lane.b32.xlu1 %v4958_v45, %s5150_s27  ;;  %v4960_v50 = vpop.eup %4959 }
 0xed4   :  { %v4962_v52 = vpop.eup %4961  ;;  %v1176_v53 = vadd.f32 1.0, %v4960_v50 }
 0xed5   :  { %v1241_v54 = vadd.f32 1.0, %v4962_v52 }
 0xed6   :  { %4963 = vrcp.f32 %v1176_v53 }
 0xed7   :  { %4965 = vrcp.f32 %v1241_v54 }
 0xee0   :  { %v4964_v55 = vpop.eup %4963 }
 0xee1   :  { %v4966_v58 = vpop.eup %4965  ;;  %v1180_v62 = vmul.f32 %v4964_v55, %v5493_v10 }
 0xee2   :  { %v1245_v63 = vmul.f32 %v4966_v58, %v5497_v14 }
 0xf44   :  { %v1183_v56 = vpop.permute.xlu0 %1182 }
 0xf45   :  { %v1248_v59 = vpop.permute.xlu1 %1247  ;;  %v1185_v60 = vmul.f32 %v4964_v55, %v1183_v56 }
 0xf46   :  { %v1250_v61 = vmul.f32 %v4966_v58, %v1248_v59 }
 0xf47   :  { %1187 = vrot.lane.b32.xlu0 %v1185_v60, %s5150_s27 }
 0xf48   :  { %1252 = vrot.lane.b32.xlu1 %v1250_v61, %s5150_s27 }
 0xfb9   :  { %v1188_v48 = vpop.permute.xlu0 %1187 }
 0xfba   :  { %v1253_v18 = vpop.permute.xlu1 %1252  ;;  %v5534_v0 = vadd.f32 %v1188_v48, %v1180_v62 }
 0xfbb   :  { %v5536_v3 = vadd.f32 %v1253_v18, %v1245_v63 }
 0xfbc   :  { %4967 = vtanh.f32 %v5534_v0 }
 0xfbd   :  { %4969 = vtanh.f32 %v5536_v3 }
 0xfc6   :  { %v4968_v5 = vpop.eup %4967 }
 0xfc7   :  { %v4970_v6 = vpop.eup %4969  ;;  %1193 = vrot.lane.b32.xlu0 %v4968_v5, %s5150_s27  ;;  %v5032_v5 = vld [vmem:[%s6300_s4 + $0x18] sm:$0xff]  }
 0xfc8   :  { %1258 = vrot.lane.b32.xlu1 %v4970_v6, %s5150_s27  ;;  %v5033_v6 = vld [vmem:[%s6299_s3 + $0x18] sm:$0xff]  }
0x1039   :  { %v1194_v7 = vpop.permute.xlu0 %1193 }
0x103a   :  { %v1259_v8 = vpop.permute.xlu1 %1258  ;;  %v1196_v9 = vmul.f32 %v4964_v55, %v1194_v7 }
0x103b   :  { %v1261_v10 = vmul.f32 %v4966_v58, %v1259_v8 }
0x103c   :  { %v1263_v11 = vpack.c.bf16 %v1196_v9, %v1196_v9 }
0x103d   :  { %v1262_v13 = vpack.c.bf16 %v1261_v10, %v1261_v10 }
0x103e   :  { %1265 = vrot.lane.b32.xlu0 %v1263_v11, %s5151_s0 }
0x103f   :  { %1311 = vrot.lane.b32.xlu1 %v1262_v13, %s5151_s0 }
0x10b0   :  { %v1266_v14 = vpop.permute.xlu0 %1265 }
0x10b1   :  { %v1312_v15 = vpop.permute.xlu1 %1311  ;;  %4424 = vmatmul.mubr.msk.bf16.vlgmr.msra.gmra.mrb[36].mxu0 %vm167_vm0, %v1266_v14 }
0x10b2   :  { %4432 = vmatmul.mubr.msk.bf16.vlgmr.msra.gmra.mrb[36].mxu1 %vm167_vm0, %v1312_v15  ;;  %4436 = vmatpush3.bf16.msra.mxu0 %v5549_v16 }
0x10b3   :  { %4437 = vmatprep.subr.bf16.mxu0 %v5555_v17  ;;  %4439 = vmatprep.mubr.msk.bf16.mxu0 %vm5148_vm1, %v5555_v17 }
0x10b4   :  { %4444 = vmatpush3.bf16.msra.mxu1 %v5290_v33  ;;  %4447 = vmatprep.mubr.msk.bf16.mxu1 %vm5148_vm1, %v5555_v17 }
0x10b5   :  { %4445 = vmatprep.subr.bf16.mxu1 %v5555_v17 }
0x10b6   :  { %4438 = vmatpush3.bf16.msra.mxu0 %v5567_v19 }
0x10b7   :  { %4451 = vmatprep.subr.bf16.mxu0 %v5555_v17 }
0x10b8   :  { %4446 = vmatpush3.bf16.msra.mxu1 %v5311_v39 }
0x10b9   :  { %4440 = vmatmul.mubr.msk.bf16.vlgmr.msra.gmra.mrb[40].mxu0 %vm167_vm0, %v1312_v15  ;;  %4459 = vmatprep.subr.bf16.mxu1 %v5555_v17  ;;  %v5034_v15 = vld [vmem:[%s6301_s5] ss:$0 sm:$0xff] }
0x10ba   :  { %4452 = vmatpush3.bf16.msra.mxu0 %v5295_v34  ;;  %4455 = vmatprep.mubr.msk.bf16.mxu0 %vm5148_vm1, %v5555_v17 }
0x10bb   :  { %4453 = vmatprep.subr.bf16.mxu0 %v5555_v17 }
0x10be   :  { %4454 = vmatpush3.bf16.msra.mxu0 %v5319_v41 }
0x10bf   :  { %4467 = vmatprep.subr.bf16.mxu0 %v5555_v17 }
0x1184   :  { %v1304_v33 = vpop.f32.mrb[36].mxu0 }
0x1185   :  { %v1350_v20 = vpop.f32.mrb[36].mxu1  ;;  %v4425_v22 = vpop.f32.mrb[37].mxu0 }
0x1186   :  { %v1351_v24 = vadd.f32 %v1350_v20, %v1304_v33  ;;  %v4433_v39 = vpop.f32.mrb[37].mxu1  ;;  %v1307_v25 = vpop.f32.mrb[38].mxu0 }
0x1187   :  { %v1353_v21 = vpop.f32.mrb[38].mxu1  ;;  %v4426_v23 = vpop.f32.mrb[39].mxu0 }
0x1188   :  { %v1356_v2 = vadd.f32 %v5366_v57, %v1351_v24  ;;  %v4434_v34 = vpop.f32.mrb[39].mxu1 }
0x118a   :  { %4971 = vtanh.f32 %v1356_v2  ;;  %v3942_v36 = vmul.f32 -1.442695, %v1356_v2 }
0x118c   :  { %v1415_v28 = vpop.f32.mrb[40].mxu0 }
0x118d   :  { %v1421_v26 = vadd.f32 %v1415_v28, %v239_v4  ;;  %v4441_v41 = vpop.f32.mrb[41].mxu0 }
0x118e   :  { %v1418_v29 = vpop.f32.mrb[42].mxu0 }
0x118f   :  { %4973 = vtanh.f32 %v1421_v26  ;;  %v4442_v31 = vpop.f32.mrb[43].mxu0  ;;  %v3944_v37 = vmul.f32 -1.442695, %v1421_v26 }
0x1190   :  { %4975 = vpow2.f32 %v3942_v36 }
0x1191   :  { %4977 = vpow2.f32 %v3944_v37 }
0x1194   :  { %v4972_v30 = vpop.eup %4971 }
0x1195   :  { %1366 = vrot.lane.b32.xlu0 %v4972_v30, %s5150_s27 }
0x1199   :  { %v4974_v35 = vpop.eup %4973 }
0x119a   :  { %1431 = vrot.lane.b32.xlu1 %v4974_v35, %s5150_s27  ;;  %v4976_v32 = vpop.eup %4975 }
0x119b   :  { %v1360_v27 = vadd.f32 1.0, %v4976_v32  ;;  %v4978_v38 = vpop.eup %4977 }
0x119c   :  { %v1425_v12 = vadd.f32 1.0, %v4978_v38 }
0x119d   :  { %4979 = vrcp.f32 %v1360_v27 }
0x119e   :  { %4981 = vrcp.f32 %v1425_v12 }
0x11a7   :  { %v4980_v47 = vpop.eup %4979 }
0x11a8   :  { %v4982_v43 = vpop.eup %4981  ;;  %v1364_v46 = vmul.f32 %v4980_v47, %v5534_v0  ;;  %v5030_v0 = vld [vmem:[%s6300_s4 + $0x10] sm:$0xff]  }
0x11a9   :  { %v1429_v52 = vmul.f32 %v4982_v43, %v5536_v3  ;;  %v5031_v3 = vld [vmem:[%s6299_s3 + $0x10] sm:$0xff]  }
0x1207   :  { %v1367_v40 = vpop.permute.xlu0 %1366 }
0x1208   :  { %v1369_v42 = vmul.f32 %v4980_v47, %v1367_v40 }
0x120a   :  { %1371 = vrot.lane.b32.xlu0 %v1369_v42, %s5150_s27 }
0x120c   :  { %v1432_v44 = vpop.permute.xlu1 %1431 }
0x120d   :  { %v1434_v45 = vmul.f32 %v4982_v43, %v1432_v44 }
0x120f   :  { %1436 = vrot.lane.b32.xlu1 %v1434_v45, %s5150_s27 }
0x127c   :  { %v1372_v51 = vpop.permute.xlu0 %1371 }
0x127d   :  { %v5588_v50 = vadd.f32 %v1372_v51, %v1364_v46 }
0x127f   :  { %4983 = vtanh.f32 %v5588_v50 }
0x1281   :  { %v1437_v53 = vpop.permute.xlu1 %1436 }
0x1282   :  { %v5592_v54 = vadd.f32 %v1437_v53, %v1429_v52 }
0x1284   :  { %4985 = vtanh.f32 %v5592_v54 }
0x1289   :  { %v4984_v55 = vpop.eup %4983 }
0x128a   :  { %1377 = vrot.lane.b32.xlu0 %v4984_v55, %s5150_s27  ;;  %v1750_v55 = vld [vmem:[%s6297_s1] sm:$0xff] }
0x128b   :  { %1751 = vst [vmem:[#allocation2] sm:$0xff] %v1750_v55 }
0x128e   :  { %v4986_v56 = vpop.eup %4985 }
0x128f   :  { %1442 = vrot.lane.b32.xlu1 %v4986_v56, %s5150_s27  ;;  %v5661_v56 = vld [vmem:[%s6304_s8] sm:$0xff]  }
0x12fc   :  { %v1378_v58 = vpop.permute.xlu0 %1377 }
0x12fd   :  { %v1380_v59 = vmul.f32 %v4980_v47, %v1378_v58  ;;  %v5666_v58 = vld [vmem:[%s6302_s6] sm:$0xff]  }
0x12ff   :  { %v1447_v60 = vpack.c.bf16 %v1380_v59, %v1380_v59 }
0x1301   :  { %1449 = vrot.lane.b32.xlu0 %v1447_v60, %s5151_s0  ;;  %v1443_v61 = vpop.permute.xlu1 %1442 }
0x1302   :  { %v1445_v62 = vmul.f32 %v4982_v43, %v1443_v61  ;;  %v1752_v43 = vlaneseq  ;;  %v5674_v61 = vld [vmem:[%s6304_s8 + $0x8] sm:$0xff]  }
0x1304   :  { %v1446_v63 = vpack.c.bf16 %v1445_v62, %v1445_v62  ;;  %v5647_v44 = vand.u32 127, %v1752_v43  ;;  %v5681_v62 = vld [vmem:[%s6302_s6 + $0x8] sm:$0xff]  }
0x1306   :  { %1495 = vrot.lane.b32.xlu1 %v1446_v63, %s5151_s0  ;;  %v5650_v45 = vcvt.s32.f32 %v5647_v44  ;;  %vm1755_vm2 = vcmp.lt.s32.totalorder %v5647_v44, 16  ;;  %v5693_v63 = vld [vmem:[%s6302_s6 + $0x10] sm:$0xff]  }
0x1373   :  { %v1450_v48 = vpop.permute.xlu0 %1449 }
0x1374   :  { %4448 = vmatmul.mubr.msk.bf16.vlgmr.msra.gmra.mrb[40].mxu1 %vm167_vm0, %v1450_v48  ;;  %v5704_v48 = vld [vmem:[%s6302_s6 + $0x18] sm:$0xff]  }
0x1375   :  { %4460 = vmatpush3.bf16.msra.mxu1 %v5549_v16  ;;  %4463 = vmatprep.mubr.msk.bf16.mxu1 %vm5148_vm1, %v5555_v17  ;;  %v242_v16 = vadd.f32 %v5034_v15, %v5343_v49 }
0x1376   :  { %4461 = vmatprep.subr.bf16.mxu1 %v5555_v17 }
0x1378   :  { %v1496_v18 = vpop.permute.xlu1 %1495 }
0x1379   :  { %4462 = vmatpush3.bf16.msra.mxu1 %v5567_v19  ;;  %4456 = vmatmul.mubr.msk.bf16.vlgmr.msra.gmra.mrb[44].mxu0 %vm167_vm0, %v1496_v18 }
0x137a   :  { %4475 = vmatprep.subr.bf16.mxu1 %v5555_v17  ;;  %4468 = vmatpush3.bf16.msra.mxu0 %v5030_v0  ;;  %v5718_v0 = vld [vmem:[%s6302_s6 + $0x28] sm:$0xff]  }
0x137b   :  { %4469 = vmatprep.subr.bf16.mxu0 %v5555_v17  ;;  %4471 = vmatprep.mubr.msk.bf16.mxu0 %vm5148_vm1, %v5555_v17 }
0x137c   :  { %4464 = vmatmul.mubr.msk.bf16.vlgmr.msra.gmra.mrb[44].mxu1 %vm167_vm0, %v1496_v18  ;;  %v5711_v18 = vld [vmem:[%s6302_s6 + $0x20] sm:$0xff]  }
0x137d   :  { %4476 = vmatpush3.bf16.msra.mxu1 %v5031_v3  ;;  %4479 = vmatprep.mubr.msk.bf16.mxu1 %vm5148_vm1, %v5555_v17  ;;  %v5725_v3 = vld [vmem:[%s6302_s6 + $0x30] sm:$0xff]  }
0x137e   :  { %4477 = vmatprep.subr.bf16.mxu1 %v5555_v17  ;;  %4470 = vmatpush3.bf16.msra.mxu0 %v5032_v5  ;;  %v5732_v5 = vld [vmem:[%s6302_s6 + $0x38] sm:$0xff]  }
0x137f   :  { %4483 = vmatprep.subr.bf16.mxu0 %v5555_v17 }
0x1381   :  { %4478 = vmatpush3.bf16.msra.mxu1 %v5033_v6  ;;  %v1757_v6 = vpack.c.bf16 %v1750_v55, %v1750_v55 }
0x1382   :  { %4491 = vmatprep.subr.bf16.mxu1 %v5555_v17 }
0x1447   :  { %v1488_v7 = vpop.f32.mrb[40].mxu1 }
0x1448   :  { %v4449_v8 = vpop.f32.mrb[41].mxu1 }
0x1449   :  { %v1491_v9 = vpop.f32.mrb[42].mxu1 }
0x144a   :  { %v4450_v10 = vpop.f32.mrb[43].mxu1 }
0x144c   :  { %v1534_v11 = vpop.f32.mrb[44].mxu0 }
0x144d   :  { %v1535_v13 = vadd.f32 %v1534_v11, %v1488_v7  ;;  %v4457_v14 = vpop.f32.mrb[45].mxu0 }
0x144e   :  { %v1537_v19 = vpop.f32.mrb[46].mxu0 }
0x144f   :  { %v1540_v33 = vadd.f32 %v5366_v57, %v1535_v13  ;;  %v1599_v20 = vpop.f32.mrb[44].mxu1  ;;  %v4458_v22 = vpop.f32.mrb[47].mxu0 }
0x1450   :  { %v1605_v24 = vadd.f32 %v1599_v20, %v242_v16  ;;  %v4465_v39 = vpop.f32.mrb[45].mxu1  ;;  %v5035_v16 = vld [vmem:[%s6301_s5 + $0x1] ss:$0 sm:$0xff] }
0x1451   :  { %4987 = vtanh.f32 %v1540_v33  ;;  %v1602_v25 = vpop.f32.mrb[46].mxu1  ;;  %v3947_v34 = vmul.f32 -1.442695, %v1540_v33 }
0x1452   :  { %4989 = vtanh.f32 %v1605_v24  ;;  %v4466_v21 = vpop.f32.mrb[47].mxu1  ;;  %v3949_v4 = vmul.f32 -1.442695, %v1605_v24 }
0x1453   :  { %4991 = vpow2.f32 %v3947_v34  ;;  %v5743_v21 = vld [vmem:[%s6305_s9] ss:$0 sm:$0xff] }
0x1454   :  { %4993 = vpow2.f32 %v3949_v4 }
0x145b   :  { %v4988_v23 = vpop.eup %4987 }
0x145c   :  { %v4990_v2 = vpop.eup %4989  ;;  %1550 = vrot.lane.b32.xlu1 %v4988_v23, %s5150_s27 }
0x145d   :  { %1615 = vrot.lane.b32.xlu0 %v4990_v2, %s5150_s27  ;;  %v4992_v49 = vpop.eup %4991 }
0x145e   :  { %v4994_v57 = vpop.eup %4993  ;;  %v1544_v28 = vadd.f32 1.0, %v4992_v49 }
0x145f   :  { %v1609_v26 = vadd.f32 1.0, %v4994_v57 }
0x1460   :  { %4995 = vrcp.f32 %v1544_v28 }
0x1461   :  { %4997 = vrcp.f32 %v1609_v26 }
0x146a   :  { %v4996_v41 = vpop.eup %4995 }
0x146b   :  { %v4998_v31 = vpop.eup %4997  ;;  %v1548_v37 = vmul.f32 %v4996_v41, %v5588_v50 }
0x146c   :  { %v1613_v32 = vmul.f32 %v4998_v31, %v5592_v54 }
0x14ce   :  { %v1551_v29 = vpop.permute.xlu1 %1550 }
0x14cf   :  { %v1616_v30 = vpop.permute.xlu0 %1615  ;;  %v1553_v35 = vmul.f32 %v4996_v41, %v1551_v29 }
0x14d0   :  { %v1618_v36 = vmul.f32 %v4998_v31, %v1616_v30 }
0x14d1   :  { %1555 = vrot.lane.b32.xlu1 %v1553_v35, %s5150_s27 }
0x14d2   :  { %1620 = vrot.lane.b32.xlu0 %v1618_v36, %s5150_s27 }
0x1543   :  { %v1556_v27 = vpop.permute.xlu1 %1555 }
0x1544   :  { %v1621_v38 = vpop.permute.xlu0 %1620  ;;  %v5639_v12 = vadd.f32 %v1556_v27, %v1548_v37 }
0x1545   :  { %v5641_v47 = vadd.f32 %v1621_v38, %v1613_v32 }
0x1546   :  { %4999 = vtanh.f32 %v5639_v12 }
0x1547   :  { %5001 = vtanh.f32 %v5641_v47 }
0x1550   :  { %v5000_v40 = vpop.eup %4999 }
0x1551   :  { %v5002_v42 = vpop.eup %5001  ;;  %1561 = vrot.lane.b32.xlu1 %v5000_v40, %s5150_s27 }
0x1552   :  { %1626 = vrot.lane.b32.xlu0 %v5002_v42, %s5150_s27 }
0x15c3   :  { %v1562_v46 = vpop.permute.xlu1 %1561 }
0x15c4   :  { %v1627_v51 = vpop.permute.xlu0 %1626  ;;  %v1564_v50 = vmul.f32 %v4996_v41, %v1562_v46 }
0x15c5   :  { %v1629_v52 = vmul.f32 %v4998_v31, %v1627_v51 }
0x15c6   :  { %v1631_v53 = vpack.c.bf16 %v1564_v50, %v1564_v50 }
0x15c7   :  { %v1630_v54 = vpack.c.bf16 %v1629_v52, %v1629_v52 }
0x15c8   :  { %1633 = vrot.lane.b32.xlu1 %v1631_v53, %s5151_s0 }
0x15c9   :  { %1679 = vrot.lane.b32.xlu0 %v1630_v54, %s5151_s0  ;;  %v5758_v54 = vld [vmem:[%s6304_s8 + $0x10] sm:$0xff]  }
0x163a   :  { %v1634_v59 = vpop.permute.xlu1 %1633 }
0x163b   :  { %v1680_v60 = vpop.permute.xlu0 %1679  ;;  %4472 = vmatmul.mubr.msk.bf16.vlgmr.msra.gmra.mrb[48].mxu0 %vm167_vm0, %v1634_v59 }
0x163c   :  { %4480 = vmatmul.mubr.msk.bf16.vlgmr.msra.gmra.mrb[48].mxu1 %vm167_vm0, %v1680_v60  ;;  %4484 = vmatpush3.bf16.msra.mxu0 %v5661_v56 }
0x163d   :  { %4492 = vmatpush3.bf16.msra.mxu1 %v5666_v58  ;;  %4485 = vmatprep.subr.bf16.mxu0 %v5555_v17 }
0x163e   :  { %4493 = vmatprep.subr.bf16.mxu1 %v5555_v17  ;;  %4487 = vmatprep.mubr.msk.bf16.mxu0 %vm5148_vm1, %v5555_v17 }
0x163f   :  { %4507 = vmatprep.mubr.msk.bf16.mxu1 %vm5148_vm1, %v5555_v17 }
0x1640   :  { %4486 = vmatpush3.bf16.msra.mxu0 %v5674_v61 }
0x1641   :  { %4494 = vmatpush3.bf16.msra.mxu1 %v5681_v62  ;;  %4511 = vmatprep.subr.bf16.mxu0 %v5555_v17 }
0x1642   :  { %4495 = vmatprep.subr.bf16.mxu1 %v5555_v17 }
0x1643   :  { %4488 = vmatmul.mubr.msk.bf16.vlgmr.msra.gmra.mrb[52].mxu0 %vm167_vm0, %v1680_v60 }
0x1644   :  { %4515 = vmatprep.mubr.msk.bf16.mxu0 %vm5148_vm1, %v5555_v17  ;;  %4512 = vmatpush3.bf16.msra.mxu0 %v5758_v54 }
0x1645   :  { %4496 = vmatpush3.bf16.msra.mxu1 %v5693_v63  ;;  %4513 = vmatprep.subr.bf16.mxu0 %v5555_v17 }
0x1646   :  { %4497 = vmatprep.subr.bf16.mxu1 %v5555_v17 }
0x1649   :  { %4498 = vmatpush3.bf16.msra.mxu1 %v5704_v48 }
0x164a   :  { %4499 = vmatprep.subr.bf16.mxu1 %v5555_v17 }
0x164d   :  { %4500 = vmatpush3.bf16.msra.mxu1 %v5711_v18 }
0x164e   :  { %4501 = vmatprep.subr.bf16.mxu1 %v5555_v17 }
0x1651   :  { %4502 = vmatpush3.bf16.msra.mxu1 %v5718_v0 }
0x1652   :  { %4503 = vmatprep.subr.bf16.mxu1 %v5555_v17 }
0x1655   :  { %4504 = vmatpush3.bf16.msra.mxu1 %v5725_v3 }
0x1656   :  { %4505 = vmatprep.subr.bf16.mxu1 %v5555_v17 }
0x1659   :  { %4506 = vmatpush3.bf16.msra.mxu1 %v5732_v5 }
0x165c   :  { %4508 = vmatmul.mubr.bf16.vlgmr.msra.gmra.mrb[52].mxu1 %v1757_v6 }
0x170e   :  { %v1672_v7 = vpop.f32.mrb[48].mxu0 }
0x170f   :  { %v1718_v8 = vpop.f32.mrb[48].mxu1  ;;  %v4473_v9 = vpop.f32.mrb[49].mxu0 }
0x1710   :  { %v1719_v10 = vadd.f32 %v1718_v8, %v1672_v7  ;;  %v4481_v11 = vpop.f32.mrb[49].mxu1  ;;  %v1675_v13 = vpop.f32.mrb[50].mxu0  ;;  %v5775_v9 = vld [vmem:[%s6303_s7] sm:$0xff]  }
0x1711   :  { %v1721_v14 = vpop.f32.mrb[50].mxu1  ;;  %v4474_v15 = vpop.f32.mrb[51].mxu0  ;;  %v5782_v11 = vld [vmem:[%s6303_s7 + $0x8] sm:$0xff]  }
0x1712   :  { %v1724_v19 = vadd.f32 %v5035_v16, %v1719_v10  ;;  %v4482_v33 = vpop.f32.mrb[51].mxu1 }
0x1713   :  { %v5798_v33 = vld [vmem:[%s6305_s9 + $0x1] ss:$0 sm:$0xff] }
0x1714   :  { %5003 = vtanh.f32 %v1724_v19  ;;  %v3952_v26 = vmul.f32 -1.442695, %v1724_v19 }
0x1716   :  { %v1804_v20 = vpop.f32.mrb[52].mxu0 }
0x1717   :  { %v4489_v22 = vpop.f32.mrb[53].mxu0 }
0x1718   :  { %v1807_v24 = vpop.f32.mrb[54].mxu0 }
0x1719   :  { %v4490_v39 = vpop.f32.mrb[55].mxu0 }
0x171e   :  { %v5004_v25 = vpop.eup %5003 }
0x171f   :  { %1734 = vrot.lane.b32.xlu0 %v5004_v25, %s5150_s27 }
0x172f   :  { %v1892_v23 = vpop.f32.mrb[52].mxu1 }
0x1730   :  { %v1893_v2 = vadd.f32 %v1892_v23, %v1804_v20  ;;  %v4509_v34 = vpop.f32.mrb[53].mxu1 }
0x1731   :  { %v1895_v4 = vpop.f32.mrb[54].mxu1 }
0x1732   :  { %v1898_v49 = vadd.f32 %v5743_v21, %v1893_v2  ;;  %v4510_v57 = vpop.f32.mrb[55].mxu1 }
0x1734   :  { %5005 = vtanh.f32 %v1898_v49  ;;  %v3964_v35 = vmul.f32 -1.442695, %v1898_v49 }
0x1735   :  { %5007 = vpow2.f32 %v3952_v26 }
0x173e   :  { %v5006_v28 = vpop.eup %5005 }
0x173f   :  { %1908 = vrot.lane.b32.xlu1 %v5006_v28, %s5150_s27  ;;  %v5008_v41 = vpop.eup %5007 }
0x1740   :  { %v1728_v29 = vadd.f32 1.0, %v5008_v41 }
0x1742   :  { %5009 = vrcp.f32 %v1728_v29 }
0x1743   :  { %5011 = vpow2.f32 %v3964_v35  ;;  %v5815_v35 = vld [vmem:[%s6306_s10 + $0x8] sm:$0xff]  }
0x174c   :  { %v5010_v31 = vpop.eup %5009 }
0x174d   :  { %v5012_v37 = vpop.eup %5011  ;;  %v1732_v42 = vmul.f32 %v5010_v31, %v5639_v12  ;;  %v5764_v12 = vld [vmem:[%s6304_s8 + $0x18] sm:$0xff]  }
0x174e   :  { %v1902_v32 = vadd.f32 1.0, %v5012_v37  ;;  %4514 = vmatpush3.bf16.msra.mxu0 %v5764_v12 }
0x174f   :  { %4519 = vmatprep.subr.bf16.mxu0 %v5555_v17 }
0x1750   :  { %5013 = vrcp.f32 %v1902_v32 }
0x175a   :  { %v5014_v27 = vpop.eup %5013 }
0x175b   :  { %v1906_v50 = vmul.f32 %v5014_v27, %v5641_v47 }
0x1791   :  { %v1735_v30 = vpop.permute.xlu0 %1734 }
0x1792   :  { %v1737_v36 = vmul.f32 %v5010_v31, %v1735_v30  ;;  %v5809_v30 = vld [vmem:[%s6306_s10] sm:$0xff]  }
0x1794   :  { %1739 = vrot.lane.b32.xlu0 %v1737_v36, %s5150_s27 }
0x17b1   :  { %v1909_v38 = vpop.permute.xlu1 %1908 }
0x17b2   :  { %v1911_v40 = vmul.f32 %v5014_v27, %v1909_v38 }
0x17b4   :  { %1913 = vrot.lane.b32.xlu1 %v1911_v40, %s5150_s27  ;;  %v5825_v40 = vld [vmem:[%s6307_s11] ss:$0 sm:$0xff] }
0x1806   :  { %v1740_v43 = vpop.permute.xlu0 %1739 }
0x1807   :  { %v1742_v46 = vadd.f32 %v1740_v43, %v1732_v42 }
0x1809   :  { %5015 = vtanh.f32 %v1742_v46 }
0x1813   :  { %v5016_v51 = vpop.eup %5015 }
0x1814   :  { %1745 = vrot.lane.b32.xlu0 %v5016_v51, %s5150_s27 }
0x1826   :  { %v1914_v52 = vpop.permute.xlu1 %1913 }
0x1827   :  { %v5752_v53 = vadd.f32 %v1914_v52, %v1906_v50  ;;  %v3978_v50 = vld [vmem:[%s6297_s1 + $0x8] sm:$0xff] (!%p3977_p5) }
0x1828   :  { %2134 = vst [vmem:[#allocation2] sm:$0xff] (!%p3977_p5), %v3978_v50 }
0x1829   :  { %5017 = vtanh.f32 %v5752_v53 }
0x1833   :  { %v5018_v47 = vpop.eup %5017 }
0x1834   :  { %1919 = vrot.lane.b32.xlu1 %v5018_v47, %s5150_s27 }
0x1886   :  { %v1746_v55 = vpop.permute.xlu0 %1745 }
0x1887   :  { %v1748_v59 = vmul.f32 %v5010_v31, %v1746_v55 }
0x1889   :  { %v1924_v60 = vpack.c.bf16 %v1748_v59, %v1748_v59 }
0x188b   :  { %1926 = vrot.lane.b32.xlu0 %v1924_v60, %s5151_s0 }
0x18a6   :  { %v1920_v6 = vpop.permute.xlu1 %1919 }
0x18a7   :  { %v1922_v7 = vmul.f32 %v5014_v27, %v1920_v6 }
0x18a9   :  { %v1923_v8 = vpack.c.bf16 %v1922_v7, %v1922_v7 }
0x18ab   :  { %1984 = vrot.lane.b32.xlu1 %v1923_v8, %s5151_s0 }
0x18fd   :  { %v1927_v10 = vpop.permute.xlu0 %1926 }
0x18fe   :  { %4516 = vmatmul.mubr.msk.bf16.vlgmr.msra.gmra.mrb[56].mxu0 %vm167_vm0, %v1927_v10 }
0x18ff   :  { %4520 = vmatpush3.bf16.msra.mxu0 %v5775_v9  ;;  %4523 = vmatprep.mubr.msk.bf16.mxu0 %vm5148_vm1, %v5555_v17 }
0x1900   :  { %4521 = vmatprep.subr.bf16.mxu0 %v5555_v17 }
0x1903   :  { %4522 = vmatpush3.bf16.msra.mxu0 %v5782_v11 }
0x1904   :  { %4527 = vmatprep.subr.bf16.mxu0 %v5555_v17 }
0x191d   :  { %v5789_v13 = vpop.permute.xlu1 %1984 }
0x191e   :  { %4524 = vmatmul.mubr.msk.bf16.vlgmr.msra.gmra.mrb[60].mxu0 %vm167_vm0, %v5789_v13 }
0x191f   :  { %4531 = vmatprep.mubr.msk.bf16.mxu0 %vm5148_vm1, %v5555_v17  ;;  %4528 = vmatpush3.bf16.msra.mxu0 %v5809_v30 }
0x1920   :  { %4529 = vmatprep.subr.bf16.mxu0 %v5555_v17 }
0x1923   :  { %4530 = vmatpush3.bf16.msra.mxu0 %v5815_v35 }
0x19d1   :  { %v1977_v14 = vpop.f32.mrb[56].mxu0 }
0x19d2   :  { %v4517_v15 = vpop.f32.mrb[57].mxu0 }
0x19d3   :  { %v1980_v16 = vpop.f32.mrb[58].mxu0 }
0x19d4   :  { %v4518_v19 = vpop.f32.mrb[59].mxu0 }
0x19f1   :  { %v2035_v20 = vpop.f32.mrb[60].mxu0 }
0x19f2   :  { %v2036_v22 = vadd.f32 %v2035_v20, %v1977_v14  ;;  %v4525_v24 = vpop.f32.mrb[61].mxu0 }
0x19f3   :  { %v2038_v39 = vpop.f32.mrb[62].mxu0 }
0x19f4   :  { %v2041_v25 = vadd.f32 %v5798_v33, %v2036_v22  ;;  %v4526_v23 = vpop.f32.mrb[63].mxu0 }
0x19f6   :  { %5019 = vtanh.f32 %v2041_v25  ;;  %v3971_v34 = vmul.f32 -1.442695, %v2041_v25 }
0x19f8   :  { %5021 = vpow2.f32 %v3971_v34 }
0x1a00   :  { %v5020_v2 = vpop.eup %5019 }
0x1a01   :  { %2051 = vrot.lane.b32.xlu0 %v5020_v2, %s5150_s27 }
0x1a02   :  { %v5022_v4 = vpop.eup %5021 }
0x1a03   :  { %v2045_v49 = vadd.f32 1.0, %v5022_v4 }
0x1a05   :  { %5023 = vrcp.f32 %v2045_v49 }
0x1a0f   :  { %v5024_v57 = vpop.eup %5023 }
0x1a10   :  { %v2049_v41 = vmul.f32 %v5024_v57, %v1742_v46 }
0x1a73   :  { %v2052_v28 = vpop.permute.xlu0 %2051 }
0x1a74   :  { %v2054_v26 = vmul.f32 %v5024_v57, %v2052_v28 }
0x1a76   :  { %2056 = vrot.lane.b32.xlu1 %v2054_v26, %s5150_s27 }
0x1ae8   :  { %v2057_v29 = vpop.permute.xlu1 %2056 }
0x1ae9   :  { %v5803_v31 = vadd.f32 %v2057_v29, %v2049_v41 }
0x1aeb   :  { %5025 = vtanh.f32 %v5803_v31 }
0x1af5   :  { %v5026_v36 = vpop.eup %5025 }
0x1af6   :  { %2062 = vrot.lane.b32.xlu0 %v5026_v36, %s5150_s27 }
0x1b68   :  { %v2063_v37 = vpop.permute.xlu0 %2062 }
0x1b69   :  { %v2065_v32 = vmul.f32 %v5024_v57, %v2063_v37 }
0x1b6b   :  { %v2066_v27 = vpack.c.bf16 %v2065_v32, %v2065_v32 }
0x1b6d   :  { %2068 = vrot.lane.b32.xlu1 %v2066_v27, %s5151_s0 }
0x1bdf   :  { %v2069_v38 = vpop.permute.xlu1 %2068 }
0x1be0   :  { %4532 = vmatmul.mubr.msk.bf16.vlgmr.msra.gmra.mrb[64].mxu0 %vm167_vm0, %v2069_v38 }
0x1cb0   :  { %2131 = sbr.rel (%p3977_p5) target bundleno = 7351 (0x1cb7), region = 57 }
0x1cb3   :  { %v2119_v17 = vpop.f32.mrb[64].mxu0 }
0x1cb4   :  { %v2120_v42 = vadd.f32 %v5825_v40, %v2119_v17  ;;  %v4533_v43 = vpop.f32.mrb[65].mxu0 }
0x1cb5   :  { %v2122_v46 = vpop.f32.mrb[66].mxu0 }
0x1cb6   :  { %3975 = vst [vmem:[%s6308_s12 + $0x8] sm:$0xff] %v2120_v42  ;;  %v4534_v51 = vpop.f32.mrb[67].mxu0 }
0x1cb7 PF:  { %s3979_s11 = sld [smem:[#allocation3 + $0x1]] }
0x1cbd   :  { %p3980_p6 = scmp.ne.s32.totalorder %s3979_s11, 0 }
0x1cbe   :  { %v2140_v52 = vsel (!%p3980_p6), %vm1755_vm2, %v2120_v42, -1e+30  ;;  %v5152_v60 = vmov (!%p3980_p6), 0.0  }
0x1cbf   :  { %2139 = sbr.rel (%p3980_p6) target bundleno = 7648 (0x1de0), region = 61  ;;  %2141 = vmax.xlane.f32.xlu0 (!%p3980_p6), %v2140_v52 }
0x1d4c   :  { %v2142_v47 = vpop.xlane.xlu0 %2141 }
0x1d4d   :  { %vm2143_vm3 = vcmp.ge.f32.partialorder %v2140_v52, %v2142_v47 }
0x1d4e   :  { %v2144_v55 = vsel %vm2143_vm3, %v5650_v45, 128.0 }
0x1d4f   :  { %2145 = vmin.xlane.f32.xlu0 %v2144_v55 }
0x1ddc   :  { %v2146_v59 = vpop.xlane.xlu0 %2145 }
0x1ddd   :  { %vm2147_vm4 = vcmp.eq.f32.partialorder %v5650_v45, %v2146_v59 }
0x1dde   :  { %v3981_v6 = vsel %vm2147_vm4, 1.0, %v5152_v60 }
0x1ddf   :  { %2150 = vst [vmem:[#allocation2] sm:$0xff] %v3981_v6 }
0x1de0 PF:  { %4543 = vmatprep.subr.bf16.mxu1 %v5147_v1  ;;  %4535 = vmatprep.subr.bf16.mxu0 %v5147_v1  ;;  %s3989_s4 = sld [smem:[#allocation3 + $0x2]] }
0x1de1   :  { %4544 = vmatpush3.bf16.msra.mxu1 %v5666_v58  ;;  %4536 = vmatpush3.bf16.msra.mxu0 %v5661_v56 }
0x1de2   :  { %4545 = vmatprep.subr.bf16.mxu1 %v5147_v1  ;;  %4537 = vmatprep.subr.bf16.mxu0 %v5147_v1 }
0x1de3   :  { %4539 = vmatprep.mubr.msk.bf16.mxu0 %vm5148_vm1, %v5147_v1  ;;  %4559 = vmatprep.mubr.msk.bf16.mxu1 %vm5148_vm1, %v5147_v1 }
0x1de5   :  { %4546 = vmatpush3.bf16.msra.mxu1 %v5681_v62  ;;  %4538 = vmatpush3.bf16.msra.mxu0 %v5674_v61 }
0x1de6   :  { %4547 = vmatprep.subr.bf16.mxu1 %v5147_v1  ;;  %4563 = vmatprep.subr.bf16.mxu0 %v5147_v1  ;;  %v2151_v7 = vld [vmem:[#allocation2] sm:$0xff]  ;;  %p3990_p7 = scmp.eq.s32.totalorder %s3989_s4, 0 }
0x1de7   :  { %v2152_v8 = vpack.c.bf16 %v2151_v7, %v2151_v7 }
0x1de8   :  { %4540 = vmatmul.mubr.msk.bf16.vlgmr.msra.gmra.mrb[68].mxu0 %vm167_vm0, %v5789_v13 }
0x1de9   :  { %4548 = vmatpush3.bf16.msra.mxu1 %v5693_v63  ;;  %4564 = vmatpush3.bf16.msra.mxu0 %v5758_v54 }
0x1dea   :  { %4549 = vmatprep.subr.bf16.mxu1 %v5147_v1  ;;  %4565 = vmatprep.subr.bf16.mxu0 %v5147_v1 }
0x1deb   :  { %4567 = vmatprep.mubr.msk.bf16.mxu0 %vm5148_vm1, %v5147_v1 }
0x1ded   :  { %4550 = vmatpush3.bf16.msra.mxu1 %v5704_v48  ;;  %4566 = vmatpush3.bf16.msra.mxu0 %v5764_v12 }
0x1dee   :  { %4551 = vmatprep.subr.bf16.mxu1 %v5147_v1  ;;  %4571 = vmatprep.subr.bf16.mxu0 %v5147_v1 }
0x1df0   :  { %4568 = vmatmul.mubr.msk.bf16.vlgmr.msra.gmra.mrb[72].mxu0 %vm167_vm0, %v2069_v38 }
0x1df1   :  { %4552 = vmatpush3.bf16.msra.mxu1 %v5711_v18  ;;  %4572 = vmatpush3.bf16.msra.mxu0 %v5775_v9 }
0x1df2   :  { %4553 = vmatprep.subr.bf16.mxu1 %v5147_v1  ;;  %4573 = vmatprep.subr.bf16.mxu0 %v5147_v1 }
0x1df3   :  { %4575 = vmatprep.mubr.msk.bf16.mxu0 %vm5148_vm1, %v5147_v1 }
0x1df5   :  { %4554 = vmatpush3.bf16.msra.mxu1 %v5718_v0  ;;  %4574 = vmatpush3.bf16.msra.mxu0 %v5782_v11 }
0x1df6   :  { %4555 = vmatprep.subr.bf16.mxu1 %v5147_v1  ;;  %4579 = vmatprep.subr.bf16.mxu0 %v5147_v1 }
0x1df9   :  { %4556 = vmatpush3.bf16.msra.mxu1 %v5725_v3 }
0x1dfa   :  { %4557 = vmatprep.subr.bf16.mxu1 %v5147_v1 }
0x1dfd   :  { %4558 = vmatpush3.bf16.msra.mxu1 %v5732_v5 }
0x1e00   :  { %4560 = vmatmul.mubr.bf16.vlgmr.msra.gmra.mrb[56].mxu1 %v2152_v8 }
0x1ebb   :  { %v2187_v10 = vpop.f32.mrb[68].mxu0 }
0x1ebc   :  { %v4541_v13 = vpop.f32.mrb[69].mxu0 }
0x1ebd   :  { %v2190_v14 = vpop.f32.mrb[70].mxu0 }
0x1ebe   :  { %v4542_v15 = vpop.f32.mrb[71].mxu0 }
0x1ec3   :  { %v2293_v36 = vpop.f32.mrb[72].mxu0 }
0x1ec4   :  { %v4569_v37 = vpop.f32.mrb[73].mxu0 }
0x1ec5   :  { %v2296_v32 = vpop.f32.mrb[74].mxu0 }
0x1ec6   :  { %v4570_v27 = vpop.f32.mrb[75].mxu0 }
0x1ed3   :  { %v2227_v16 = vpop.f32.mrb[56].mxu1 }
0x1ed4   :  { %v2228_v19 = vadd.f32 %v2227_v16, %v2187_v10  ;;  %v4561_v20 = vpop.f32.mrb[57].mxu1 }
0x1ed5   :  { %v2230_v22 = vpop.f32.mrb[58].mxu1 }
0x1ed6   :  { %v2233_v24 = vadd.f32 %v5743_v21, %v2228_v19  ;;  %v4562_v39 = vpop.f32.mrb[59].mxu1 }
0x1ed8   :  { %5036 = vtanh.f32 %v2233_v24  ;;  %v3983_v23 = vmul.f32 -1.442695, %v2233_v24 }
0x1eda   :  { %5038 = vpow2.f32 %v3983_v23 }
0x1ee2   :  { %v5037_v25 = vpop.eup %5036 }
0x1ee3   :  { %2243 = vrot.lane.b32.xlu0 %v5037_v25, %s5150_s27 }
0x1ee4   :  { %v5039_v2 = vpop.eup %5038 }
0x1ee5   :  { %v2237_v34 = vadd.f32 1.0, %v5039_v2 }
0x1ee7   :  { %5040 = vrcp.f32 %v2237_v34  ;;  %v3991_v34 = vld [vmem:[%s6297_s1 + $0x10] sm:$0xff] (!%p3990_p7) }
0x1ee8   :  { %2426 = vst [vmem:[#allocation2] sm:$0xff] (!%p3990_p7), %v3991_v34 }
0x1ef1   :  { %v5041_v4 = vpop.eup %5040 }
0x1ef2   :  { %v2241_v28 = vmul.f32 %v5041_v4, %v5752_v53 }
0x1f55   :  { %v2244_v49 = vpop.permute.xlu0 %2243 }
0x1f56   :  { %v2246_v57 = vmul.f32 %v5041_v4, %v2244_v49 }
0x1f58   :  { %2248 = vrot.lane.b32.xlu0 %v2246_v57, %s5150_s27 }
0x1fca   :  { %v2249_v26 = vpop.permute.xlu0 %2248 }
0x1fcb   :  { %v5882_v41 = vadd.f32 %v2249_v26, %v2241_v28 }
0x1fcd   :  { %5042 = vtanh.f32 %v5882_v41 }
0x1fd7   :  { %v5043_v29 = vpop.eup %5042 }
0x1fd8   :  { %2254 = vrot.lane.b32.xlu1 %v5043_v29, %s5150_s27 }
0x204a   :  { %v2255_v38 = vpop.permute.xlu1 %2254 }
0x204b   :  { %v2257_v17 = vmul.f32 %v5041_v4, %v2255_v38 }
0x204d   :  { %v2258_v42 = vpack.c.bf16 %v2257_v17, %v2257_v17 }
0x204f   :  { %2300 = vrot.lane.b32.xlu1 %v2258_v42, %s5151_s0 }
0x20c1   :  { %v5887_v43 = vpop.permute.xlu1 %2300 }
0x20c2   :  { %4576 = vmatmul.mubr.msk.bf16.vlgmr.msra.gmra.mrb[76].mxu0 %vm167_vm0, %v5887_v43 }
0x20c3   :  { %4580 = vmatpush3.bf16.msra.mxu0 %v5809_v30  ;;  %4583 = vmatprep.mubr.msk.bf16.mxu0 %vm5148_vm1, %v5147_v1 }
0x20c4   :  { %4581 = vmatprep.subr.bf16.mxu0 %v5147_v1 }
0x20c7   :  { %4582 = vmatpush3.bf16.msra.mxu0 %v5815_v35 }
0x2195   :  { %v2339_v53 = vpop.f32.mrb[76].mxu0 }
0x2196   :  { %v2340_v46 = vadd.f32 %v2339_v53, %v2293_v36  ;;  %v4577_v51 = vpop.f32.mrb[77].mxu0 }
0x2197   :  { %v2342_v50 = vpop.f32.mrb[78].mxu0 }
0x2198   :  { %v2345_v52 = vadd.f32 %v5798_v33, %v2340_v46  ;;  %v4578_v47 = vpop.f32.mrb[79].mxu0 }
0x219a   :  { %5044 = vtanh.f32 %v2345_v52  ;;  %v3986_v59 = vmul.f32 -1.442695, %v2345_v52 }
0x219c   :  { %5046 = vpow2.f32 %v3986_v59 }
0x21a4   :  { %v5045_v55 = vpop.eup %5044 }
0x21a5   :  { %2355 = vrot.lane.b32.xlu0 %v5045_v55, %s5150_s27 }
0x21a6   :  { %v5047_v60 = vpop.eup %5046 }
0x21a7   :  { %v2349_v6 = vadd.f32 1.0, %v5047_v60 }
0x21a9   :  { %5048 = vrcp.f32 %v2349_v6 }
0x21b3   :  { %v5049_v7 = vpop.eup %5048 }
0x21b4   :  { %v2353_v13 = vmul.f32 %v5049_v7, %v5803_v31 }
0x2217   :  { %v2356_v8 = vpop.permute.xlu0 %2355 }
0x2218   :  { %v2358_v10 = vmul.f32 %v5049_v7, %v2356_v8 }
0x221a   :  { %2360 = vrot.lane.b32.xlu1 %v2358_v10, %s5150_s27 }
0x228c   :  { %v2361_v14 = vpop.permute.xlu1 %2360 }
0x228d   :  { %v5900_v15 = vadd.f32 %v2361_v14, %v2353_v13 }
0x228f   :  { %5050 = vtanh.f32 %v5900_v15 }
0x2299   :  { %v5051_v16 = vpop.eup %5050 }
0x229a   :  { %2366 = vrot.lane.b32.xlu0 %v5051_v16, %s5150_s27 }
0x230c   :  { %v2367_v19 = vpop.permute.xlu0 %2366 }
0x230d   :  { %v2369_v20 = vmul.f32 %v5049_v7, %v2367_v19 }
0x230f   :  { %v2370_v22 = vpack.c.bf16 %v2369_v20, %v2369_v20 }
0x2311   :  { %2372 = vrot.lane.b32.xlu1 %v2370_v22, %s5151_s0 }
0x2383   :  { %v2373_v24 = vpop.permute.xlu1 %2372 }
0x2384   :  { %4584 = vmatmul.mubr.msk.bf16.vlgmr.msra.gmra.mrb[80].mxu0 %vm167_vm0, %v2373_v24 }
0x2454   :  { %2423 = sbr.rel (%p3990_p7) target bundleno = 9307 (0x245b), region = 65 }
0x2457   :  { %v2411_v39 = vpop.f32.mrb[80].mxu0 }
0x2458   :  { %v2412_v31 = vadd.f32 %v5825_v40, %v2411_v39  ;;  %v4585_v25 = vpop.f32.mrb[81].mxu0 }
0x2459   :  { %v2414_v23 = vpop.f32.mrb[82].mxu0 }
0x245a   :  { %3988 = vst [vmem:[%s6308_s12 + $0x10] sm:$0xff] %v2412_v31  ;;  %v4586_v2 = vpop.f32.mrb[83].mxu0 }
0x245b PF:  { %s3992_s5 = sld [smem:[#allocation3 + $0x2]] }
0x2461   :  { %p3993_p8 = scmp.ne.s32.totalorder %s3992_s5, 0 }
0x2462   :  { %v2432_v4 = vsel (!%p3993_p8), %vm1755_vm2, %v2412_v31, -1e+30  ;;  %v5153_v26 = vmov (!%p3993_p8), 0.0  }
0x2463   :  { %2431 = sbr.rel (%p3993_p8) target bundleno = 9604 (0x2584), region = 69  ;;  %2433 = vmax.xlane.f32.xlu0 (!%p3993_p8), %v2432_v4 }
0x24f0   :  { %v2434_v49 = vpop.xlane.xlu0 %2433 }
0x24f1   :  { %vm2435_vm5 = vcmp.ge.f32.partialorder %v2432_v4, %v2434_v49 }
0x24f2   :  { %v2436_v57 = vsel %vm2435_vm5, %v5650_v45, 128.0 }
0x24f3   :  { %2437 = vmin.xlane.f32.xlu0 %v2436_v57 }
0x2580   :  { %v2438_v28 = vpop.xlane.xlu0 %2437 }
0x2581   :  { %vm2439_vm6 = vcmp.eq.f32.partialorder %v5650_v45, %v2438_v28 }
0x2582   :  { %v3994_v29 = vsel %vm2439_vm6, 1.0, %v5153_v26 }
0x2583   :  { %2442 = vst [vmem:[#allocation2] sm:$0xff] %v3994_v29 }
0x2584 PF:  { %4595 = vmatprep.subr.bf16.mxu1 %v5147_v1  ;;  %4587 = vmatprep.subr.bf16.mxu0 %v5147_v1  ;;  %s4002_s28 = sld [smem:[#allocation3 + $0x3]] }
0x2585   :  { %4596 = vmatpush3.bf16.msra.mxu1 %v5666_v58  ;;  %4588 = vmatpush3.bf16.msra.mxu0 %v5661_v56 }
0x2586   :  { %4597 = vmatprep.subr.bf16.mxu1 %v5147_v1  ;;  %4589 = vmatprep.subr.bf16.mxu0 %v5147_v1 }
0x2587   :  { %4591 = vmatprep.mubr.msk.bf16.mxu0 %vm5148_vm1, %v5147_v1  ;;  %4611 = vmatprep.mubr.msk.bf16.mxu1 %vm5148_vm1, %v5147_v1 }
0x2589   :  { %4598 = vmatpush3.bf16.msra.mxu1 %v5681_v62  ;;  %4590 = vmatpush3.bf16.msra.mxu0 %v5674_v61 }
0x258a   :  { %4599 = vmatprep.subr.bf16.mxu1 %v5147_v1  ;;  %4615 = vmatprep.subr.bf16.mxu0 %v5147_v1  ;;  %v2443_v36 = vld [vmem:[#allocation2] sm:$0xff]  ;;  %p4003_p9 = scmp.eq.s32.totalorder %s4002_s28, 0 }
0x258b   :  { %v2444_v37 = vpack.c.bf16 %v2443_v36, %v2443_v36 }
0x258c   :  { %4592 = vmatmul.mubr.msk.bf16.vlgmr.msra.gmra.mrb[84].mxu0 %vm167_vm0, %v5887_v43 }
0x258d   :  { %4600 = vmatpush3.bf16.msra.mxu1 %v5693_v63  ;;  %4616 = vmatpush3.bf16.msra.mxu0 %v5758_v54 }
0x258e   :  { %4601 = vmatprep.subr.bf16.mxu1 %v5147_v1  ;;  %4617 = vmatprep.subr.bf16.mxu0 %v5147_v1 }
0x258f   :  { %4619 = vmatprep.mubr.msk.bf16.mxu0 %vm5148_vm1, %v5147_v1 }
0x2591   :  { %4602 = vmatpush3.bf16.msra.mxu1 %v5704_v48  ;;  %4618 = vmatpush3.bf16.msra.mxu0 %v5764_v12 }
0x2592   :  { %4603 = vmatprep.subr.bf16.mxu1 %v5147_v1  ;;  %4623 = vmatprep.subr.bf16.mxu0 %v5147_v1 }
0x2594   :  { %4620 = vmatmul.mubr.msk.bf16.vlgmr.msra.gmra.mrb[88].mxu0 %vm167_vm0, %v2373_v24 }
0x2595   :  { %4604 = vmatpush3.bf16.msra.mxu1 %v5711_v18  ;;  %4624 = vmatpush3.bf16.msra.mxu0 %v5775_v9 }
0x2596   :  { %4605 = vmatprep.subr.bf16.mxu1 %v5147_v1  ;;  %4625 = vmatprep.subr.bf16.mxu0 %v5147_v1 }
0x2597   :  { %4627 = vmatprep.mubr.msk.bf16.mxu0 %vm5148_vm1, %v5147_v1 }
0x2599   :  { %4606 = vmatpush3.bf16.msra.mxu1 %v5718_v0  ;;  %4626 = vmatpush3.bf16.msra.mxu0 %v5782_v11 }
0x259a   :  { %4607 = vmatprep.subr.bf16.mxu1 %v5147_v1  ;;  %4631 = vmatprep.subr.bf16.mxu0 %v5147_v1 }
0x259d   :  { %4608 = vmatpush3.bf16.msra.mxu1 %v5725_v3 }
0x259e   :  { %4609 = vmatprep.subr.bf16.mxu1 %v5147_v1 }
0x25a1   :  { %4610 = vmatpush3.bf16.msra.mxu1 %v5732_v5 }
0x25a4   :  { %4612 = vmatmul.mubr.bf16.vlgmr.msra.gmra.mrb[60].mxu1 %v2444_v37 }
0x265f   :  { %v2479_v32 = vpop.f32.mrb[84].mxu0 }
0x2660   :  { %v4593_v27 = vpop.f32.mrb[85].mxu0 }
0x2661   :  { %v2482_v38 = vpop.f32.mrb[86].mxu0 }
0x2662   :  { %v4594_v17 = vpop.f32.mrb[87].mxu0 }
0x2667   :  { %v2585_v16 = vpop.f32.mrb[88].mxu0 }
0x2668   :  { %v4621_v19 = vpop.f32.mrb[89].mxu0 }
0x2669   :  { %v2588_v20 = vpop.f32.mrb[90].mxu0 }
0x266a   :  { %v4622_v22 = vpop.f32.mrb[91].mxu0 }
0x2677   :  { %v2519_v42 = vpop.f32.mrb[60].mxu1 }
0x2678   :  { %v2520_v43 = vadd.f32 %v2519_v42, %v2479_v32  ;;  %v4613_v53 = vpop.f32.mrb[61].mxu1 }
0x2679   :  { %v2522_v46 = vpop.f32.mrb[62].mxu1 }
0x267a   :  { %v2525_v51 = vadd.f32 %v5743_v21, %v2520_v43  ;;  %v4614_v50 = vpop.f32.mrb[63].mxu1 }
0x267c   :  { %5052 = vtanh.f32 %v2525_v51  ;;  %v3996_v47 = vmul.f32 -1.442695, %v2525_v51 }
0x267e   :  { %5054 = vpow2.f32 %v3996_v47 }
0x2686   :  { %v5053_v52 = vpop.eup %5052 }
0x2687   :  { %2535 = vrot.lane.b32.xlu0 %v5053_v52, %s5150_s27 }
0x2688   :  { %v5055_v55 = vpop.eup %5054 }
0x2689   :  { %v2529_v59 = vadd.f32 1.0, %v5055_v55 }
0x268b   :  { %5056 = vrcp.f32 %v2529_v59  ;;  %v4004_v59 = vld [vmem:[%s6297_s1 + $0x18] sm:$0xff] (!%p4003_p9) }
0x268c   :  { %2718 = vst [vmem:[#allocation2] sm:$0xff] (!%p4003_p9), %v4004_v59 }
0x2695   :  { %v5057_v60 = vpop.eup %5056 }
0x2696   :  { %v2533_v8 = vmul.f32 %v5057_v60, %v5882_v41 }
0x26f9   :  { %v2536_v6 = vpop.permute.xlu0 %2535 }
0x26fa   :  { %v2538_v7 = vmul.f32 %v5057_v60, %v2536_v6 }
0x26fc   :  { %2540 = vrot.lane.b32.xlu0 %v2538_v7, %s5150_s27 }
0x276e   :  { %v2541_v10 = vpop.permute.xlu0 %2540 }
0x276f   :  { %v5961_v13 = vadd.f32 %v2541_v10, %v2533_v8 }
0x2771   :  { %5058 = vtanh.f32 %v5961_v13 }
0x277b   :  { %v5059_v14 = vpop.eup %5058 }
0x277c   :  { %2546 = vrot.lane.b32.xlu1 %v5059_v14, %s5150_s27 }
0x27ee   :  { %v2547_v24 = vpop.permute.xlu1 %2546 }
0x27ef   :  { %v2549_v39 = vmul.f32 %v5057_v60, %v2547_v24 }
0x27f1   :  { %v2550_v31 = vpack.c.bf16 %v2549_v39, %v2549_v39 }
0x27f3   :  { %2592 = vrot.lane.b32.xlu1 %v2550_v31, %s5151_s0 }
0x2865   :  { %v5966_v25 = vpop.permute.xlu1 %2592 }
0x2866   :  { %4628 = vmatmul.mubr.msk.bf16.vlgmr.msra.gmra.mrb[92].mxu0 %vm167_vm0, %v5966_v25 }
0x2867   :  { %4632 = vmatpush3.bf16.msra.mxu0 %v5809_v30  ;;  %4635 = vmatprep.mubr.msk.bf16.mxu0 %vm5148_vm1, %v5147_v1 }
0x2868   :  { %4633 = vmatprep.subr.bf16.mxu0 %v5147_v1 }
0x286b   :  { %4634 = vmatpush3.bf16.msra.mxu0 %v5815_v35 }
0x2939   :  { %v2631_v41 = vpop.f32.mrb[92].mxu0 }
0x293a   :  { %v2632_v23 = vadd.f32 %v2631_v41, %v2585_v16  ;;  %v4629_v2 = vpop.f32.mrb[93].mxu0 }
0x293b   :  { %v2634_v34 = vpop.f32.mrb[94].mxu0 }
0x293c   :  { %v2637_v4 = vadd.f32 %v5798_v33, %v2632_v23  ;;  %v4630_v49 = vpop.f32.mrb[95].mxu0 }
0x293e   :  { %5060 = vtanh.f32 %v2637_v4  ;;  %v3999_v28 = vmul.f32 -1.442695, %v2637_v4 }
0x2940   :  { %5062 = vpow2.f32 %v3999_v28 }
0x2948   :  { %v5061_v57 = vpop.eup %5060 }
0x2949   :  { %2647 = vrot.lane.b32.xlu0 %v5061_v57, %s5150_s27 }
0x294a   :  { %v5063_v26 = vpop.eup %5062 }
0x294b   :  { %v2641_v29 = vadd.f32 1.0, %v5063_v26 }
0x294d   :  { %5064 = vrcp.f32 %v2641_v29 }
0x2957   :  { %v5065_v36 = vpop.eup %5064 }
0x2958   :  { %v2645_v27 = vmul.f32 %v5065_v36, %v5900_v15 }
0x29bb   :  { %v2648_v37 = vpop.permute.xlu0 %2647 }
0x29bc   :  { %v2650_v32 = vmul.f32 %v5065_v36, %v2648_v37 }
0x29be   :  { %2652 = vrot.lane.b32.xlu1 %v2650_v32, %s5150_s27 }
0x2a30   :  { %v2653_v38 = vpop.permute.xlu1 %2652 }
0x2a31   :  { %v5979_v17 = vadd.f32 %v2653_v38, %v2645_v27 }
0x2a33   :  { %5066 = vtanh.f32 %v5979_v17 }
0x2a3d   :  { %v5067_v42 = vpop.eup %5066 }
0x2a3e   :  { %2658 = vrot.lane.b32.xlu0 %v5067_v42, %s5150_s27 }
0x2ab0   :  { %v2659_v43 = vpop.permute.xlu0 %2658 }
0x2ab1   :  { %v2661_v53 = vmul.f32 %v5065_v36, %v2659_v43 }
0x2ab3   :  { %v2662_v46 = vpack.c.bf16 %v2661_v53, %v2661_v53 }
0x2ab5   :  { %2664 = vrot.lane.b32.xlu1 %v2662_v46, %s5151_s0 }
0x2b27   :  { %v2665_v51 = vpop.permute.xlu1 %2664 }
0x2b28   :  { %4636 = vmatmul.mubr.msk.bf16.vlgmr.msra.gmra.mrb[96].mxu0 %vm167_vm0, %v2665_v51 }
0x2bf8   :  { %2715 = sbr.rel (%p4003_p9) target bundleno = 11263 (0x2bff), region = 73 }
0x2bfb   :  { %v2703_v50 = vpop.f32.mrb[96].mxu0 }
0x2bfc   :  { %v2704_v15 = vadd.f32 %v5825_v40, %v2703_v50  ;;  %v4637_v52 = vpop.f32.mrb[97].mxu0 }
0x2bfd   :  { %v2706_v47 = vpop.f32.mrb[98].mxu0 }
0x2bfe   :  { %4001 = vst [vmem:[%s6308_s12 + $0x18] sm:$0xff] %v2704_v15  ;;  %v4638_v55 = vpop.f32.mrb[99].mxu0 }
0x2bff PF:  { %s4005_s14 = sld [smem:[#allocation3 + $0x3]] }
0x2c05   :  { %p4006_p10 = scmp.ne.s32.totalorder %s4005_s14, 0 }
0x2c06   :  { %v2724_v60 = vsel (!%p4006_p10), %vm1755_vm2, %v2704_v15, -1e+30  ;;  %v5154_v10 = vmov (!%p4006_p10), 0.0  }
0x2c07   :  { %2723 = sbr.rel (%p4006_p10) target bundleno = 11560 (0x2d28), region = 77  ;;  %2725 = vmax.xlane.f32.xlu0 (!%p4006_p10), %v2724_v60 }
0x2c94   :  { %v2726_v6 = vpop.xlane.xlu0 %2725 }
0x2c95   :  { %vm2727_vm7 = vcmp.ge.f32.partialorder %v2724_v60, %v2726_v6 }
0x2c96   :  { %v2728_v7 = vsel %vm2727_vm7, %v5650_v45, 128.0 }
0x2c97   :  { %2729 = vmin.xlane.f32.xlu0 %v2728_v7 }
0x2d24   :  { %v2730_v8 = vpop.xlane.xlu0 %2729 }
0x2d25   :  { %vm2731_vm8 = vcmp.eq.f32.partialorder %v5650_v45, %v2730_v8 }
0x2d26   :  { %v4007_v14 = vsel %vm2731_vm8, 1.0, %v5154_v10 }
0x2d27   :  { %2734 = vst [vmem:[#allocation2] sm:$0xff] %v4007_v14 }
0x2d28 PF:  { %4647 = vmatprep.subr.bf16.mxu1 %v5147_v1  ;;  %4639 = vmatprep.subr.bf16.mxu0 %v5147_v1  ;;  %s4015_s15 = sld [smem:[#allocation3 + $0x4]] }
0x2d29   :  { %4648 = vmatpush3.bf16.msra.mxu1 %v5666_v58  ;;  %4640 = vmatpush3.bf16.msra.mxu0 %v5661_v56 }
0x2d2a   :  { %4649 = vmatprep.subr.bf16.mxu1 %v5147_v1  ;;  %4641 = vmatprep.subr.bf16.mxu0 %v5147_v1 }
0x2d2b   :  { %4643 = vmatprep.mubr.msk.bf16.mxu0 %vm5148_vm1, %v5147_v1  ;;  %4663 = vmatprep.mubr.msk.bf16.mxu1 %vm5148_vm1, %v5147_v1 }
0x2d2d   :  { %4650 = vmatpush3.bf16.msra.mxu1 %v5681_v62  ;;  %4642 = vmatpush3.bf16.msra.mxu0 %v5674_v61 }
0x2d2e   :  { %4651 = vmatprep.subr.bf16.mxu1 %v5147_v1  ;;  %4667 = vmatprep.subr.bf16.mxu0 %v5147_v1  ;;  %v2735_v16 = vld [vmem:[#allocation2] sm:$0xff]  ;;  %p4016_p11 = scmp.eq.s32.totalorder %s4015_s15, 0 }
0x2d2f   :  { %v2736_v19 = vpack.c.bf16 %v2735_v16, %v2735_v16 }
0x2d30   :  { %4644 = vmatmul.mubr.msk.bf16.vlgmr.msra.gmra.mrb[100].mxu0 %vm167_vm0, %v5966_v25 }
0x2d31   :  { %4652 = vmatpush3.bf16.msra.mxu1 %v5693_v63  ;;  %4668 = vmatpush3.bf16.msra.mxu0 %v5758_v54 }
0x2d32   :  { %4653 = vmatprep.subr.bf16.mxu1 %v5147_v1  ;;  %4669 = vmatprep.subr.bf16.mxu0 %v5147_v1 }
0x2d33   :  { %4671 = vmatprep.mubr.msk.bf16.mxu0 %vm5148_vm1, %v5147_v1 }
0x2d35   :  { %4654 = vmatpush3.bf16.msra.mxu1 %v5704_v48  ;;  %4670 = vmatpush3.bf16.msra.mxu0 %v5764_v12 }
0x2d36   :  { %4655 = vmatprep.subr.bf16.mxu1 %v5147_v1  ;;  %4675 = vmatprep.subr.bf16.mxu0 %v5147_v1 }
0x2d38   :  { %4672 = vmatmul.mubr.msk.bf16.vlgmr.msra.gmra.mrb[104].mxu0 %vm167_vm0, %v2665_v51 }
0x2d39   :  { %4656 = vmatpush3.bf16.msra.mxu1 %v5711_v18  ;;  %4676 = vmatpush3.bf16.msra.mxu0 %v5775_v9 }
0x2d3a   :  { %4657 = vmatprep.subr.bf16.mxu1 %v5147_v1  ;;  %4677 = vmatprep.subr.bf16.mxu0 %v5147_v1 }
0x2d3b   :  { %4679 = vmatprep.mubr.msk.bf16.mxu0 %vm5148_vm1, %v5147_v1 }
0x2d3d   :  { %4658 = vmatpush3.bf16.msra.mxu1 %v5718_v0  ;;  %4678 = vmatpush3.bf16.msra.mxu0 %v5782_v11 }
0x2d3e   :  { %4659 = vmatprep.subr.bf16.mxu1 %v5147_v1  ;;  %4683 = vmatprep.subr.bf16.mxu0 %v5147_v1 }
0x2d41   :  { %4660 = vmatpush3.bf16.msra.mxu1 %v5725_v3 }
0x2d42   :  { %4661 = vmatprep.subr.bf16.mxu1 %v5147_v1 }
0x2d45   :  { %4662 = vmatpush3.bf16.msra.mxu1 %v5732_v5 }
0x2d48   :  { %4664 = vmatmul.mubr.bf16.vlgmr.msra.gmra.mrb[64].mxu1 %v2736_v19 }
0x2e03   :  { %v2771_v20 = vpop.f32.mrb[100].mxu0 }
0x2e04   :  { %v4645_v22 = vpop.f32.mrb[101].mxu0 }
0x2e05   :  { %v2774_v24 = vpop.f32.mrb[102].mxu0 }
0x2e06   :  { %v4646_v39 = vpop.f32.mrb[103].mxu0 }
0x2e0b   :  { %v2877_v42 = vpop.f32.mrb[104].mxu0 }
0x2e0c   :  { %v4673_v43 = vpop.f32.mrb[105].mxu0 }
0x2e0d   :  { %v2880_v53 = vpop.f32.mrb[106].mxu0 }
0x2e0e   :  { %v4674_v46 = vpop.f32.mrb[107].mxu0 }
0x2e1b   :  { %v2811_v31 = vpop.f32.mrb[64].mxu1 }
0x2e1c   :  { %v2812_v25 = vadd.f32 %v2811_v31, %v2771_v20  ;;  %v4665_v41 = vpop.f32.mrb[65].mxu1 }
0x2e1d   :  { %v2814_v23 = vpop.f32.mrb[66].mxu1 }
0x2e1e   :  { %v2817_v2 = vadd.f32 %v5743_v21, %v2812_v25  ;;  %v4666_v34 = vpop.f32.mrb[67].mxu1 }
0x2e20   :  { %5068 = vtanh.f32 %v2817_v2  ;;  %v4009_v49 = vmul.f32 -1.442695, %v2817_v2 }
0x2e22   :  { %5070 = vpow2.f32 %v4009_v49 }
0x2e2a   :  { %v5069_v4 = vpop.eup %5068 }
0x2e2b   :  { %2827 = vrot.lane.b32.xlu0 %v5069_v4, %s5150_s27 }
0x2e2c   :  { %v5071_v57 = vpop.eup %5070 }
0x2e2d   :  { %v2821_v28 = vadd.f32 1.0, %v5071_v57 }
0x2e2f   :  { %5072 = vrcp.f32 %v2821_v28  ;;  %v4017_v28 = vld [vmem:[%s6297_s1 + $0x20] sm:$0xff] (!%p4016_p11) }
0x2e30   :  { %3010 = vst [vmem:[#allocation2] sm:$0xff] (!%p4016_p11), %v4017_v28 }
0x2e39   :  { %v5073_v26 = vpop.eup %5072 }
0x2e3a   :  { %v2825_v37 = vmul.f32 %v5073_v26, %v5961_v13 }
0x2e9d   :  { %v2828_v29 = vpop.permute.xlu0 %2827 }
0x2e9e   :  { %v2830_v36 = vmul.f32 %v5073_v26, %v2828_v29 }
0x2ea0   :  { %2832 = vrot.lane.b32.xlu0 %v2830_v36, %s5150_s27 }
0x2f12   :  { %v2833_v32 = vpop.permute.xlu0 %2832 }
0x2f13   :  { %v6040_v27 = vadd.f32 %v2833_v32, %v2825_v37 }
0x2f15   :  { %5074 = vtanh.f32 %v6040_v27 }
0x2f1f   :  { %v5075_v38 = vpop.eup %5074 }
0x2f20   :  { %2838 = vrot.lane.b32.xlu1 %v5075_v38, %s5150_s27 }
0x2f92   :  { %v2839_v51 = vpop.permute.xlu1 %2838 }
0x2f93   :  { %v2841_v50 = vmul.f32 %v5073_v26, %v2839_v51 }
0x2f95   :  { %v2842_v15 = vpack.c.bf16 %v2841_v50, %v2841_v50 }
0x2f97   :  { %2884 = vrot.lane.b32.xlu1 %v2842_v15, %s5151_s0 }
0x3009   :  { %v6045_v52 = vpop.permute.xlu1 %2884 }
0x300a   :  { %4680 = vmatmul.mubr.msk.bf16.vlgmr.msra.gmra.mrb[108].mxu0 %vm167_vm0, %v6045_v52 }
0x300b   :  { %4684 = vmatpush3.bf16.msra.mxu0 %v5809_v30  ;;  %4687 = vmatprep.mubr.msk.bf16.mxu0 %vm5148_vm1, %v5147_v1 }
0x300c   :  { %4685 = vmatprep.subr.bf16.mxu0 %v5147_v1 }
0x300f   :  { %4686 = vmatpush3.bf16.msra.mxu0 %v5815_v35 }
0x30dd   :  { %v2923_v13 = vpop.f32.mrb[108].mxu0 }
0x30de   :  { %v2924_v47 = vadd.f32 %v2923_v13, %v2877_v42  ;;  %v4681_v55 = vpop.f32.mrb[109].mxu0 }
0x30df   :  { %v2926_v59 = vpop.f32.mrb[110].mxu0 }
0x30e0   :  { %v2929_v60 = vadd.f32 %v5798_v33, %v2924_v47  ;;  %v4682_v6 = vpop.f32.mrb[111].mxu0 }
0x30e2   :  { %5076 = vtanh.f32 %v2929_v60  ;;  %v4012_v8 = vmul.f32 -1.442695, %v2929_v60 }
0x30e4   :  { %5078 = vpow2.f32 %v4012_v8 }
0x30ec   :  { %v5077_v7 = vpop.eup %5076 }
0x30ed   :  { %2939 = vrot.lane.b32.xlu0 %v5077_v7, %s5150_s27 }
0x30ee   :  { %v5079_v10 = vpop.eup %5078 }
0x30ef   :  { %v2933_v14 = vadd.f32 1.0, %v5079_v10 }
0x30f1   :  { %5080 = vrcp.f32 %v2933_v14 }
0x30fb   :  { %v5081_v16 = vpop.eup %5080 }
0x30fc   :  { %v2937_v22 = vmul.f32 %v5081_v16, %v5979_v17 }
0x315f   :  { %v2940_v19 = vpop.permute.xlu0 %2939 }
0x3160   :  { %v2942_v20 = vmul.f32 %v5081_v16, %v2940_v19 }
0x3162   :  { %2944 = vrot.lane.b32.xlu1 %v2942_v20, %s5150_s27 }
0x31d4   :  { %v2945_v24 = vpop.permute.xlu1 %2944 }
0x31d5   :  { %v6058_v39 = vadd.f32 %v2945_v24, %v2937_v22 }
0x31d7   :  { %5082 = vtanh.f32 %v6058_v39 }
0x31e1   :  { %v5083_v31 = vpop.eup %5082 }
0x31e2   :  { %2950 = vrot.lane.b32.xlu0 %v5083_v31, %s5150_s27 }
0x3254   :  { %v2951_v25 = vpop.permute.xlu0 %2950 }
0x3255   :  { %v2953_v41 = vmul.f32 %v5081_v16, %v2951_v25 }
0x3257   :  { %v2954_v23 = vpack.c.bf16 %v2953_v41, %v2953_v41 }
0x3259   :  { %2956 = vrot.lane.b32.xlu1 %v2954_v23, %s5151_s0 }
0x32cb   :  { %v2957_v2 = vpop.permute.xlu1 %2956 }
0x32cc   :  { %4688 = vmatmul.mubr.msk.bf16.vlgmr.msra.gmra.mrb[112].mxu0 %vm167_vm0, %v2957_v2 }
0x339c   :  { %3007 = sbr.rel (%p4016_p11) target bundleno = 13219 (0x33a3), region = 81 }
0x339f   :  { %v2995_v34 = vpop.f32.mrb[112].mxu0 }
0x33a0   :  { %v2996_v17 = vadd.f32 %v5825_v40, %v2995_v34  ;;  %v4689_v4 = vpop.f32.mrb[113].mxu0 }
0x33a1   :  { %v2998_v49 = vpop.f32.mrb[114].mxu0 }
0x33a2   :  { %4014 = vst [vmem:[%s6308_s12 + $0x20] sm:$0xff] %v2996_v17  ;;  %v4690_v57 = vpop.f32.mrb[115].mxu0 }
0x33a3 PF:  { %s4018_s18 = sld [smem:[#allocation3 + $0x4]] }
0x33a9   :  { %p4019_p12 = scmp.ne.s32.totalorder %s4018_s18, 0 }
0x33aa   :  { %v3016_v26 = vsel (!%p4019_p12), %vm1755_vm2, %v2996_v17, -1e+30  ;;  %v5155_v32 = vmov (!%p4019_p12), 0.0  }
0x33ab   :  { %3015 = sbr.rel (%p4019_p12) target bundleno = 13516 (0x34cc), region = 85  ;;  %3017 = vmax.xlane.f32.xlu0 (!%p4019_p12), %v3016_v26 }
0x3438   :  { %v3018_v29 = vpop.xlane.xlu0 %3017 }
0x3439   :  { %vm3019_vm9 = vcmp.ge.f32.partialorder %v3016_v26, %v3018_v29 }
0x343a   :  { %v3020_v36 = vsel %vm3019_vm9, %v5650_v45, 128.0 }
0x343b   :  { %3021 = vmin.xlane.f32.xlu0 %v3020_v36 }
0x34c8   :  { %v3022_v37 = vpop.xlane.xlu0 %3021 }
0x34c9   :  { %vm3023_vm10 = vcmp.eq.f32.partialorder %v5650_v45, %v3022_v37 }
0x34ca   :  { %v4020_v38 = vsel %vm3023_vm10, 1.0, %v5155_v32 }
0x34cb   :  { %3026 = vst [vmem:[#allocation2] sm:$0xff] %v4020_v38 }
0x34cc PF:  { %4699 = vmatprep.subr.bf16.mxu1 %v5147_v1  ;;  %4691 = vmatprep.subr.bf16.mxu0 %v5147_v1  ;;  %s4028_s19 = sld [smem:[#allocation3 + $0x5]] }
0x34cd   :  { %4700 = vmatpush3.bf16.msra.mxu1 %v5666_v58  ;;  %4692 = vmatpush3.bf16.msra.mxu0 %v5661_v56 }
0x34ce   :  { %4701 = vmatprep.subr.bf16.mxu1 %v5147_v1  ;;  %4693 = vmatprep.subr.bf16.mxu0 %v5147_v1 }
0x34cf   :  { %4695 = vmatprep.mubr.msk.bf16.mxu0 %vm5148_vm1, %v5147_v1  ;;  %4715 = vmatprep.mubr.msk.bf16.mxu1 %vm5148_vm1, %v5147_v1 }
0x34d1   :  { %4702 = vmatpush3.bf16.msra.mxu1 %v5681_v62  ;;  %4694 = vmatpush3.bf16.msra.mxu0 %v5674_v61 }
0x34d2   :  { %4703 = vmatprep.subr.bf16.mxu1 %v5147_v1  ;;  %4719 = vmatprep.subr.bf16.mxu0 %v5147_v1  ;;  %v3027_v42 = vld [vmem:[#allocation2] sm:$0xff]  ;;  %p4029_p13 = scmp.eq.s32.totalorder %s4028_s19, 0 }
0x34d3   :  { %v3028_v43 = vpack.c.bf16 %v3027_v42, %v3027_v42 }
0x34d4   :  { %4696 = vmatmul.mubr.msk.bf16.vlgmr.msra.gmra.mrb[116].mxu0 %vm167_vm0, %v6045_v52 }
0x34d5   :  { %4704 = vmatpush3.bf16.msra.mxu1 %v5693_v63  ;;  %4720 = vmatpush3.bf16.msra.mxu0 %v5758_v54 }
0x34d6   :  { %4705 = vmatprep.subr.bf16.mxu1 %v5147_v1  ;;  %4721 = vmatprep.subr.bf16.mxu0 %v5147_v1 }
0x34d7   :  { %4723 = vmatprep.mubr.msk.bf16.mxu0 %vm5148_vm1, %v5147_v1 }
0x34d9   :  { %4706 = vmatpush3.bf16.msra.mxu1 %v5704_v48  ;;  %4722 = vmatpush3.bf16.msra.mxu0 %v5764_v12 }
0x34da   :  { %4707 = vmatprep.subr.bf16.mxu1 %v5147_v1  ;;  %4727 = vmatprep.subr.bf16.mxu0 %v5147_v1 }
0x34dc   :  { %4724 = vmatmul.mubr.msk.bf16.vlgmr.msra.gmra.mrb[120].mxu0 %vm167_vm0, %v2957_v2 }
0x34dd   :  { %4708 = vmatpush3.bf16.msra.mxu1 %v5711_v18  ;;  %4728 = vmatpush3.bf16.msra.mxu0 %v5775_v9 }
0x34de   :  { %4709 = vmatprep.subr.bf16.mxu1 %v5147_v1  ;;  %4729 = vmatprep.subr.bf16.mxu0 %v5147_v1 }
0x34df   :  { %4731 = vmatprep.mubr.msk.bf16.mxu0 %vm5148_vm1, %v5147_v1 }
0x34e1   :  { %4710 = vmatpush3.bf16.msra.mxu1 %v5718_v0  ;;  %4730 = vmatpush3.bf16.msra.mxu0 %v5782_v11 }
0x34e2   :  { %4711 = vmatprep.subr.bf16.mxu1 %v5147_v1  ;;  %4735 = vmatprep.subr.bf16.mxu0 %v5147_v1 }
0x34e5   :  { %4712 = vmatpush3.bf16.msra.mxu1 %v5725_v3 }
0x34e6   :  { %4713 = vmatprep.subr.bf16.mxu1 %v5147_v1 }
0x34e9   :  { %4714 = vmatpush3.bf16.msra.mxu1 %v5732_v5 }
0x34ec   :  { %4716 = vmatmul.mubr.bf16.vlgmr.msra.gmra.mrb[68].mxu1 %v3028_v43 }
0x35a7   :  { %v3063_v53 = vpop.f32.mrb[116].mxu0 }
0x35a8   :  { %v4697_v46 = vpop.f32.mrb[117].mxu0 }
0x35a9   :  { %v3066_v51 = vpop.f32.mrb[118].mxu0 }
0x35aa   :  { %v4698_v50 = vpop.f32.mrb[119].mxu0 }
0x35af   :  { %v3169_v31 = vpop.f32.mrb[120].mxu0 }
0x35b0   :  { %v4725_v25 = vpop.f32.mrb[121].mxu0 }
0x35b1   :  { %v3172_v41 = vpop.f32.mrb[122].mxu0 }
0x35b2   :  { %v4726_v23 = vpop.f32.mrb[123].mxu0 }
0x35bf   :  { %v3103_v15 = vpop.f32.mrb[68].mxu1 }
0x35c0   :  { %v3104_v52 = vadd.f32 %v3103_v15, %v3063_v53  ;;  %v4717_v13 = vpop.f32.mrb[69].mxu1 }
0x35c1   :  { %v3106_v47 = vpop.f32.mrb[70].mxu1 }
0x35c2   :  { %v3109_v55 = vadd.f32 %v5743_v21, %v3104_v52  ;;  %v4718_v59 = vpop.f32.mrb[71].mxu1 }
0x35c4   :  { %5084 = vtanh.f32 %v3109_v55  ;;  %v4022_v6 = vmul.f32 -1.442695, %v3109_v55 }
0x35c6   :  { %5086 = vpow2.f32 %v4022_v6 }
0x35ce   :  { %v5085_v60 = vpop.eup %5084 }
0x35cf   :  { %3119 = vrot.lane.b32.xlu0 %v5085_v60, %s5150_s27 }
0x35d0   :  { %v5087_v7 = vpop.eup %5086 }
0x35d1   :  { %v3113_v8 = vadd.f32 1.0, %v5087_v7 }
0x35d3   :  { %5088 = vrcp.f32 %v3113_v8  ;;  %v4030_v8 = vld [vmem:[%s6297_s1 + $0x28] sm:$0xff] (!%p4029_p13) }
0x35d4   :  { %3302 = vst [vmem:[#allocation2] sm:$0xff] (!%p4029_p13), %v4030_v8 }
0x35dd   :  { %v5089_v10 = vpop.eup %5088 }
0x35de   :  { %v3117_v19 = vmul.f32 %v5089_v10, %v6040_v27 }
0x3641   :  { %v3120_v14 = vpop.permute.xlu0 %3119 }
0x3642   :  { %v3122_v16 = vmul.f32 %v5089_v10, %v3120_v14 }
0x3644   :  { %3124 = vrot.lane.b32.xlu0 %v3122_v16, %s5150_s27 }
0x36b6   :  { %v3125_v20 = vpop.permute.xlu0 %3124 }
0x36b7   :  { %v6119_v22 = vadd.f32 %v3125_v20, %v3117_v19 }
0x36b9   :  { %5090 = vtanh.f32 %v6119_v22 }
0x36c3   :  { %v5091_v24 = vpop.eup %5090 }
0x36c4   :  { %3130 = vrot.lane.b32.xlu1 %v5091_v24, %s5150_s27 }
0x3736   :  { %v3131_v2 = vpop.permute.xlu1 %3130 }
0x3737   :  { %v3133_v34 = vmul.f32 %v5089_v10, %v3131_v2 }
0x3739   :  { %v3134_v17 = vpack.c.bf16 %v3133_v34, %v3133_v34 }
0x373b   :  { %3176 = vrot.lane.b32.xlu1 %v3134_v17, %s5151_s0 }
0x37ad   :  { %v6124_v4 = vpop.permute.xlu1 %3176 }
0x37ae   :  { %4732 = vmatmul.mubr.msk.bf16.vlgmr.msra.gmra.mrb[124].mxu0 %vm167_vm0, %v6124_v4 }
0x37af   :  { %4736 = vmatpush3.bf16.msra.mxu0 %v5809_v30  ;;  %4739 = vmatprep.mubr.msk.bf16.mxu0 %vm5148_vm1, %v5147_v1 }
0x37b0   :  { %4737 = vmatprep.subr.bf16.mxu0 %v5147_v1 }
0x37b3   :  { %4738 = vmatpush3.bf16.msra.mxu0 %v5815_v35 }
0x3881   :  { %v3215_v27 = vpop.f32.mrb[124].mxu0 }
0x3882   :  { %v3216_v49 = vadd.f32 %v3215_v27, %v3169_v31  ;;  %v4733_v57 = vpop.f32.mrb[125].mxu0 }
0x3883   :  { %v3218_v28 = vpop.f32.mrb[126].mxu0 }
0x3884   :  { %v3221_v26 = vadd.f32 %v5798_v33, %v3216_v49  ;;  %v4734_v29 = vpop.f32.mrb[127].mxu0 }
0x3886   :  { %5092 = vtanh.f32 %v3221_v26  ;;  %v4025_v37 = vmul.f32 -1.442695, %v3221_v26 }
0x3888   :  { %5094 = vpow2.f32 %v4025_v37 }
0x3890   :  { %v5093_v36 = vpop.eup %5092 }
0x3891   :  { %3231 = vrot.lane.b32.xlu0 %v5093_v36, %s5150_s27 }
0x3892   :  { %v5095_v32 = vpop.eup %5094 }
0x3893   :  { %v3225_v38 = vadd.f32 1.0, %v5095_v32 }
0x3895   :  { %5096 = vrcp.f32 %v3225_v38 }
0x389f   :  { %v5097_v42 = vpop.eup %5096 }
0x38a0   :  { %v3229_v46 = vmul.f32 %v5097_v42, %v6058_v39 }
0x3903   :  { %v3232_v43 = vpop.permute.xlu0 %3231 }
0x3904   :  { %v3234_v53 = vmul.f32 %v5097_v42, %v3232_v43 }
0x3906   :  { %3236 = vrot.lane.b32.xlu1 %v3234_v53, %s5150_s27 }
0x3978   :  { %v3237_v51 = vpop.permute.xlu1 %3236 }
0x3979   :  { %v6137_v50 = vadd.f32 %v3237_v51, %v3229_v46 }
0x397b   :  { %5098 = vtanh.f32 %v6137_v50 }
0x3985   :  { %v5099_v15 = vpop.eup %5098 }
0x3986   :  { %3242 = vrot.lane.b32.xlu0 %v5099_v15, %s5150_s27 }
0x39f8   :  { %v3243_v52 = vpop.permute.xlu0 %3242 }
0x39f9   :  { %v3245_v13 = vmul.f32 %v5097_v42, %v3243_v52 }
0x39fb   :  { %v3246_v47 = vpack.c.bf16 %v3245_v13, %v3245_v13 }
0x39fd   :  { %3248 = vrot.lane.b32.xlu1 %v3246_v47, %s5151_s0 }
0x3a6f   :  { %v3249_v55 = vpop.permute.xlu1 %3248 }
0x3a70   :  { %4740 = vmatmul.mubr.msk.bf16.vlgmr.msra.gmra.mrb[128].mxu0 %vm167_vm0, %v3249_v55 }
0x3b40   :  { %3299 = sbr.rel (%p4029_p13) target bundleno = 15175 (0x3b47), region = 89 }
0x3b43   :  { %v3287_v59 = vpop.f32.mrb[128].mxu0 }
0x3b44   :  { %v3288_v39 = vadd.f32 %v5825_v40, %v3287_v59  ;;  %v4741_v60 = vpop.f32.mrb[129].mxu0 }
0x3b45   :  { %v3290_v6 = vpop.f32.mrb[130].mxu0 }
0x3b46   :  { %4027 = vst [vmem:[%s6308_s12 + $0x28] sm:$0xff] %v3288_v39  ;;  %v4742_v7 = vpop.f32.mrb[131].mxu0 }
0x3b47 PF:  { %s4031_s23 = sld [smem:[#allocation3 + $0x5]] }
0x3b4d   :  { %p4032_p0 = scmp.ne.s32.totalorder %s4031_s23, 0 }
0x3b4e   :  { %v3308_v10 = vsel (!%p4032_p0), %vm1755_vm2, %v3288_v39, -1e+30  ;;  %v5156_v20 = vmov (!%p4032_p0), 0.0  }
0x3b4f   :  { %3307 = sbr.rel (%p4032_p0) target bundleno = 15472 (0x3c70), region = 93  ;;  %3309 = vmax.xlane.f32.xlu0 (!%p4032_p0), %v3308_v10 }
0x3bdc   :  { %v3310_v14 = vpop.xlane.xlu0 %3309 }
0x3bdd   :  { %vm3311_vm11 = vcmp.ge.f32.partialorder %v3308_v10, %v3310_v14 }
0x3bde   :  { %v3312_v16 = vsel %vm3311_vm11, %v5650_v45, 128.0 }
0x3bdf   :  { %3313 = vmin.xlane.f32.xlu0 %v3312_v16 }
0x3c6c   :  { %v3314_v19 = vpop.xlane.xlu0 %3313 }
0x3c6d   :  { %vm3315_vm12 = vcmp.eq.f32.partialorder %v5650_v45, %v3314_v19 }
0x3c6e   :  { %v4033_v24 = vsel %vm3315_vm12, 1.0, %v5156_v20 }
0x3c6f   :  { %3318 = vst [vmem:[#allocation2] sm:$0xff] %v4033_v24 }
0x3c70 PF:  { %4751 = vmatprep.subr.bf16.mxu1 %v5147_v1  ;;  %4743 = vmatprep.subr.bf16.mxu0 %v5147_v1  ;;  %s4041_s24 = sld [smem:[#allocation3 + $0x6]] }
0x3c71   :  { %4752 = vmatpush3.bf16.msra.mxu1 %v5666_v58  ;;  %4744 = vmatpush3.bf16.msra.mxu0 %v5661_v56 }
0x3c72   :  { %4753 = vmatprep.subr.bf16.mxu1 %v5147_v1  ;;  %4745 = vmatprep.subr.bf16.mxu0 %v5147_v1 }
0x3c73   :  { %4747 = vmatprep.mubr.msk.bf16.mxu0 %vm5148_vm1, %v5147_v1  ;;  %4767 = vmatprep.mubr.msk.bf16.mxu1 %vm5148_vm1, %v5147_v1 }
0x3c75   :  { %4754 = vmatpush3.bf16.msra.mxu1 %v5681_v62  ;;  %4746 = vmatpush3.bf16.msra.mxu0 %v5674_v61 }
0x3c76   :  { %4755 = vmatprep.subr.bf16.mxu1 %v5147_v1  ;;  %4771 = vmatprep.subr.bf16.mxu0 %v5147_v1  ;;  %v3319_v31 = vld [vmem:[#allocation2] sm:$0xff]  ;;  %p4042_p1 = scmp.eq.s32.totalorder %s4041_s24, 0 }
0x3c77   :  { %v3320_v25 = vpack.c.bf16 %v3319_v31, %v3319_v31 }
0x3c78   :  { %4748 = vmatmul.mubr.msk.bf16.vlgmr.msra.gmra.mrb[132].mxu0 %vm167_vm0, %v6124_v4 }
0x3c79   :  { %4756 = vmatpush3.bf16.msra.mxu1 %v5693_v63  ;;  %4772 = vmatpush3.bf16.msra.mxu0 %v5758_v54 }
0x3c7a   :  { %4757 = vmatprep.subr.bf16.mxu1 %v5147_v1  ;;  %4773 = vmatprep.subr.bf16.mxu0 %v5147_v1 }
0x3c7b   :  { %4775 = vmatprep.mubr.msk.bf16.mxu0 %vm5148_vm1, %v5147_v1 }
0x3c7d   :  { %4758 = vmatpush3.bf16.msra.mxu1 %v5704_v48  ;;  %4774 = vmatpush3.bf16.msra.mxu0 %v5764_v12 }
0x3c7e   :  { %4759 = vmatprep.subr.bf16.mxu1 %v5147_v1  ;;  %4779 = vmatprep.subr.bf16.mxu0 %v5147_v1 }
0x3c80   :  { %4776 = vmatmul.mubr.msk.bf16.vlgmr.msra.gmra.mrb[136].mxu0 %vm167_vm0, %v3249_v55 }
0x3c81   :  { %4760 = vmatpush3.bf16.msra.mxu1 %v5711_v18  ;;  %4780 = vmatpush3.bf16.msra.mxu0 %v5775_v9 }
0x3c82   :  { %4761 = vmatprep.subr.bf16.mxu1 %v5147_v1  ;;  %4781 = vmatprep.subr.bf16.mxu0 %v5147_v1 }
0x3c83   :  { %4783 = vmatprep.mubr.msk.bf16.mxu0 %vm5148_vm1, %v5147_v1 }
0x3c85   :  { %4762 = vmatpush3.bf16.msra.mxu1 %v5718_v0  ;;  %4782 = vmatpush3.bf16.msra.mxu0 %v5782_v11 }
0x3c86   :  { %4763 = vmatprep.subr.bf16.mxu1 %v5147_v1  ;;  %4787 = vmatprep.subr.bf16.mxu0 %v5147_v1 }
0x3c89   :  { %4764 = vmatpush3.bf16.msra.mxu1 %v5725_v3 }
0x3c8a   :  { %4765 = vmatprep.subr.bf16.mxu1 %v5147_v1 }
0x3c8d   :  { %4766 = vmatpush3.bf16.msra.mxu1 %v5732_v5 }
0x3c90   :  { %4768 = vmatmul.mubr.bf16.vlgmr.msra.gmra.mrb[72].mxu1 %v3320_v25 }
0x3d4b   :  { %v3355_v41 = vpop.f32.mrb[132].mxu0 }
0x3d4c   :  { %v4749_v23 = vpop.f32.mrb[133].mxu0 }
0x3d4d   :  { %v3358_v2 = vpop.f32.mrb[134].mxu0 }
0x3d4e   :  { %v4750_v34 = vpop.f32.mrb[135].mxu0 }
0x3d53   :  { %v3461_v15 = vpop.f32.mrb[136].mxu0 }
0x3d54   :  { %v4777_v52 = vpop.f32.mrb[137].mxu0 }
0x3d55   :  { %v3464_v13 = vpop.f32.mrb[138].mxu0 }
0x3d56   :  { %v4778_v47 = vpop.f32.mrb[139].mxu0 }
0x3d63   :  { %v3395_v17 = vpop.f32.mrb[72].mxu1 }
0x3d64   :  { %v3396_v4 = vadd.f32 %v3395_v17, %v3355_v41  ;;  %v4769_v27 = vpop.f32.mrb[73].mxu1 }
0x3d65   :  { %v3398_v49 = vpop.f32.mrb[74].mxu1 }
0x3d66   :  { %v3401_v57 = vadd.f32 %v5743_v21, %v3396_v4  ;;  %v4770_v28 = vpop.f32.mrb[75].mxu1 }
0x3d68   :  { %5100 = vtanh.f32 %v3401_v57  ;;  %v4035_v29 = vmul.f32 -1.442695, %v3401_v57 }
0x3d6a   :  { %5102 = vpow2.f32 %v4035_v29 }
0x3d72   :  { %v5101_v26 = vpop.eup %5100 }
0x3d73   :  { %3411 = vrot.lane.b32.xlu0 %v5101_v26, %s5150_s27 }
0x3d74   :  { %v5103_v36 = vpop.eup %5102 }
0x3d75   :  { %v3405_v37 = vadd.f32 1.0, %v5103_v36 }
0x3d77   :  { %5104 = vrcp.f32 %v3405_v37  ;;  %v4043_v37 = vld [vmem:[%s6297_s1 + $0x30] sm:$0xff] (!%p4042_p1) }
0x3d78   :  { %3594 = vst [vmem:[#allocation2] sm:$0xff] (!%p4042_p1), %v4043_v37 }
0x3d81   :  { %v5105_v32 = vpop.eup %5104 }
0x3d82   :  { %v3409_v43 = vmul.f32 %v5105_v32, %v6119_v22 }
0x3de5   :  { %v3412_v38 = vpop.permute.xlu0 %3411 }
0x3de6   :  { %v3414_v42 = vmul.f32 %v5105_v32, %v3412_v38 }
0x3de8   :  { %3416 = vrot.lane.b32.xlu0 %v3414_v42, %s5150_s27 }
0x3e5a   :  { %v3417_v53 = vpop.permute.xlu0 %3416 }
0x3e5b   :  { %v6198_v46 = vadd.f32 %v3417_v53, %v3409_v43 }
0x3e5d   :  { %5106 = vtanh.f32 %v6198_v46 }
0x3e67   :  { %v5107_v51 = vpop.eup %5106 }
0x3e68   :  { %3422 = vrot.lane.b32.xlu1 %v5107_v51, %s5150_s27 }
0x3eda   :  { %v3423_v55 = vpop.permute.xlu1 %3422 }
0x3edb   :  { %v3425_v59 = vmul.f32 %v5105_v32, %v3423_v55 }
0x3edd   :  { %v3426_v39 = vpack.c.bf16 %v3425_v59, %v3425_v59 }
0x3edf   :  { %3468 = vrot.lane.b32.xlu1 %v3426_v39, %s5151_s0 }
0x3f51   :  { %v6203_v60 = vpop.permute.xlu1 %3468 }
0x3f52   :  { %4784 = vmatmul.mubr.msk.bf16.vlgmr.msra.gmra.mrb[140].mxu0 %vm167_vm0, %v6203_v60 }
0x3f53   :  { %4788 = vmatpush3.bf16.msra.mxu0 %v5809_v30  ;;  %4791 = vmatprep.mubr.msk.bf16.mxu0 %vm5148_vm1, %v5147_v1 }
0x3f54   :  { %4789 = vmatprep.subr.bf16.mxu0 %v5147_v1 }
0x3f57   :  { %4790 = vmatpush3.bf16.msra.mxu0 %v5815_v35 }
0x4025   :  { %v3507_v22 = vpop.f32.mrb[140].mxu0 }
0x4026   :  { %v3508_v6 = vadd.f32 %v3507_v22, %v3461_v15  ;;  %v4785_v7 = vpop.f32.mrb[141].mxu0 }
0x4027   :  { %v3510_v8 = vpop.f32.mrb[142].mxu0 }
0x4028   :  { %v3513_v10 = vadd.f32 %v5798_v33, %v3508_v6  ;;  %v4786_v14 = vpop.f32.mrb[143].mxu0 }
0x402a   :  { %5108 = vtanh.f32 %v3513_v10  ;;  %v4038_v19 = vmul.f32 -1.442695, %v3513_v10 }
0x402c   :  { %5110 = vpow2.f32 %v4038_v19 }
0x4034   :  { %v5109_v16 = vpop.eup %5108 }
0x4035   :  { %3523 = vrot.lane.b32.xlu0 %v5109_v16, %s5150_s27 }
0x4036   :  { %v5111_v20 = vpop.eup %5110 }
0x4037   :  { %v3517_v24 = vadd.f32 1.0, %v5111_v20 }
0x4039   :  { %5112 = vrcp.f32 %v3517_v24 }
0x4043   :  { %v5113_v31 = vpop.eup %5112 }
0x4044   :  { %v3521_v23 = vmul.f32 %v5113_v31, %v6137_v50 }
0x40a7   :  { %v3524_v25 = vpop.permute.xlu0 %3523 }
0x40a8   :  { %v3526_v41 = vmul.f32 %v5113_v31, %v3524_v25 }
0x40aa   :  { %3528 = vrot.lane.b32.xlu1 %v3526_v41, %s5150_s27 }
0x411c   :  { %v3529_v2 = vpop.permute.xlu1 %3528 }
0x411d   :  { %v6216_v34 = vadd.f32 %v3529_v2, %v3521_v23 }
0x411f   :  { %5114 = vtanh.f32 %v6216_v34 }
0x4129   :  { %v5115_v17 = vpop.eup %5114 }
0x412a   :  { %3534 = vrot.lane.b32.xlu0 %v5115_v17, %s5150_s27 }
0x419c   :  { %v3535_v4 = vpop.permute.xlu0 %3534 }
0x419d   :  { %v3537_v27 = vmul.f32 %v5113_v31, %v3535_v4 }
0x419f   :  { %v3538_v49 = vpack.c.bf16 %v3537_v27, %v3537_v27 }
0x41a1   :  { %3540 = vrot.lane.b32.xlu1 %v3538_v49, %s5151_s0 }
0x4213   :  { %v3541_v57 = vpop.permute.xlu1 %3540 }
0x4214   :  { %4792 = vmatmul.mubr.msk.bf16.vlgmr.msra.gmra.mrb[144].mxu0 %vm167_vm0, %v3541_v57 }
0x42e4   :  { %3591 = sbr.rel (%p4042_p1) target bundleno = 17131 (0x42eb), region = 97 }
0x42e7   :  { %v3579_v28 = vpop.f32.mrb[144].mxu0 }
0x42e8   :  { %v3580_v50 = vadd.f32 %v5825_v40, %v3579_v28  ;;  %v4793_v26 = vpop.f32.mrb[145].mxu0 }
0x42e9   :  { %v3582_v29 = vpop.f32.mrb[146].mxu0 }
0x42ea   :  { %4040 = vst [vmem:[%s6308_s12 + $0x30] sm:$0xff] %v3580_v50  ;;  %v4794_v36 = vpop.f32.mrb[147].mxu0 }
0x42eb PF:  { %s4044_s26 = sld [smem:[#allocation3 + $0x6]] }
0x42f1   :  { %p4045_p2 = scmp.ne.s32.totalorder %s4044_s26, 0 }
0x42f2   :  { %v3600_v32 = vsel (!%p4045_p2), %vm1755_vm2, %v3580_v50, -1e+30  ;;  %v5157_v53 = vmov (!%p4045_p2), 0.0  }
0x42f3   :  { %3599 = sbr.rel (%p4045_p2) target bundleno = 17428 (0x4414), region = 101  ;;  %3601 = vmax.xlane.f32.xlu0 (!%p4045_p2), %v3600_v32 }
0x4380   :  { %v3602_v38 = vpop.xlane.xlu0 %3601 }
0x4381   :  { %vm3603_vm13 = vcmp.ge.f32.partialorder %v3600_v32, %v3602_v38 }
0x4382   :  { %v3604_v42 = vsel %vm3603_vm13, %v5650_v45, 128.0 }
0x4383   :  { %3605 = vmin.xlane.f32.xlu0 %v3604_v42 }
0x4410   :  { %v3606_v43 = vpop.xlane.xlu0 %3605 }
0x4411   :  { %vm3607_vm14 = vcmp.eq.f32.partialorder %v5650_v45, %v3606_v43 }
0x4412   :  { %v4046_v51 = vsel %vm3607_vm14, 1.0, %v5157_v53 }
0x4413   :  { %3610 = vst [vmem:[#allocation2] sm:$0xff] %v4046_v51 }
0x4414 PF:  { %4803 = vmatprep.subr.bf16.mxu1 %v5147_v1  ;;  %4795 = vmatprep.subr.bf16.mxu0 %v5147_v1 }
0x4415   :  { %4804 = vmatpush3.bf16.msra.mxu1 %v5666_v58  ;;  %4796 = vmatpush3.bf16.msra.mxu0 %v5661_v56 }
0x4416   :  { %4805 = vmatprep.subr.bf16.mxu1 %v5147_v1  ;;  %4797 = vmatprep.subr.bf16.mxu0 %v5147_v1 }
0x4417   :  { %4799 = vmatprep.mubr.msk.bf16.mxu0 %vm5148_vm1, %v5147_v1  ;;  %4819 = vmatprep.mubr.msk.bf16.mxu1 %vm5148_vm1, %v5147_v1 }
0x4419   :  { %4806 = vmatpush3.bf16.msra.mxu1 %v5681_v62  ;;  %4798 = vmatpush3.bf16.msra.mxu0 %v5674_v61 }
0x441a   :  { %4807 = vmatprep.subr.bf16.mxu1 %v5147_v1  ;;  %4823 = vmatprep.subr.bf16.mxu0 %v5147_v1  ;;  %v3611_v44 = vld [vmem:[#allocation2] sm:$0xff] }
0x441b   :  { %v3612_v45 = vpack.c.bf16 %v3611_v44, %v3611_v44 }
0x441c   :  { %4800 = vmatmul.mubr.msk.bf16.vlgmr.msra.gmra.mrb[148].mxu0 %vm167_vm0, %v6203_v60 }
0x441d   :  { %4808 = vmatpush3.bf16.msra.mxu1 %v5693_v63  ;;  %4824 = vmatpush3.bf16.msra.mxu0 %v5758_v54 }
0x441e   :  { %4809 = vmatprep.subr.bf16.mxu1 %v5147_v1  ;;  %4825 = vmatprep.subr.bf16.mxu0 %v5147_v1 }
0x441f   :  { %4827 = vmatprep.mubr.msk.bf16.mxu0 %vm5148_vm1, %v5147_v1 }
0x4421   :  { %4810 = vmatpush3.bf16.msra.mxu1 %v5704_v48  ;;  %4826 = vmatpush3.bf16.msra.mxu0 %v5764_v12 }
0x4422   :  { %4811 = vmatprep.subr.bf16.mxu1 %v5147_v1  ;;  %4831 = vmatprep.subr.bf16.mxu0 %v5147_v1 }
0x4424   :  { %4828 = vmatmul.mubr.msk.bf16.vlgmr.msra.gmra.mrb[152].mxu0 %vm167_vm0, %v3541_v57 }
0x4425   :  { %4812 = vmatpush3.bf16.msra.mxu1 %v5711_v18  ;;  %4832 = vmatpush3.bf16.msra.mxu0 %v5775_v9 }
0x4426   :  { %4813 = vmatprep.subr.bf16.mxu1 %v5147_v1  ;;  %4833 = vmatprep.subr.bf16.mxu0 %v5147_v1 }
0x4427   :  { %4835 = vmatprep.mubr.msk.bf16.mxu0 %vm5148_vm1, %v5147_v1 }
0x4429   :  { %4814 = vmatpush3.bf16.msra.mxu1 %v5718_v0  ;;  %4834 = vmatpush3.bf16.msra.mxu0 %v5782_v11 }
0x442a   :  { %4815 = vmatprep.subr.bf16.mxu1 %v5147_v1  ;;  %4839 = vmatprep.subr.bf16.mxu0 %v5147_v1 }
0x442d   :  { %4816 = vmatpush3.bf16.msra.mxu1 %v5725_v3 }
0x442e   :  { %4817 = vmatprep.subr.bf16.mxu1 %v5147_v1 }
0x4431   :  { %4818 = vmatpush3.bf16.msra.mxu1 %v5732_v5 }
0x4434   :  { %4820 = vmatmul.mubr.bf16.vlgmr.msra.gmra.mrb[76].mxu1 %v3612_v45 }
0x44ef   :  { %v3647_v56 = vpop.f32.mrb[148].mxu0 }
0x44f0   :  { %v4801_v58 = vpop.f32.mrb[149].mxu0 }
0x44f1   :  { %v3650_v61 = vpop.f32.mrb[150].mxu0 }
0x44f2   :  { %v4802_v62 = vpop.f32.mrb[151].mxu0 }
0x44f7   :  { %v3753_v39 = vpop.f32.mrb[152].mxu0 }
0x44f8   :  { %v4829_v60 = vpop.f32.mrb[153].mxu0 }
0x44f9   :  { %v3756_v22 = vpop.f32.mrb[154].mxu0 }
0x44fa   :  { %v4830_v6 = vpop.f32.mrb[155].mxu0 }
0x4507   :  { %v3687_v63 = vpop.f32.mrb[76].mxu1 }
0x4508   :  { %v3688_v48 = vadd.f32 %v3687_v63, %v3647_v56  ;;  %v4821_v18 = vpop.f32.mrb[77].mxu1 }
0x4509   :  { %v3690_v0 = vpop.f32.mrb[78].mxu1 }
0x450a   :  { %v3693_v54 = vadd.f32 %v5743_v21, %v3688_v48  ;;  %v4822_v12 = vpop.f32.mrb[79].mxu1 }
0x450c   :  { %5116 = vtanh.f32 %v3693_v54  ;;  %v4048_v9 = vmul.f32 -1.442695, %v3693_v54 }
0x450e   :  { %5118 = vpow2.f32 %v4048_v9 }
0x4516   :  { %v5117_v3 = vpop.eup %5116 }
0x4517   :  { %3703 = vrot.lane.b32.xlu0 %v5117_v3, %s5150_s27 }
0x4518   :  { %v5119_v11 = vpop.eup %5118 }
0x4519   :  { %v3697_v5 = vadd.f32 1.0, %v5119_v11 }
0x451b   :  { %5120 = vrcp.f32 %v3697_v5 }
0x4525   :  { %v5121_v15 = vpop.eup %5120 }
0x4526   :  { %v3701_v47 = vmul.f32 %v5121_v15, %v6198_v46 }
0x4589   :  { %v3704_v52 = vpop.permute.xlu0 %3703 }
0x458a   :  { %v3706_v13 = vmul.f32 %v5121_v15, %v3704_v52 }
0x458c   :  { %3708 = vrot.lane.b32.xlu0 %v3706_v13, %s5150_s27 }
0x45fe   :  { %v3709_v55 = vpop.permute.xlu0 %3708 }
0x45ff   :  { %v3711_v59 = vadd.f32 %v3709_v55, %v3701_v47 }
0x4601   :  { %5122 = vtanh.f32 %v3711_v59 }
0x460b   :  { %v5123_v21 = vpop.eup %5122 }
0x460c   :  { %3714 = vrot.lane.b32.xlu1 %v5123_v21, %s5150_s27 }
0x467e   :  { %v3715_v7 = vpop.permute.xlu1 %3714 }
0x467f   :  { %v3717_v8 = vmul.f32 %v5121_v15, %v3715_v7 }
0x4681   :  { %v3718_v10 = vpack.c.bf16 %v3717_v8, %v3717_v8 }
0x4683   :  { %3760 = vrot.lane.b32.xlu1 %v3718_v10, %s5151_s0 }
0x46f5   :  { %v3761_v14 = vpop.permute.xlu1 %3760 }
0x46f6   :  { %4836 = vmatmul.mubr.msk.bf16.vlgmr.msra.gmra.mrb[156].mxu0 %vm167_vm0, %v3761_v14 }
0x46f7   :  { %4840 = vmatpush3.bf16.msra.mxu0 %v5809_v30  ;;  %4843 = vmatprep.mubr.msk.bf16.mxu0 %vm5148_vm1, %v5147_v1 }
0x46f8   :  { %4841 = vmatprep.subr.bf16.mxu0 %v5147_v1 }
0x46fb   :  { %4842 = vmatpush3.bf16.msra.mxu0 %v5815_v35 }
0x47c9   :  { %v3799_v46 = vpop.f32.mrb[156].mxu0 }
0x47ca   :  { %v3800_v16 = vadd.f32 %v3799_v46, %v3753_v39  ;;  %v4837_v19 = vpop.f32.mrb[157].mxu0 }
0x47cb   :  { %v3802_v20 = vpop.f32.mrb[158].mxu0 }
0x47cc   :  { %v3805_v24 = vadd.f32 %v5798_v33, %v3800_v16  ;;  %v4838_v31 = vpop.f32.mrb[159].mxu0 }
0x47ce   :  { %5124 = vtanh.f32 %v3805_v24  ;;  %v4051_v41 = vmul.f32 -1.442695, %v3805_v24 }
0x47d0   :  { %5126 = vpow2.f32 %v4051_v41 }
0x47d8   :  { %v5125_v25 = vpop.eup %5124 }
0x47d9   :  { %3815 = vrot.lane.b32.xlu0 %v5125_v25, %s5150_s27 }
0x47da   :  { %v5127_v30 = vpop.eup %5126 }
0x47db   :  { %v3809_v23 = vadd.f32 1.0, %v5127_v30 }
0x47dd   :  { %5128 = vrcp.f32 %v3809_v23 }
0x47e7   :  { %v5129_v2 = vpop.eup %5128 }
0x47e8   :  { %v3813_v35 = vmul.f32 %v5129_v2, %v6216_v34 }
0x484b   :  { %v3816_v1 = vpop.permute.xlu0 %3815 }
0x484c   :  { %v3818_v17 = vmul.f32 %v5129_v2, %v3816_v1 }
0x484e   :  { %3820 = vrot.lane.b32.xlu1 %v3818_v17, %s5150_s27 }
0x48c0   :  { %v3821_v4 = vpop.permute.xlu1 %3820 }
0x48c1   :  { %v3823_v27 = vadd.f32 %v3821_v4, %v3813_v35 }
0x48c3   :  { %5130 = vtanh.f32 %v3823_v27 }
0x48cd   :  { %v5131_v33 = vpop.eup %5130 }
0x48ce   :  { %3826 = vrot.lane.b32.xlu0 %v5131_v33, %s5150_s27 }
0x4940   :  { %v3827_v49 = vpop.permute.xlu0 %3826 }
0x4941   :  { %v3829_v57 = vmul.f32 %v5129_v2, %v3827_v49 }
0x4943   :  { %v3830_v28 = vpack.c.bf16 %v3829_v57, %v3829_v57 }
0x4945   :  { %3832 = vrot.lane.b32.xlu1 %v3830_v28, %s5151_s0 }
0x49b7   :  { %v3833_v50 = vpop.permute.xlu1 %3832 }
0x49b8   :  { %4844 = vmatmul.mubr.msk.bf16.vlgmr.msra.gmra.mrb[160].mxu0 %vm167_vm0, %v3833_v50 }
0x4a8b   :  { %v3871_v26 = vpop.f32.mrb[160].mxu0 }
0x4a8c   :  { %v3872_v29 = vadd.f32 %v5825_v40, %v3871_v26  ;;  %v4845_v36 = vpop.f32.mrb[161].mxu0 }
0x4a8d   :  { %v3874_v37 = vpop.f32.mrb[162].mxu0 }
0x4a8e   :  { %4053 = vst [vmem:[%s6308_s12 + $0x38] sm:$0xff] %v3872_v29  ;;  %v4846_v34 = vpop.f32.mrb[163].mxu0 }
0x4a8f   :  { %3883 = vsyncpa [#allocation4], 1 }

</bundles_post_ra>
